<compile_context>
chip_gen: v6e
topology: v6e:2x2x1
jax: 0.10.0
libtpu: 0.0.40
codegen_flags: <defaults>
</compile_context>

<pallas_src>
import jax
import jax.numpy as jnp
from jax.experimental import pallas as pl
from jax.experimental.pallas import tpu as pltpu


# ---------------------------------------------------------------------------
# Fused LeNet kernel (single invocation, everything VMEM-resident)
# ---------------------------------------------------------------------------
def _lenet_fused_kernel(
    x_ref,                         # (N, H, Cin*W)        = (N, 32, 96)
    t1_ref,                        # (KH, Cin*W, C1*OW1)  = (5, 96, 168)
    b1_ref,                        # (1, C1*OW1)          = (1, 168)
    ew1e_ref, ew1o_ref,            # (C1*OW1, C1*OW1//2)  = (168, 84)
    sh1e_ref, sh1o_ref,            # (OH1//2, OH1)        = (14, 28)
    t2_ref,                        # (KH, C1*W2, C2*OW2)  = (5, 84, 160)
    b2_ref,                        # (1, C2*OW2)          = (1, 160)
    ew2e_ref, ew2o_ref,            # (160, 80)
    sh2e_ref, sh2o_ref,            # (5, 10)
    wfc1_ref,                      # (5, 80, 120)  CHW-flatten folded in
    bfc1_ref,                      # (1, 120)
    wfc2_ref,                      # (120, 84)
    bfc2_ref,                      # (1, 84)
    wfc3_ref,                      # (84, 10)
    bfc3_ref,                      # (1, 10)
    o_ref,                         # (N, 10)
    p1_ref, p2_ref, feat_ref,      # VMEM scratch: (14,84), (5,80), (N,120)
):
    f32 = jnp.float32
    n_batch, h_in, _ = x_ref.shape
    kh1 = t1_ref.shape[0]
    oh1 = h_in - kh1 + 1                 # 28
    kh2 = t2_ref.shape[0]
    p1h = p1_ref.shape[0]                # 14
    oh2 = p1h - kh2 + 1                  # 10
    p2h = p2_ref.shape[0]                # 5

    for n in range(n_batch):
        # ---- conv1 + bias + ReLU: banded-Toeplitz matmul per kernel row ----
        acc1 = jnp.zeros((oh1, t1_ref.shape[2]), f32)
        for kh in range(kh1):
            lhs = x_ref[n, pl.ds(kh, oh1), :]                       # (28, 96)
            acc1 += jnp.dot(lhs, t1_ref[kh], preferred_element_type=f32)
        a1 = jnp.maximum(acc1 + b1_ref[...], 0.0)                    # (28, 168)

        # ---- 2x2 max-pool via constant even/odd selection matmuls ----
        aw1 = jnp.maximum(
            jnp.dot(a1, ew1e_ref[...], preferred_element_type=f32),
            jnp.dot(a1, ew1o_ref[...], preferred_element_type=f32))  # (28, 84)
        p1_ref[...] = jnp.maximum(
            jnp.dot(sh1e_ref[...], aw1, preferred_element_type=f32),
            jnp.dot(sh1o_ref[...], aw1, preferred_element_type=f32))  # (14, 84)

        # ---- conv2 + bias + ReLU ----
        acc2 = jnp.zeros((oh2, t2_ref.shape[2]), f32)
        for kh in range(kh2):
            lhs2 = p1_ref[pl.ds(kh, oh2), :]                         # (10, 84)
            acc2 += jnp.dot(lhs2, t2_ref[kh], preferred_element_type=f32)
        a2 = jnp.maximum(acc2 + b2_ref[...], 0.0)                    # (10, 160)

        aw2 = jnp.maximum(
            jnp.dot(a2, ew2e_ref[...], preferred_element_type=f32),
            jnp.dot(a2, ew2o_ref[...], preferred_element_type=f32))  # (10, 80)
        p2_ref[...] = jnp.maximum(
            jnp.dot(sh2e_ref[...], aw2, preferred_element_type=f32),
            jnp.dot(sh2o_ref[...], aw2, preferred_element_type=f32))  # (5, 80)

        # ---- fc1 + ReLU: contract over (h, c*w) as p2h thin matmuls ----
        y1 = bfc1_ref[...]                                           # (1, 120)
        for h in range(p2h):
            y1 = y1 + jnp.dot(p2_ref[pl.ds(h, 1), :], wfc1_ref[h],
                              preferred_element_type=f32)
        feat_ref[pl.ds(n, 1), :] = jnp.maximum(y1, 0.0)

    # ---- fc2 (+ReLU) and fc3 on the whole batch at once ----
    y2 = jnp.maximum(
        jnp.dot(feat_ref[...], wfc2_ref[...], preferred_element_type=f32)
        + bfc2_ref[...], 0.0)                                        # (N, 84)
    y3 = (jnp.dot(y2, wfc3_ref[...], preferred_element_type=f32)
          + bfc3_ref[...])                                           # (N, 10)
    o_ref[...] = y3.astype(o_ref.dtype)


# ---------------------------------------------------------------------------
# Host-side, one-time weight preprocessing
# ---------------------------------------------------------------------------
def _toeplitz_bands(w, in_w):
    """(Cout,Cin,KH,KW) conv weight -> (KH, Cin*in_w, Cout*OW) banded mats.

    T[kh][ci*in_w + w_, co*OW + ow] = w[co, ci, kh, w_-ow] if 0 <= w_-ow < KW.
    """
    c_out, c_in, kh, kw = w.shape
    ow = in_w - kw + 1
    col = jnp.arange(in_w)[:, None]
    ocol = jnp.arange(ow)[None, :]
    diff = col - ocol                                    # (in_w, ow)
    mask = ((diff >= 0) & (diff < kw)).astype(w.dtype)
    kidx = jnp.clip(diff, 0, kw - 1)
    wg = w[:, :, :, kidx]                                # (co, ci, kh, in_w, ow)
    wg = wg * mask[None, None, None]
    t = jnp.transpose(wg, (2, 1, 3, 0, 4))               # (kh, ci, in_w, co, ow)
    return t.reshape(kh, c_in * in_w, c_out * ow)


def _even_odd_col_select(width):
    """0/1 matrices (width, width//2): right-multiply picks even/odd columns."""
    c = jnp.arange(width)[:, None]
    k = jnp.arange(width // 2)[None, :]
    even = (c == 2 * k).astype(jnp.float32)
    odd = (c == 2 * k + 1).astype(jnp.float32)
    return even, odd


def _even_odd_row_select(height):
    """0/1 matrices (height//2, height): left-multiply picks even/odd rows."""
    r = jnp.arange(height // 2)[:, None]
    h = jnp.arange(height)[None, :]
    even = (h == 2 * r).astype(jnp.float32)
    odd = (h == 2 * r + 1).astype(jnp.float32)
    return even, odd


def prepare_lenet_operands(params, input_hw=(32, 32)):
    """Build the VMEM-resident operands consumed by the fused kernel."""
    in_h, in_w = input_hw
    w1, b1 = params["conv1_w"], params["conv1_b"]        # (6,3,5,5), (6,)
    w2, b2 = params["conv2_w"], params["conv2_b"]        # (16,6,5,5), (16,)
    c1, _, kh, kw = w1.shape
    c2 = w2.shape[0]
    ow1, oh1 = in_w - kw + 1, in_h - kh + 1              # 28, 28
    w2_in, h2_in = ow1 // 2, oh1 // 2                    # 14, 14
    ow2, oh2 = w2_in - kw + 1, h2_in - kh + 1            # 10, 10
    p2 = ow2 // 2                                        # 5

    ew1e, ew1o = _even_odd_col_select(c1 * ow1)          # (168, 84)
    sh1e, sh1o = _even_odd_row_select(oh1)               # (14, 28)
    ew2e, ew2o = _even_odd_col_select(c2 * ow2)          # (160, 80)
    sh2e, sh2o = _even_odd_row_select(oh2)               # (5, 10)

    # fc1: fold the PyTorch CHW flatten permutation into the weight.
    fc1_w = params["fc1_w"]                              # (120, c2*p2*p2)
    n_hidden = fc1_w.shape[0]
    wfc1 = fc1_w.reshape(n_hidden, c2, p2, p2)           # (j, co, h, w)
    wfc1 = jnp.transpose(wfc1, (2, 1, 3, 0)).reshape(p2, c2 * p2, n_hidden)

    return {
        "t1": _toeplitz_bands(w1, in_w),                 # (5, 96, 168)
        "b1": jnp.repeat(b1, ow1)[None, :],              # (1, 168)
        "ew1e": ew1e, "ew1o": ew1o, "sh1e": sh1e, "sh1o": sh1o,
        "t2": _toeplitz_bands(w2, w2_in),                # (5, 84, 160)
        "b2": jnp.repeat(b2, ow2)[None, :],              # (1, 160)
        "ew2e": ew2e, "ew2o": ew2o, "sh2e": sh2e, "sh2o": sh2o,
        "wfc1": wfc1,                                    # (5, 80, 120)
        "bfc1": params["fc1_b"][None, :],                # (1, 120)
        "wfc2": params["fc2_w"].T,                       # (120, 84)
        "bfc2": params["fc2_b"][None, :],                # (1, 84)
        "wfc3": params["fc3_w"].T,                       # (84, 10)
        "bfc3": params["fc3_b"][None, :],                # (1, 10)
    }


# ---------------------------------------------------------------------------
# Jitted hot path: layout shuffle of x + ONE pallas_call
# ---------------------------------------------------------------------------
def _full_block(shape):
    nd = len(shape)
    return pl.BlockSpec(shape, lambda i, _nd=nd: (0,) * _nd)


@jax.jit
def lenet_forward(ops, x):
    n, c_in, in_h, in_w = x.shape
    # NCHW -> (N, H, Cin*W) with column index ci*W + w (matches Toeplitz rows).
    x2d = jnp.transpose(x, (0, 2, 1, 3)).reshape(n, in_h, c_in * in_w)

    operands = [x2d, ops["t1"], ops["b1"], ops["ew1e"], ops["ew1o"],
                ops["sh1e"], ops["sh1o"], ops["t2"], ops["b2"],
                ops["ew2e"], ops["ew2o"], ops["sh2e"], ops["sh2o"],
                ops["wfc1"], ops["bfc1"], ops["wfc2"], ops["bfc2"],
                ops["wfc3"], ops["bfc3"]]

    n_classes = ops["wfc3"].shape[1]
    p1_shape = (ops["sh1e"].shape[0], ops["ew1e"].shape[1])     # (14, 84)
    p2_shape = (ops["sh2e"].shape[0], ops["ew2e"].shape[1])     # (5, 80)
    feat_shape = (n, ops["wfc1"].shape[2])                       # (N, 120)

    return pl.pallas_call(
        _lenet_fused_kernel,
        out_shape=jax.ShapeDtypeStruct((n, n_classes), jnp.float32),
        grid=(1,),
        in_specs=[_full_block(op.shape) for op in operands],
        out_specs=_full_block((n, n_classes)),
        scratch_shapes=[
            pltpu.VMEM(p1_shape, jnp.float32),
            pltpu.VMEM(p2_shape, jnp.float32),
            pltpu.VMEM(feat_shape, jnp.float32),
        ],
        compiler_params=pltpu.CompilerParams(
            dimension_semantics=("arbitrary",)),
    )(*operands)


# ---------------------------------------------------------------------------
# Parameters + pure-JAX reference (for a sanity check only)
# ---------------------------------------------------------------------------
def init_lenet_params(key):
    ks = jax.random.split(key, 10)

    def w(k, shape, fan_in):
        bound = 1.0 / jnp.sqrt(fan_in)
        return jax.random.uniform(k, shape, jnp.float32, -bound, bound)

    return {
        "conv1_w": w(ks[0], (6, 3, 5, 5), 3 * 5 * 5),
        "conv1_b": w(ks[1], (6,), 3 * 5 * 5),
        "conv2_w": w(ks[2], (16, 6, 5, 5), 6 * 5 * 5),
        "conv2_b": w(ks[3], (16,), 6 * 5 * 5),
        "fc1_w": w(ks[4], (120, 400), 400),
        "fc1_b": w(ks[5], (120,), 400),
        "fc2_w": w(ks[6], (84, 120), 120),
        "fc2_b": w(ks[7], (84,), 120),
        "fc3_w": w(ks[8], (10, 84), 84),
        "fc3_b": w(ks[9], (10,), 84),
    }


def _conv2d_valid_ref(x, w, b):
    out = jax.lax.conv_general_dilated(
        x, w, window_strides=(1, 1), padding="VALID",
        dimension_numbers=("NCHW", "OIHW", "NCHW"),
        precision=jax.lax.Precision.HIGHEST)
    return out + b[None, :, None, None]


def _max_pool2x2_ref(x):
    n, c, h, w = x.shape
    return x.reshape(n, c, h // 2, 2, w // 2, 2).max(axis=(3, 5))


def lenet_reference(params, x):
    hp = jax.lax.Precision.HIGHEST
    out = jnp.maximum(_conv2d_valid_ref(x, params["conv1_w"], params["conv1_b"]), 0.0)
    out = _max_pool2x2_ref(out)
    out = jnp.maximum(_conv2d_valid_ref(out, params["conv2_w"], params["conv2_b"]), 0.0)
    out = _max_pool2x2_ref(out)
    out = out.reshape(out.shape[0], -1)
    out = jnp.maximum(jnp.dot(out, params["fc1_w"].T, precision=hp) + params["fc1_b"], 0.0)
    out = jnp.maximum(jnp.dot(out, params["fc2_w"].T, precision=hp) + params["fc2_b"], 0.0)
    return jnp.dot(out, params["fc3_w"].T, precision=hp) + params["fc3_b"]


if __name__ == "__main__":
    key = jax.random.PRNGKey(0)
    k_params, k_x = jax.random.split(key)
    params = init_lenet_params(k_params)
    # This LeNet variant expects 3x32x32 inputs so that flatten yields 16*5*5=400.
    x = jax.random.normal(k_x, (2, 3, 32, 32), dtype=jnp.float32)

    ops = prepare_lenet_operands(params, input_hw=(32, 32))
    logits = lenet_forward(ops, x)
    jax.block_until_ready(logits)

    assert logits.shape == (2, 10) and logits.dtype == jnp.float32
    ref = lenet_reference(params, x)
    assert jnp.allclose(logits, ref, atol=2e-2, rtol=2e-2), float(
        jnp.max(jnp.abs(logits - ref)))
    print("KERNEL_OK")
</pallas_src>

<mosaic_0001>
module attributes {stable_mosaic.version = 11 : i64} {
  func.func @_lenet_fused_kernel(%arg0: i32, %arg1: memref<2x32x96xf32, #tpu.memory_space<vmem>>, %arg2: memref<5x96x168xf32, #tpu.memory_space<vmem>>, %arg3: memref<1x168xf32, #tpu.memory_space<vmem>>, %arg4: memref<168x84xf32, #tpu.memory_space<vmem>>, %arg5: memref<168x84xf32, #tpu.memory_space<vmem>>, %arg6: memref<14x28xf32, #tpu.memory_space<vmem>>, %arg7: memref<14x28xf32, #tpu.memory_space<vmem>>, %arg8: memref<5x84x160xf32, #tpu.memory_space<vmem>>, %arg9: memref<1x160xf32, #tpu.memory_space<vmem>>, %arg10: memref<160x80xf32, #tpu.memory_space<vmem>>, %arg11: memref<160x80xf32, #tpu.memory_space<vmem>>, %arg12: memref<5x10xf32, #tpu.memory_space<vmem>>, %arg13: memref<5x10xf32, #tpu.memory_space<vmem>>, %arg14: memref<5x80x120xf32, #tpu.memory_space<vmem>>, %arg15: memref<1x120xf32, #tpu.memory_space<vmem>>, %arg16: memref<120x84xf32, #tpu.memory_space<vmem>>, %arg17: memref<1x84xf32, #tpu.memory_space<vmem>>, %arg18: memref<84x10xf32, #tpu.memory_space<vmem>>, %arg19: memref<1x10xf32, #tpu.memory_space<vmem>>, %arg20: memref<2x10xf32, #tpu.memory_space<vmem>>, %arg21: memref<14x84xf32, #tpu.memory_space<vmem>>, %arg22: memref<5x80xf32, #tpu.memory_space<vmem>>, %arg23: memref<2x120xf32, #tpu.memory_space<vmem>>) attributes {dimension_semantics = [#tpu.dimension_semantics<arbitrary>], iteration_bounds = array<i64: 1>, scalar_prefetch = 0 : i64, scratch_operands = 3 : i64, tpu.core_type = #tpu.core_type<tc>, window_params = [{pipeline_mode = #tpu.pipeline_mode<synchronous>, transform_indices = @transform_0, window_bounds = array<i64: 2, 32, 96>}, {pipeline_mode = #tpu.pipeline_mode<synchronous>, transform_indices = @transform_1, window_bounds = array<i64: 5, 96, 168>}, {pipeline_mode = #tpu.pipeline_mode<synchronous>, transform_indices = @transform_2, window_bounds = array<i64: 1, 168>}, {pipeline_mode = #tpu.pipeline_mode<synchronous>, transform_indices = @transform_3, window_bounds = array<i64: 168, 84>}, {pipeline_mode = #tpu.pipeline_mode<synchronous>, transform_indices = @transform_4, window_bounds = array<i64: 168, 84>}, {pipeline_mode = #tpu.pipeline_mode<synchronous>, transform_indices = @transform_5, window_bounds = array<i64: 14, 28>}, {pipeline_mode = #tpu.pipeline_mode<synchronous>, transform_indices = @transform_6, window_bounds = array<i64: 14, 28>}, {pipeline_mode = #tpu.pipeline_mode<synchronous>, transform_indices = @transform_7, window_bounds = array<i64: 5, 84, 160>}, {pipeline_mode = #tpu.pipeline_mode<synchronous>, transform_indices = @transform_8, window_bounds = array<i64: 1, 160>}, {pipeline_mode = #tpu.pipeline_mode<synchronous>, transform_indices = @transform_9, window_bounds = array<i64: 160, 80>}, {pipeline_mode = #tpu.pipeline_mode<synchronous>, transform_indices = @transform_10, window_bounds = array<i64: 160, 80>}, {pipeline_mode = #tpu.pipeline_mode<synchronous>, transform_indices = @transform_11, window_bounds = array<i64: 5, 10>}, {pipeline_mode = #tpu.pipeline_mode<synchronous>, transform_indices = @transform_12, window_bounds = array<i64: 5, 10>}, {pipeline_mode = #tpu.pipeline_mode<synchronous>, transform_indices = @transform_13, window_bounds = array<i64: 5, 80, 120>}, {pipeline_mode = #tpu.pipeline_mode<synchronous>, transform_indices = @transform_14, window_bounds = array<i64: 1, 120>}, {pipeline_mode = #tpu.pipeline_mode<synchronous>, transform_indices = @transform_15, window_bounds = array<i64: 120, 84>}, {pipeline_mode = #tpu.pipeline_mode<synchronous>, transform_indices = @transform_16, window_bounds = array<i64: 1, 84>}, {pipeline_mode = #tpu.pipeline_mode<synchronous>, transform_indices = @transform_17, window_bounds = array<i64: 84, 10>}, {pipeline_mode = #tpu.pipeline_mode<synchronous>, transform_indices = @transform_18, window_bounds = array<i64: 1, 10>}, {pipeline_mode = #tpu.pipeline_mode<synchronous>, transform_indices = @transform_19, window_bounds = array<i64: 2, 10>}]} {
    %cst = arith.constant 0.000000e+00 : f32
    %0 = vector.broadcast %cst : f32 to vector<28x168xf32>
    %c0 = arith.constant 0 : index
    %c0_0 = arith.constant 0 : index
    %c0_1 = arith.constant 0 : index
    %1 = vector.load %arg1[%c0, %c0_0, %c0_1] : memref<2x32x96xf32, #tpu.memory_space<vmem>>, vector<1x28x96xf32>
    %2 = vector.shape_cast %1 : vector<1x28x96xf32> to vector<28x96xf32>
    %c0_2 = arith.constant 0 : index
    %c0_3 = arith.constant 0 : index
    %c0_4 = arith.constant 0 : index
    %3 = vector.load %arg2[%c0_2, %c0_3, %c0_4] : memref<5x96x168xf32, #tpu.memory_space<vmem>>, vector<1x96x168xf32>
    %4 = vector.shape_cast %3 : vector<1x96x168xf32> to vector<96x168xf32>
    %cst_5 = arith.constant dense<0.000000e+00> : vector<28x168xf32>
    %5 = tpu.matmul %2, %4, %cst_5 {dimension_numbers = #tpu.dot_dimension_numbers<[1], [0], [0], [1], [0, 0, 1, 1], [], []>} : vector<28x96xf32>, vector<96x168xf32>, vector<28x168xf32> -> vector<28x168xf32>
    %6 = arith.addf %0, %5 : vector<28x168xf32>
    %c0_6 = arith.constant 0 : index
    %c1 = arith.constant 1 : index
    %c0_7 = arith.constant 0 : index
    %7 = vector.load %arg1[%c0_6, %c1, %c0_7] : memref<2x32x96xf32, #tpu.memory_space<vmem>>, vector<1x28x96xf32>
    %8 = vector.shape_cast %7 : vector<1x28x96xf32> to vector<28x96xf32>
    %c1_8 = arith.constant 1 : index
    %c0_9 = arith.constant 0 : index
    %c0_10 = arith.constant 0 : index
    %9 = vector.load %arg2[%c1_8, %c0_9, %c0_10] : memref<5x96x168xf32, #tpu.memory_space<vmem>>, vector<1x96x168xf32>
    %10 = vector.shape_cast %9 : vector<1x96x168xf32> to vector<96x168xf32>
    %cst_11 = arith.constant dense<0.000000e+00> : vector<28x168xf32>
    %11 = tpu.matmul %8, %10, %cst_11 {dimension_numbers = #tpu.dot_dimension_numbers<[1], [0], [0], [1], [0, 0, 1, 1], [], []>} : vector<28x96xf32>, vector<96x168xf32>, vector<28x168xf32> -> vector<28x168xf32>
    %12 = arith.addf %6, %11 : vector<28x168xf32>
    %c0_12 = arith.constant 0 : index
    %c2 = arith.constant 2 : index
    %c0_13 = arith.constant 0 : index
    %13 = vector.load %arg1[%c0_12, %c2, %c0_13] : memref<2x32x96xf32, #tpu.memory_space<vmem>>, vector<1x28x96xf32>
    %14 = vector.shape_cast %13 : vector<1x28x96xf32> to vector<28x96xf32>
    %c2_14 = arith.constant 2 : index
    %c0_15 = arith.constant 0 : index
    %c0_16 = arith.constant 0 : index
    %15 = vector.load %arg2[%c2_14, %c0_15, %c0_16] : memref<5x96x168xf32, #tpu.memory_space<vmem>>, vector<1x96x168xf32>
    %16 = vector.shape_cast %15 : vector<1x96x168xf32> to vector<96x168xf32>
    %cst_17 = arith.constant dense<0.000000e+00> : vector<28x168xf32>
    %17 = tpu.matmul %14, %16, %cst_17 {dimension_numbers = #tpu.dot_dimension_numbers<[1], [0], [0], [1], [0, 0, 1, 1], [], []>} : vector<28x96xf32>, vector<96x168xf32>, vector<28x168xf32> -> vector<28x168xf32>
    %18 = arith.addf %12, %17 : vector<28x168xf32>
    %c0_18 = arith.constant 0 : index
    %c3 = arith.constant 3 : index
    %c0_19 = arith.constant 0 : index
    %19 = vector.load %arg1[%c0_18, %c3, %c0_19] : memref<2x32x96xf32, #tpu.memory_space<vmem>>, vector<1x28x96xf32>
    %20 = vector.shape_cast %19 : vector<1x28x96xf32> to vector<28x96xf32>
    %c3_20 = arith.constant 3 : index
    %c0_21 = arith.constant 0 : index
    %c0_22 = arith.constant 0 : index
    %21 = vector.load %arg2[%c3_20, %c0_21, %c0_22] : memref<5x96x168xf32, #tpu.memory_space<vmem>>, vector<1x96x168xf32>
    %22 = vector.shape_cast %21 : vector<1x96x168xf32> to vector<96x168xf32>
    %cst_23 = arith.constant dense<0.000000e+00> : vector<28x168xf32>
    %23 = tpu.matmul %20, %22, %cst_23 {dimension_numbers = #tpu.dot_dimension_numbers<[1], [0], [0], [1], [0, 0, 1, 1], [], []>} : vector<28x96xf32>, vector<96x168xf32>, vector<28x168xf32> -> vector<28x168xf32>
    %24 = arith.addf %18, %23 : vector<28x168xf32>
    %c0_24 = arith.constant 0 : index
    %c4 = arith.constant 4 : index
    %c0_25 = arith.constant 0 : index
    %25 = vector.load %arg1[%c0_24, %c4, %c0_25] : memref<2x32x96xf32, #tpu.memory_space<vmem>>, vector<1x28x96xf32>
    %26 = vector.shape_cast %25 : vector<1x28x96xf32> to vector<28x96xf32>
    %c4_26 = arith.constant 4 : index
    %c0_27 = arith.constant 0 : index
    %c0_28 = arith.constant 0 : index
    %27 = vector.load %arg2[%c4_26, %c0_27, %c0_28] : memref<5x96x168xf32, #tpu.memory_space<vmem>>, vector<1x96x168xf32>
    %28 = vector.shape_cast %27 : vector<1x96x168xf32> to vector<96x168xf32>
    %cst_29 = arith.constant dense<0.000000e+00> : vector<28x168xf32>
    %29 = tpu.matmul %26, %28, %cst_29 {dimension_numbers = #tpu.dot_dimension_numbers<[1], [0], [0], [1], [0, 0, 1, 1], [], []>} : vector<28x96xf32>, vector<96x168xf32>, vector<28x168xf32> -> vector<28x168xf32>
    %30 = arith.addf %24, %29 : vector<28x168xf32>
    %c0_30 = arith.constant 0 : index
    %c0_31 = arith.constant 0 : index
    %31 = vector.load %arg3[%c0_30, %c0_31] : memref<1x168xf32, #tpu.memory_space<vmem>>, vector<1x168xf32>
    %32 = vector.broadcast %31 : vector<1x168xf32> to vector<28x168xf32>
    %33 = arith.addf %30, %32 : vector<28x168xf32>
    %cst_32 = arith.constant 0.000000e+00 : f32
    %34 = vector.broadcast %cst_32 : f32 to vector<28x168xf32>
    %35 = arith.maximumf %33, %34 : vector<28x168xf32>
    %c0_33 = arith.constant 0 : index
    %c0_34 = arith.constant 0 : index
    %36 = vector.load %arg4[%c0_33, %c0_34] : memref<168x84xf32, #tpu.memory_space<vmem>>, vector<168x84xf32>
    %cst_35 = arith.constant dense<0.000000e+00> : vector<28x84xf32>
    %37 = tpu.matmul %35, %36, %cst_35 {dimension_numbers = #tpu.dot_dimension_numbers<[1], [0], [0], [1], [0, 0, 1, 1], [], []>} : vector<28x168xf32>, vector<168x84xf32>, vector<28x84xf32> -> vector<28x84xf32>
    %c0_36 = arith.constant 0 : index
    %c0_37 = arith.constant 0 : index
    %38 = vector.load %arg5[%c0_36, %c0_37] : memref<168x84xf32, #tpu.memory_space<vmem>>, vector<168x84xf32>
    %cst_38 = arith.constant dense<0.000000e+00> : vector<28x84xf32>
    %39 = tpu.matmul %35, %38, %cst_38 {dimension_numbers = #tpu.dot_dimension_numbers<[1], [0], [0], [1], [0, 0, 1, 1], [], []>} : vector<28x168xf32>, vector<168x84xf32>, vector<28x84xf32> -> vector<28x84xf32>
    %40 = arith.maximumf %37, %39 : vector<28x84xf32>
    %c0_39 = arith.constant 0 : index
    %c0_40 = arith.constant 0 : index
    %41 = vector.load %arg6[%c0_39, %c0_40] : memref<14x28xf32, #tpu.memory_space<vmem>>, vector<14x28xf32>
    %cst_41 = arith.constant dense<0.000000e+00> : vector<14x84xf32>
    %42 = tpu.matmul %41, %40, %cst_41 {dimension_numbers = #tpu.dot_dimension_numbers<[1], [0], [0], [1], [0, 0, 1, 1], [], []>} : vector<14x28xf32>, vector<28x84xf32>, vector<14x84xf32> -> vector<14x84xf32>
    %c0_42 = arith.constant 0 : index
    %c0_43 = arith.constant 0 : index
    %43 = vector.load %arg7[%c0_42, %c0_43] : memref<14x28xf32, #tpu.memory_space<vmem>>, vector<14x28xf32>
    %cst_44 = arith.constant dense<0.000000e+00> : vector<14x84xf32>
    %44 = tpu.matmul %43, %40, %cst_44 {dimension_numbers = #tpu.dot_dimension_numbers<[1], [0], [0], [1], [0, 0, 1, 1], [], []>} : vector<14x28xf32>, vector<28x84xf32>, vector<14x84xf32> -> vector<14x84xf32>
    %45 = arith.maximumf %42, %44 : vector<14x84xf32>
    %c0_45 = arith.constant 0 : index
    %c0_46 = arith.constant 0 : index
    %46 = vector.load %arg21[%c0_45, %c0_46] : memref<14x84xf32, #tpu.memory_space<vmem>>, vector<14x84xf32>
    tpu.vector_store %arg21[%c0_45, %c0_46], %45 {strides = array<i32>} : memref<14x84xf32, #tpu.memory_space<vmem>>, vector<14x84xf32>,
    %cst_47 = arith.constant 0.000000e+00 : f32
    %47 = vector.broadcast %cst_47 : f32 to vector<10x160xf32>
    %c0_48 = arith.constant 0 : index
    %c0_49 = arith.constant 0 : index
    %48 = vector.load %arg21[%c0_48, %c0_49] : memref<14x84xf32, #tpu.memory_space<vmem>>, vector<10x84xf32>
    %c0_50 = arith.constant 0 : index
    %c0_51 = arith.constant 0 : index
    %c0_52 = arith.constant 0 : index
    %49 = vector.load %arg8[%c0_50, %c0_51, %c0_52] : memref<5x84x160xf32, #tpu.memory_space<vmem>>, vector<1x84x160xf32>
    %50 = vector.shape_cast %49 : vector<1x84x160xf32> to vector<84x160xf32>
    %cst_53 = arith.constant dense<0.000000e+00> : vector<10x160xf32>
    %51 = tpu.matmul %48, %50, %cst_53 {dimension_numbers = #tpu.dot_dimension_numbers<[1], [0], [0], [1], [0, 0, 1, 1], [], []>} : vector<10x84xf32>, vector<84x160xf32>, vector<10x160xf32> -> vector<10x160xf32>
    %52 = arith.addf %47, %51 : vector<10x160xf32>
    %c1_54 = arith.constant 1 : index
    %c0_55 = arith.constant 0 : index
    %53 = vector.load %arg21[%c1_54, %c0_55] : memref<14x84xf32, #tpu.memory_space<vmem>>, vector<10x84xf32>
    %c1_56 = arith.constant 1 : index
    %c0_57 = arith.constant 0 : index
    %c0_58 = arith.constant 0 : index
    %54 = vector.load %arg8[%c1_56, %c0_57, %c0_58] : memref<5x84x160xf32, #tpu.memory_space<vmem>>, vector<1x84x160xf32>
    %55 = vector.shape_cast %54 : vector<1x84x160xf32> to vector<84x160xf32>
    %cst_59 = arith.constant dense<0.000000e+00> : vector<10x160xf32>
    %56 = tpu.matmul %53, %55, %cst_59 {dimension_numbers = #tpu.dot_dimension_numbers<[1], [0], [0], [1], [0, 0, 1, 1], [], []>} : vector<10x84xf32>, vector<84x160xf32>, vector<10x160xf32> -> vector<10x160xf32>
    %57 = arith.addf %52, %56 : vector<10x160xf32>
    %c2_60 = arith.constant 2 : index
    %c0_61 = arith.constant 0 : index
    %58 = vector.load %arg21[%c2_60, %c0_61] : memref<14x84xf32, #tpu.memory_space<vmem>>, vector<10x84xf32>
    %c2_62 = arith.constant 2 : index
    %c0_63 = arith.constant 0 : index
    %c0_64 = arith.constant 0 : index
    %59 = vector.load %arg8[%c2_62, %c0_63, %c0_64] : memref<5x84x160xf32, #tpu.memory_space<vmem>>, vector<1x84x160xf32>
    %60 = vector.shape_cast %59 : vector<1x84x160xf32> to vector<84x160xf32>
    %cst_65 = arith.constant dense<0.000000e+00> : vector<10x160xf32>
    %61 = tpu.matmul %58, %60, %cst_65 {dimension_numbers = #tpu.dot_dimension_numbers<[1], [0], [0], [1], [0, 0, 1, 1], [], []>} : vector<10x84xf32>, vector<84x160xf32>, vector<10x160xf32> -> vector<10x160xf32>
    %62 = arith.addf %57, %61 : vector<10x160xf32>
    %c3_66 = arith.constant 3 : index
    %c0_67 = arith.constant 0 : index
    %63 = vector.load %arg21[%c3_66, %c0_67] : memref<14x84xf32, #tpu.memory_space<vmem>>, vector<10x84xf32>
    %c3_68 = arith.constant 3 : index
    %c0_69 = arith.constant 0 : index
    %c0_70 = arith.constant 0 : index
    %64 = vector.load %arg8[%c3_68, %c0_69, %c0_70] : memref<5x84x160xf32, #tpu.memory_space<vmem>>, vector<1x84x160xf32>
    %65 = vector.shape_cast %64 : vector<1x84x160xf32> to vector<84x160xf32>
    %cst_71 = arith.constant dense<0.000000e+00> : vector<10x160xf32>
    %66 = tpu.matmul %63, %65, %cst_71 {dimension_numbers = #tpu.dot_dimension_numbers<[1], [0], [0], [1], [0, 0, 1, 1], [], []>} : vector<10x84xf32>, vector<84x160xf32>, vector<10x160xf32> -> vector<10x160xf32>
    %67 = arith.addf %62, %66 : vector<10x160xf32>
    %c4_72 = arith.constant 4 : index
    %c0_73 = arith.constant 0 : index
    %68 = vector.load %arg21[%c4_72, %c0_73] : memref<14x84xf32, #tpu.memory_space<vmem>>, vector<10x84xf32>
    %c4_74 = arith.constant 4 : index
    %c0_75 = arith.constant 0 : index
    %c0_76 = arith.constant 0 : index
    %69 = vector.load %arg8[%c4_74, %c0_75, %c0_76] : memref<5x84x160xf32, #tpu.memory_space<vmem>>, vector<1x84x160xf32>
    %70 = vector.shape_cast %69 : vector<1x84x160xf32> to vector<84x160xf32>
    %cst_77 = arith.constant dense<0.000000e+00> : vector<10x160xf32>
    %71 = tpu.matmul %68, %70, %cst_77 {dimension_numbers = #tpu.dot_dimension_numbers<[1], [0], [0], [1], [0, 0, 1, 1], [], []>} : vector<10x84xf32>, vector<84x160xf32>, vector<10x160xf32> -> vector<10x160xf32>
    %72 = arith.addf %67, %71 : vector<10x160xf32>
    %c0_78 = arith.constant 0 : index
    %c0_79 = arith.constant 0 : index
    %73 = vector.load %arg9[%c0_78, %c0_79] : memref<1x160xf32, #tpu.memory_space<vmem>>, vector<1x160xf32>
    %74 = vector.broadcast %73 : vector<1x160xf32> to vector<10x160xf32>
    %75 = arith.addf %72, %74 : vector<10x160xf32>
    %cst_80 = arith.constant 0.000000e+00 : f32
    %76 = vector.broadcast %cst_80 : f32 to vector<10x160xf32>
    %77 = arith.maximumf %75, %76 : vector<10x160xf32>
    %c0_81 = arith.constant 0 : index
    %c0_82 = arith.constant 0 : index
    %78 = vector.load %arg10[%c0_81, %c0_82] : memref<160x80xf32, #tpu.memory_space<vmem>>, vector<160x80xf32>
    %cst_83 = arith.constant dense<0.000000e+00> : vector<10x80xf32>
    %79 = tpu.matmul %77, %78, %cst_83 {dimension_numbers = #tpu.dot_dimension_numbers<[1], [0], [0], [1], [0, 0, 1, 1], [], []>} : vector<10x160xf32>, vector<160x80xf32>, vector<10x80xf32> -> vector<10x80xf32>
    %c0_84 = arith.constant 0 : index
    %c0_85 = arith.constant 0 : index
    %80 = vector.load %arg11[%c0_84, %c0_85] : memref<160x80xf32, #tpu.memory_space<vmem>>, vector<160x80xf32>
    %cst_86 = arith.constant dense<0.000000e+00> : vector<10x80xf32>
    %81 = tpu.matmul %77, %80, %cst_86 {dimension_numbers = #tpu.dot_dimension_numbers<[1], [0], [0], [1], [0, 0, 1, 1], [], []>} : vector<10x160xf32>, vector<160x80xf32>, vector<10x80xf32> -> vector<10x80xf32>
    %82 = arith.maximumf %79, %81 : vector<10x80xf32>
    %c0_87 = arith.constant 0 : index
    %c0_88 = arith.constant 0 : index
    %83 = vector.load %arg12[%c0_87, %c0_88] : memref<5x10xf32, #tpu.memory_space<vmem>>, vector<5x10xf32>
    %cst_89 = arith.constant dense<0.000000e+00> : vector<5x80xf32>
    %84 = tpu.matmul %83, %82, %cst_89 {dimension_numbers = #tpu.dot_dimension_numbers<[1], [0], [0], [1], [0, 0, 1, 1], [], []>} : vector<5x10xf32>, vector<10x80xf32>, vector<5x80xf32> -> vector<5x80xf32>
    %c0_90 = arith.constant 0 : index
    %c0_91 = arith.constant 0 : index
    %85 = vector.load %arg13[%c0_90, %c0_91] : memref<5x10xf32, #tpu.memory_space<vmem>>, vector<5x10xf32>
    %cst_92 = arith.constant dense<0.000000e+00> : vector<5x80xf32>
    %86 = tpu.matmul %85, %82, %cst_92 {dimension_numbers = #tpu.dot_dimension_numbers<[1], [0], [0], [1], [0, 0, 1, 1], [], []>} : vector<5x10xf32>, vector<10x80xf32>, vector<5x80xf32> -> vector<5x80xf32>
    %87 = arith.maximumf %84, %86 : vector<5x80xf32>
    %c0_93 = arith.constant 0 : index
    %c0_94 = arith.constant 0 : index
    %88 = vector.load %arg22[%c0_93, %c0_94] : memref<5x80xf32, #tpu.memory_space<vmem>>, vector<5x80xf32>
    tpu.vector_store %arg22[%c0_93, %c0_94], %87 {strides = array<i32>} : memref<5x80xf32, #tpu.memory_space<vmem>>, vector<5x80xf32>,
    %c0_95 = arith.constant 0 : index
    %c0_96 = arith.constant 0 : index
    %89 = vector.load %arg15[%c0_95, %c0_96] : memref<1x120xf32, #tpu.memory_space<vmem>>, vector<1x120xf32>
    %c0_97 = arith.constant 0 : index
    %c0_98 = arith.constant 0 : index
    %90 = vector.load %arg22[%c0_97, %c0_98] : memref<5x80xf32, #tpu.memory_space<vmem>>, vector<1x80xf32>
    %c0_99 = arith.constant 0 : index
    %c0_100 = arith.constant 0 : index
    %c0_101 = arith.constant 0 : index
    %91 = vector.load %arg14[%c0_99, %c0_100, %c0_101] : memref<5x80x120xf32, #tpu.memory_space<vmem>>, vector<1x80x120xf32>
    %92 = vector.shape_cast %91 : vector<1x80x120xf32> to vector<80x120xf32>
    %cst_102 = arith.constant dense<0.000000e+00> : vector<1x120xf32>
    %93 = tpu.matmul %90, %92, %cst_102 {dimension_numbers = #tpu.dot_dimension_numbers<[1], [0], [0], [1], [0, 0, 1, 1], [], []>} : vector<1x80xf32>, vector<80x120xf32>, vector<1x120xf32> -> vector<1x120xf32>
    %94 = arith.addf %89, %93 : vector<1x120xf32>
    %c1_103 = arith.constant 1 : index
    %c0_104 = arith.constant 0 : index
    %95 = vector.load %arg22[%c1_103, %c0_104] : memref<5x80xf32, #tpu.memory_space<vmem>>, vector<1x80xf32>
    %c1_105 = arith.constant 1 : index
    %c0_106 = arith.constant 0 : index
    %c0_107 = arith.constant 0 : index
    %96 = vector.load %arg14[%c1_105, %c0_106, %c0_107] : memref<5x80x120xf32, #tpu.memory_space<vmem>>, vector<1x80x120xf32>
    %97 = vector.shape_cast %96 : vector<1x80x120xf32> to vector<80x120xf32>
    %cst_108 = arith.constant dense<0.000000e+00> : vector<1x120xf32>
    %98 = tpu.matmul %95, %97, %cst_108 {dimension_numbers = #tpu.dot_dimension_numbers<[1], [0], [0], [1], [0, 0, 1, 1], [], []>} : vector<1x80xf32>, vector<80x120xf32>, vector<1x120xf32> -> vector<1x120xf32>
    %99 = arith.addf %94, %98 : vector<1x120xf32>
    %c2_109 = arith.constant 2 : index
    %c0_110 = arith.constant 0 : index
    %100 = vector.load %arg22[%c2_109, %c0_110] : memref<5x80xf32, #tpu.memory_space<vmem>>, vector<1x80xf32>
    %c2_111 = arith.constant 2 : index
    %c0_112 = arith.constant 0 : index
    %c0_113 = arith.constant 0 : index
    %101 = vector.load %arg14[%c2_111, %c0_112, %c0_113] : memref<5x80x120xf32, #tpu.memory_space<vmem>>, vector<1x80x120xf32>
    %102 = vector.shape_cast %101 : vector<1x80x120xf32> to vector<80x120xf32>
    %cst_114 = arith.constant dense<0.000000e+00> : vector<1x120xf32>
    %103 = tpu.matmul %100, %102, %cst_114 {dimension_numbers = #tpu.dot_dimension_numbers<[1], [0], [0], [1], [0, 0, 1, 1], [], []>} : vector<1x80xf32>, vector<80x120xf32>, vector<1x120xf32> -> vector<1x120xf32>
    %104 = arith.addf %99, %103 : vector<1x120xf32>
    %c3_115 = arith.constant 3 : index
    %c0_116 = arith.constant 0 : index
    %105 = vector.load %arg22[%c3_115, %c0_116] : memref<5x80xf32, #tpu.memory_space<vmem>>, vector<1x80xf32>
    %c3_117 = arith.constant 3 : index
    %c0_118 = arith.constant 0 : index
    %c0_119 = arith.constant 0 : index
    %106 = vector.load %arg14[%c3_117, %c0_118, %c0_119] : memref<5x80x120xf32, #tpu.memory_space<vmem>>, vector<1x80x120xf32>
    %107 = vector.shape_cast %106 : vector<1x80x120xf32> to vector<80x120xf32>
    %cst_120 = arith.constant dense<0.000000e+00> : vector<1x120xf32>
    %108 = tpu.matmul %105, %107, %cst_120 {dimension_numbers = #tpu.dot_dimension_numbers<[1], [0], [0], [1], [0, 0, 1, 1], [], []>} : vector<1x80xf32>, vector<80x120xf32>, vector<1x120xf32> -> vector<1x120xf32>
    %109 = arith.addf %104, %108 : vector<1x120xf32>
    %c4_121 = arith.constant 4 : index
    %c0_122 = arith.constant 0 : index
    %110 = vector.load %arg22[%c4_121, %c0_122] : memref<5x80xf32, #tpu.memory_space<vmem>>, vector<1x80xf32>
    %c4_123 = arith.constant 4 : index
    %c0_124 = arith.constant 0 : index
    %c0_125 = arith.constant 0 : index
    %111 = vector.load %arg14[%c4_123, %c0_124, %c0_125] : memref<5x80x120xf32, #tpu.memory_space<vmem>>, vector<1x80x120xf32>
    %112 = vector.shape_cast %111 : vector<1x80x120xf32> to vector<80x120xf32>
    %cst_126 = arith.constant dense<0.000000e+00> : vector<1x120xf32>
    %113 = tpu.matmul %110, %112, %cst_126 {dimension_numbers = #tpu.dot_dimension_numbers<[1], [0], [0], [1], [0, 0, 1, 1], [], []>} : vector<1x80xf32>, vector<80x120xf32>, vector<1x120xf32> -> vector<1x120xf32>
    %114 = arith.addf %109, %113 : vector<1x120xf32>
    %cst_127 = arith.constant 0.000000e+00 : f32
    %115 = vector.broadcast %cst_127 : f32 to vector<1x120xf32>
    %116 = arith.maximumf %114, %115 : vector<1x120xf32>
    %c0_128 = arith.constant 0 : index
    %c0_129 = arith.constant 0 : index
    %117 = vector.load %arg23[%c0_128, %c0_129] : memref<2x120xf32, #tpu.memory_space<vmem>>, vector<1x120xf32>
    tpu.vector_store %arg23[%c0_128, %c0_129], %116 {strides = array<i32>} : memref<2x120xf32, #tpu.memory_space<vmem>>, vector<1x120xf32>,
    %cst_130 = arith.constant 0.000000e+00 : f32
    %118 = vector.broadcast %cst_130 : f32 to vector<28x168xf32>
    %c1_131 = arith.constant 1 : index
    %c0_132 = arith.constant 0 : index
    %c0_133 = arith.constant 0 : index
    %119 = vector.load %arg1[%c1_131, %c0_132, %c0_133] : memref<2x32x96xf32, #tpu.memory_space<vmem>>, vector<1x28x96xf32>
    %120 = vector.shape_cast %119 : vector<1x28x96xf32> to vector<28x96xf32>
    %c0_134 = arith.constant 0 : index
    %c0_135 = arith.constant 0 : index
    %c0_136 = arith.constant 0 : index
    %121 = vector.load %arg2[%c0_134, %c0_135, %c0_136] : memref<5x96x168xf32, #tpu.memory_space<vmem>>, vector<1x96x168xf32>
    %122 = vector.shape_cast %121 : vector<1x96x168xf32> to vector<96x168xf32>
    %cst_137 = arith.constant dense<0.000000e+00> : vector<28x168xf32>
    %123 = tpu.matmul %120, %122, %cst_137 {dimension_numbers = #tpu.dot_dimension_numbers<[1], [0], [0], [1], [0, 0, 1, 1], [], []>} : vector<28x96xf32>, vector<96x168xf32>, vector<28x168xf32> -> vector<28x168xf32>
    %124 = arith.addf %118, %123 : vector<28x168xf32>
    %c1_138 = arith.constant 1 : index
    %c1_139 = arith.constant 1 : index
    %c0_140 = arith.constant 0 : index
    %125 = vector.load %arg1[%c1_138, %c1_139, %c0_140] : memref<2x32x96xf32, #tpu.memory_space<vmem>>, vector<1x28x96xf32>
    %126 = vector.shape_cast %125 : vector<1x28x96xf32> to vector<28x96xf32>
    %c1_141 = arith.constant 1 : index
    %c0_142 = arith.constant 0 : index
    %c0_143 = arith.constant 0 : index
    %127 = vector.load %arg2[%c1_141, %c0_142, %c0_143] : memref<5x96x168xf32, #tpu.memory_space<vmem>>, vector<1x96x168xf32>
    %128 = vector.shape_cast %127 : vector<1x96x168xf32> to vector<96x168xf32>
    %cst_144 = arith.constant dense<0.000000e+00> : vector<28x168xf32>
    %129 = tpu.matmul %126, %128, %cst_144 {dimension_numbers = #tpu.dot_dimension_numbers<[1], [0], [0], [1], [0, 0, 1, 1], [], []>} : vector<28x96xf32>, vector<96x168xf32>, vector<28x168xf32> -> vector<28x168xf32>
    %130 = arith.addf %124, %129 : vector<28x168xf32>
    %c1_145 = arith.constant 1 : index
    %c2_146 = arith.constant 2 : index
    %c0_147 = arith.constant 0 : index
    %131 = vector.load %arg1[%c1_145, %c2_146, %c0_147] : memref<2x32x96xf32, #tpu.memory_space<vmem>>, vector<1x28x96xf32>
    %132 = vector.shape_cast %131 : vector<1x28x96xf32> to vector<28x96xf32>
    %c2_148 = arith.constant 2 : index
    %c0_149 = arith.constant 0 : index
    %c0_150 = arith.constant 0 : index
    %133 = vector.load %arg2[%c2_148, %c0_149, %c0_150] : memref<5x96x168xf32, #tpu.memory_space<vmem>>, vector<1x96x168xf32>
    %134 = vector.shape_cast %133 : vector<1x96x168xf32> to vector<96x168xf32>
    %cst_151 = arith.constant dense<0.000000e+00> : vector<28x168xf32>
    %135 = tpu.matmul %132, %134, %cst_151 {dimension_numbers = #tpu.dot_dimension_numbers<[1], [0], [0], [1], [0, 0, 1, 1], [], []>} : vector<28x96xf32>, vector<96x168xf32>, vector<28x168xf32> -> vector<28x168xf32>
    %136 = arith.addf %130, %135 : vector<28x168xf32>
    %c1_152 = arith.constant 1 : index
    %c3_153 = arith.constant 3 : index
    %c0_154 = arith.constant 0 : index
    %137 = vector.load %arg1[%c1_152, %c3_153, %c0_154] : memref<2x32x96xf32, #tpu.memory_space<vmem>>, vector<1x28x96xf32>
    %138 = vector.shape_cast %137 : vector<1x28x96xf32> to vector<28x96xf32>
    %c3_155 = arith.constant 3 : index
    %c0_156 = arith.constant 0 : index
    %c0_157 = arith.constant 0 : index
    %139 = vector.load %arg2[%c3_155, %c0_156, %c0_157] : memref<5x96x168xf32, #tpu.memory_space<vmem>>, vector<1x96x168xf32>
    %140 = vector.shape_cast %139 : vector<1x96x168xf32> to vector<96x168xf32>
    %cst_158 = arith.constant dense<0.000000e+00> : vector<28x168xf32>
    %141 = tpu.matmul %138, %140, %cst_158 {dimension_numbers = #tpu.dot_dimension_numbers<[1], [0], [0], [1], [0, 0, 1, 1], [], []>} : vector<28x96xf32>, vector<96x168xf32>, vector<28x168xf32> -> vector<28x168xf32>
    %142 = arith.addf %136, %141 : vector<28x168xf32>
    %c1_159 = arith.constant 1 : index
    %c4_160 = arith.constant 4 : index
    %c0_161 = arith.constant 0 : index
    %143 = vector.load %arg1[%c1_159, %c4_160, %c0_161] : memref<2x32x96xf32, #tpu.memory_space<vmem>>, vector<1x28x96xf32>
    %144 = vector.shape_cast %143 : vector<1x28x96xf32> to vector<28x96xf32>
    %c4_162 = arith.constant 4 : index
    %c0_163 = arith.constant 0 : index
    %c0_164 = arith.constant 0 : index
    %145 = vector.load %arg2[%c4_162, %c0_163, %c0_164] : memref<5x96x168xf32, #tpu.memory_space<vmem>>, vector<1x96x168xf32>
    %146 = vector.shape_cast %145 : vector<1x96x168xf32> to vector<96x168xf32>
    %cst_165 = arith.constant dense<0.000000e+00> : vector<28x168xf32>
    %147 = tpu.matmul %144, %146, %cst_165 {dimension_numbers = #tpu.dot_dimension_numbers<[1], [0], [0], [1], [0, 0, 1, 1], [], []>} : vector<28x96xf32>, vector<96x168xf32>, vector<28x168xf32> -> vector<28x168xf32>
    %148 = arith.addf %142, %147 : vector<28x168xf32>
    %c0_166 = arith.constant 0 : index
    %c0_167 = arith.constant 0 : index
    %149 = vector.load %arg3[%c0_166, %c0_167] : memref<1x168xf32, #tpu.memory_space<vmem>>, vector<1x168xf32>
    %150 = vector.broadcast %149 : vector<1x168xf32> to vector<28x168xf32>
    %151 = arith.addf %148, %150 : vector<28x168xf32>
    %cst_168 = arith.constant 0.000000e+00 : f32
    %152 = vector.broadcast %cst_168 : f32 to vector<28x168xf32>
    %153 = arith.maximumf %151, %152 : vector<28x168xf32>
    %c0_169 = arith.constant 0 : index
    %c0_170 = arith.constant 0 : index
    %154 = vector.load %arg4[%c0_169, %c0_170] : memref<168x84xf32, #tpu.memory_space<vmem>>, vector<168x84xf32>
    %cst_171 = arith.constant dense<0.000000e+00> : vector<28x84xf32>
    %155 = tpu.matmul %153, %154, %cst_171 {dimension_numbers = #tpu.dot_dimension_numbers<[1], [0], [0], [1], [0, 0, 1, 1], [], []>} : vector<28x168xf32>, vector<168x84xf32>, vector<28x84xf32> -> vector<28x84xf32>
    %c0_172 = arith.constant 0 : index
    %c0_173 = arith.constant 0 : index
    %156 = vector.load %arg5[%c0_172, %c0_173] : memref<168x84xf32, #tpu.memory_space<vmem>>, vector<168x84xf32>
    %cst_174 = arith.constant dense<0.000000e+00> : vector<28x84xf32>
    %157 = tpu.matmul %153, %156, %cst_174 {dimension_numbers = #tpu.dot_dimension_numbers<[1], [0], [0], [1], [0, 0, 1, 1], [], []>} : vector<28x168xf32>, vector<168x84xf32>, vector<28x84xf32> -> vector<28x84xf32>
    %158 = arith.maximumf %155, %157 : vector<28x84xf32>
    %c0_175 = arith.constant 0 : index
    %c0_176 = arith.constant 0 : index
    %159 = vector.load %arg6[%c0_175, %c0_176] : memref<14x28xf32, #tpu.memory_space<vmem>>, vector<14x28xf32>
    %cst_177 = arith.constant dense<0.000000e+00> : vector<14x84xf32>
    %160 = tpu.matmul %159, %158, %cst_177 {dimension_numbers = #tpu.dot_dimension_numbers<[1], [0], [0], [1], [0, 0, 1, 1], [], []>} : vector<14x28xf32>, vector<28x84xf32>, vector<14x84xf32> -> vector<14x84xf32>
    %c0_178 = arith.constant 0 : index
    %c0_179 = arith.constant 0 : index
    %161 = vector.load %arg7[%c0_178, %c0_179] : memref<14x28xf32, #tpu.memory_space<vmem>>, vector<14x28xf32>
    %cst_180 = arith.constant dense<0.000000e+00> : vector<14x84xf32>
    %162 = tpu.matmul %161, %158, %cst_180 {dimension_numbers = #tpu.dot_dimension_numbers<[1], [0], [0], [1], [0, 0, 1, 1], [], []>} : vector<14x28xf32>, vector<28x84xf32>, vector<14x84xf32> -> vector<14x84xf32>
    %163 = arith.maximumf %160, %162 : vector<14x84xf32>
    %c0_181 = arith.constant 0 : index
    %c0_182 = arith.constant 0 : index
    %164 = vector.load %arg21[%c0_181, %c0_182] : memref<14x84xf32, #tpu.memory_space<vmem>>, vector<14x84xf32>
    tpu.vector_store %arg21[%c0_181, %c0_182], %163 {strides = array<i32>} : memref<14x84xf32, #tpu.memory_space<vmem>>, vector<14x84xf32>,
    %cst_183 = arith.constant 0.000000e+00 : f32
    %165 = vector.broadcast %cst_183 : f32 to vector<10x160xf32>
    %c0_184 = arith.constant 0 : index
    %c0_185 = arith.constant 0 : index
    %166 = vector.load %arg21[%c0_184, %c0_185] : memref<14x84xf32, #tpu.memory_space<vmem>>, vector<10x84xf32>
    %c0_186 = arith.constant 0 : index
    %c0_187 = arith.constant 0 : index
    %c0_188 = arith.constant 0 : index
    %167 = vector.load %arg8[%c0_186, %c0_187, %c0_188] : memref<5x84x160xf32, #tpu.memory_space<vmem>>, vector<1x84x160xf32>
    %168 = vector.shape_cast %167 : vector<1x84x160xf32> to vector<84x160xf32>
    %cst_189 = arith.constant dense<0.000000e+00> : vector<10x160xf32>
    %169 = tpu.matmul %166, %168, %cst_189 {dimension_numbers = #tpu.dot_dimension_numbers<[1], [0], [0], [1], [0, 0, 1, 1], [], []>} : vector<10x84xf32>, vector<84x160xf32>, vector<10x160xf32> -> vector<10x160xf32>
    %170 = arith.addf %165, %169 : vector<10x160xf32>
    %c1_190 = arith.constant 1 : index
    %c0_191 = arith.constant 0 : index
    %171 = vector.load %arg21[%c1_190, %c0_191] : memref<14x84xf32, #tpu.memory_space<vmem>>, vector<10x84xf32>
    %c1_192 = arith.constant 1 : index
    %c0_193 = arith.constant 0 : index
    %c0_194 = arith.constant 0 : index
    %172 = vector.load %arg8[%c1_192, %c0_193, %c0_194] : memref<5x84x160xf32, #tpu.memory_space<vmem>>, vector<1x84x160xf32>
    %173 = vector.shape_cast %172 : vector<1x84x160xf32> to vector<84x160xf32>
    %cst_195 = arith.constant dense<0.000000e+00> : vector<10x160xf32>
    %174 = tpu.matmul %171, %173, %cst_195 {dimension_numbers = #tpu.dot_dimension_numbers<[1], [0], [0], [1], [0, 0, 1, 1], [], []>} : vector<10x84xf32>, vector<84x160xf32>, vector<10x160xf32> -> vector<10x160xf32>
    %175 = arith.addf %170, %174 : vector<10x160xf32>
    %c2_196 = arith.constant 2 : index
    %c0_197 = arith.constant 0 : index
    %176 = vector.load %arg21[%c2_196, %c0_197] : memref<14x84xf32, #tpu.memory_space<vmem>>, vector<10x84xf32>
    %c2_198 = arith.constant 2 : index
    %c0_199 = arith.constant 0 : index
    %c0_200 = arith.constant 0 : index
    %177 = vector.load %arg8[%c2_198, %c0_199, %c0_200] : memref<5x84x160xf32, #tpu.memory_space<vmem>>, vector<1x84x160xf32>
    %178 = vector.shape_cast %177 : vector<1x84x160xf32> to vector<84x160xf32>
    %cst_201 = arith.constant dense<0.000000e+00> : vector<10x160xf32>
    %179 = tpu.matmul %176, %178, %cst_201 {dimension_numbers = #tpu.dot_dimension_numbers<[1], [0], [0], [1], [0, 0, 1, 1], [], []>} : vector<10x84xf32>, vector<84x160xf32>, vector<10x160xf32> -> vector<10x160xf32>
    %180 = arith.addf %175, %179 : vector<10x160xf32>
    %c3_202 = arith.constant 3 : index
    %c0_203 = arith.constant 0 : index
    %181 = vector.load %arg21[%c3_202, %c0_203] : memref<14x84xf32, #tpu.memory_space<vmem>>, vector<10x84xf32>
    %c3_204 = arith.constant 3 : index
    %c0_205 = arith.constant 0 : index
    %c0_206 = arith.constant 0 : index
    %182 = vector.load %arg8[%c3_204, %c0_205, %c0_206] : memref<5x84x160xf32, #tpu.memory_space<vmem>>, vector<1x84x160xf32>
    %183 = vector.shape_cast %182 : vector<1x84x160xf32> to vector<84x160xf32>
    %cst_207 = arith.constant dense<0.000000e+00> : vector<10x160xf32>
    %184 = tpu.matmul %181, %183, %cst_207 {dimension_numbers = #tpu.dot_dimension_numbers<[1], [0], [0], [1], [0, 0, 1, 1], [], []>} : vector<10x84xf32>, vector<84x160xf32>, vector<10x160xf32> -> vector<10x160xf32>
    %185 = arith.addf %180, %184 : vector<10x160xf32>
    %c4_208 = arith.constant 4 : index
    %c0_209 = arith.constant 0 : index
    %186 = vector.load %arg21[%c4_208, %c0_209] : memref<14x84xf32, #tpu.memory_space<vmem>>, vector<10x84xf32>
    %c4_210 = arith.constant 4 : index
    %c0_211 = arith.constant 0 : index
    %c0_212 = arith.constant 0 : index
    %187 = vector.load %arg8[%c4_210, %c0_211, %c0_212] : memref<5x84x160xf32, #tpu.memory_space<vmem>>, vector<1x84x160xf32>
    %188 = vector.shape_cast %187 : vector<1x84x160xf32> to vector<84x160xf32>
    %cst_213 = arith.constant dense<0.000000e+00> : vector<10x160xf32>
    %189 = tpu.matmul %186, %188, %cst_213 {dimension_numbers = #tpu.dot_dimension_numbers<[1], [0], [0], [1], [0, 0, 1, 1], [], []>} : vector<10x84xf32>, vector<84x160xf32>, vector<10x160xf32> -> vector<10x160xf32>
    %190 = arith.addf %185, %189 : vector<10x160xf32>
    %c0_214 = arith.constant 0 : index
    %c0_215 = arith.constant 0 : index
    %191 = vector.load %arg9[%c0_214, %c0_215] : memref<1x160xf32, #tpu.memory_space<vmem>>, vector<1x160xf32>
    %192 = vector.broadcast %191 : vector<1x160xf32> to vector<10x160xf32>
    %193 = arith.addf %190, %192 : vector<10x160xf32>
    %cst_216 = arith.constant 0.000000e+00 : f32
    %194 = vector.broadcast %cst_216 : f32 to vector<10x160xf32>
    %195 = arith.maximumf %193, %194 : vector<10x160xf32>
    %c0_217 = arith.constant 0 : index
    %c0_218 = arith.constant 0 : index
    %196 = vector.load %arg10[%c0_217, %c0_218] : memref<160x80xf32, #tpu.memory_space<vmem>>, vector<160x80xf32>
    %cst_219 = arith.constant dense<0.000000e+00> : vector<10x80xf32>
    %197 = tpu.matmul %195, %196, %cst_219 {dimension_numbers = #tpu.dot_dimension_numbers<[1], [0], [0], [1], [0, 0, 1, 1], [], []>} : vector<10x160xf32>, vector<160x80xf32>, vector<10x80xf32> -> vector<10x80xf32>
    %c0_220 = arith.constant 0 : index
    %c0_221 = arith.constant 0 : index
    %198 = vector.load %arg11[%c0_220, %c0_221] : memref<160x80xf32, #tpu.memory_space<vmem>>, vector<160x80xf32>
    %cst_222 = arith.constant dense<0.000000e+00> : vector<10x80xf32>
    %199 = tpu.matmul %195, %198, %cst_222 {dimension_numbers = #tpu.dot_dimension_numbers<[1], [0], [0], [1], [0, 0, 1, 1], [], []>} : vector<10x160xf32>, vector<160x80xf32>, vector<10x80xf32> -> vector<10x80xf32>
    %200 = arith.maximumf %197, %199 : vector<10x80xf32>
    %c0_223 = arith.constant 0 : index
    %c0_224 = arith.constant 0 : index
    %201 = vector.load %arg12[%c0_223, %c0_224] : memref<5x10xf32, #tpu.memory_space<vmem>>, vector<5x10xf32>
    %cst_225 = arith.constant dense<0.000000e+00> : vector<5x80xf32>
    %202 = tpu.matmul %201, %200, %cst_225 {dimension_numbers = #tpu.dot_dimension_numbers<[1], [0], [0], [1], [0, 0, 1, 1], [], []>} : vector<5x10xf32>, vector<10x80xf32>, vector<5x80xf32> -> vector<5x80xf32>
    %c0_226 = arith.constant 0 : index
    %c0_227 = arith.constant 0 : index
    %203 = vector.load %arg13[%c0_226, %c0_227] : memref<5x10xf32, #tpu.memory_space<vmem>>, vector<5x10xf32>
    %cst_228 = arith.constant dense<0.000000e+00> : vector<5x80xf32>
    %204 = tpu.matmul %203, %200, %cst_228 {dimension_numbers = #tpu.dot_dimension_numbers<[1], [0], [0], [1], [0, 0, 1, 1], [], []>} : vector<5x10xf32>, vector<10x80xf32>, vector<5x80xf32> -> vector<5x80xf32>
    %205 = arith.maximumf %202, %204 : vector<5x80xf32>
    %c0_229 = arith.constant 0 : index
    %c0_230 = arith.constant 0 : index
    %206 = vector.load %arg22[%c0_229, %c0_230] : memref<5x80xf32, #tpu.memory_space<vmem>>, vector<5x80xf32>
    tpu.vector_store %arg22[%c0_229, %c0_230], %205 {strides = array<i32>} : memref<5x80xf32, #tpu.memory_space<vmem>>, vector<5x80xf32>,
    %c0_231 = arith.constant 0 : index
    %c0_232 = arith.constant 0 : index
    %207 = vector.load %arg15[%c0_231, %c0_232] : memref<1x120xf32, #tpu.memory_space<vmem>>, vector<1x120xf32>
    %c0_233 = arith.constant 0 : index
    %c0_234 = arith.constant 0 : index
    %208 = vector.load %arg22[%c0_233, %c0_234] : memref<5x80xf32, #tpu.memory_space<vmem>>, vector<1x80xf32>
    %c0_235 = arith.constant 0 : index
    %c0_236 = arith.constant 0 : index
    %c0_237 = arith.constant 0 : index
    %209 = vector.load %arg14[%c0_235, %c0_236, %c0_237] : memref<5x80x120xf32, #tpu.memory_space<vmem>>, vector<1x80x120xf32>
    %210 = vector.shape_cast %209 : vector<1x80x120xf32> to vector<80x120xf32>
    %cst_238 = arith.constant dense<0.000000e+00> : vector<1x120xf32>
    %211 = tpu.matmul %208, %210, %cst_238 {dimension_numbers = #tpu.dot_dimension_numbers<[1], [0], [0], [1], [0, 0, 1, 1], [], []>} : vector<1x80xf32>, vector<80x120xf32>, vector<1x120xf32> -> vector<1x120xf32>
    %212 = arith.addf %207, %211 : vector<1x120xf32>
    %c1_239 = arith.constant 1 : index
    %c0_240 = arith.constant 0 : index
    %213 = vector.load %arg22[%c1_239, %c0_240] : memref<5x80xf32, #tpu.memory_space<vmem>>, vector<1x80xf32>
    %c1_241 = arith.constant 1 : index
    %c0_242 = arith.constant 0 : index
    %c0_243 = arith.constant 0 : index
    %214 = vector.load %arg14[%c1_241, %c0_242, %c0_243] : memref<5x80x120xf32, #tpu.memory_space<vmem>>, vector<1x80x120xf32>
    %215 = vector.shape_cast %214 : vector<1x80x120xf32> to vector<80x120xf32>
    %cst_244 = arith.constant dense<0.000000e+00> : vector<1x120xf32>
    %216 = tpu.matmul %213, %215, %cst_244 {dimension_numbers = #tpu.dot_dimension_numbers<[1], [0], [0], [1], [0, 0, 1, 1], [], []>} : vector<1x80xf32>, vector<80x120xf32>, vector<1x120xf32> -> vector<1x120xf32>
    %217 = arith.addf %212, %216 : vector<1x120xf32>
    %c2_245 = arith.constant 2 : index
    %c0_246 = arith.constant 0 : index
    %218 = vector.load %arg22[%c2_245, %c0_246] : memref<5x80xf32, #tpu.memory_space<vmem>>, vector<1x80xf32>
    %c2_247 = arith.constant 2 : index
    %c0_248 = arith.constant 0 : index
    %c0_249 = arith.constant 0 : index
    %219 = vector.load %arg14[%c2_247, %c0_248, %c0_249] : memref<5x80x120xf32, #tpu.memory_space<vmem>>, vector<1x80x120xf32>
    %220 = vector.shape_cast %219 : vector<1x80x120xf32> to vector<80x120xf32>
    %cst_250 = arith.constant dense<0.000000e+00> : vector<1x120xf32>
    %221 = tpu.matmul %218, %220, %cst_250 {dimension_numbers = #tpu.dot_dimension_numbers<[1], [0], [0], [1], [0, 0, 1, 1], [], []>} : vector<1x80xf32>, vector<80x120xf32>, vector<1x120xf32> -> vector<1x120xf32>
    %222 = arith.addf %217, %221 : vector<1x120xf32>
    %c3_251 = arith.constant 3 : index
    %c0_252 = arith.constant 0 : index
    %223 = vector.load %arg22[%c3_251, %c0_252] : memref<5x80xf32, #tpu.memory_space<vmem>>, vector<1x80xf32>
    %c3_253 = arith.constant 3 : index
    %c0_254 = arith.constant 0 : index
    %c0_255 = arith.constant 0 : index
    %224 = vector.load %arg14[%c3_253, %c0_254, %c0_255] : memref<5x80x120xf32, #tpu.memory_space<vmem>>, vector<1x80x120xf32>
    %225 = vector.shape_cast %224 : vector<1x80x120xf32> to vector<80x120xf32>
    %cst_256 = arith.constant dense<0.000000e+00> : vector<1x120xf32>
    %226 = tpu.matmul %223, %225, %cst_256 {dimension_numbers = #tpu.dot_dimension_numbers<[1], [0], [0], [1], [0, 0, 1, 1], [], []>} : vector<1x80xf32>, vector<80x120xf32>, vector<1x120xf32> -> vector<1x120xf32>
    %227 = arith.addf %222, %226 : vector<1x120xf32>
    %c4_257 = arith.constant 4 : index
    %c0_258 = arith.constant 0 : index
    %228 = vector.load %arg22[%c4_257, %c0_258] : memref<5x80xf32, #tpu.memory_space<vmem>>, vector<1x80xf32>
    %c4_259 = arith.constant 4 : index
    %c0_260 = arith.constant 0 : index
    %c0_261 = arith.constant 0 : index
    %229 = vector.load %arg14[%c4_259, %c0_260, %c0_261] : memref<5x80x120xf32, #tpu.memory_space<vmem>>, vector<1x80x120xf32>
    %230 = vector.shape_cast %229 : vector<1x80x120xf32> to vector<80x120xf32>
    %cst_262 = arith.constant dense<0.000000e+00> : vector<1x120xf32>
    %231 = tpu.matmul %228, %230, %cst_262 {dimension_numbers = #tpu.dot_dimension_numbers<[1], [0], [0], [1], [0, 0, 1, 1], [], []>} : vector<1x80xf32>, vector<80x120xf32>, vector<1x120xf32> -> vector<1x120xf32>
    %232 = arith.addf %227, %231 : vector<1x120xf32>
    %cst_263 = arith.constant 0.000000e+00 : f32
    %233 = vector.broadcast %cst_263 : f32 to vector<1x120xf32>
    %234 = arith.maximumf %232, %233 : vector<1x120xf32>
    %c1_264 = arith.constant 1 : index
    %c0_265 = arith.constant 0 : index
    %235 = vector.load %arg23[%c1_264, %c0_265] : memref<2x120xf32, #tpu.memory_space<vmem>>, vector<1x120xf32>
    tpu.vector_store %arg23[%c1_264, %c0_265], %234 {strides = array<i32>} : memref<2x120xf32, #tpu.memory_space<vmem>>, vector<1x120xf32>,
    %c0_266 = arith.constant 0 : index
    %c0_267 = arith.constant 0 : index
    %236 = vector.load %arg23[%c0_266, %c0_267] : memref<2x120xf32, #tpu.memory_space<vmem>>, vector<2x120xf32>
    %c0_268 = arith.constant 0 : index
    %c0_269 = arith.constant 0 : index
    %237 = vector.load %arg16[%c0_268, %c0_269] : memref<120x84xf32, #tpu.memory_space<vmem>>, vector<120x84xf32>
    %cst_270 = arith.constant dense<0.000000e+00> : vector<2x84xf32>
    %238 = tpu.matmul %236, %237, %cst_270 {dimension_numbers = #tpu.dot_dimension_numbers<[1], [0], [0], [1], [0, 0, 1, 1], [], []>} : vector<2x120xf32>, vector<120x84xf32>, vector<2x84xf32> -> vector<2x84xf32>
    %c0_271 = arith.constant 0 : index
    %c0_272 = arith.constant 0 : index
    %239 = vector.load %arg17[%c0_271, %c0_272] : memref<1x84xf32, #tpu.memory_space<vmem>>, vector<1x84xf32>
    %240 = vector.broadcast %239 : vector<1x84xf32> to vector<2x84xf32>
    %241 = arith.addf %238, %240 : vector<2x84xf32>
    %cst_273 = arith.constant 0.000000e+00 : f32
    %242 = vector.broadcast %cst_273 : f32 to vector<2x84xf32>
    %243 = arith.maximumf %241, %242 : vector<2x84xf32>
    %c0_274 = arith.constant 0 : index
    %c0_275 = arith.constant 0 : index
    %244 = vector.load %arg18[%c0_274, %c0_275] : memref<84x10xf32, #tpu.memory_space<vmem>>, vector<84x10xf32>
    %cst_276 = arith.constant dense<0.000000e+00> : vector<2x10xf32>
    %245 = tpu.matmul %243, %244, %cst_276 {dimension_numbers = #tpu.dot_dimension_numbers<[1], [0], [0], [1], [0, 0, 1, 1], [], []>} : vector<2x84xf32>, vector<84x10xf32>, vector<2x10xf32> -> vector<2x10xf32>
    %c0_277 = arith.constant 0 : index
    %c0_278 = arith.constant 0 : index
    %246 = vector.load %arg19[%c0_277, %c0_278] : memref<1x10xf32, #tpu.memory_space<vmem>>, vector<1x10xf32>
    %247 = vector.broadcast %246 : vector<1x10xf32> to vector<2x10xf32>
    %248 = arith.addf %245, %247 : vector<2x10xf32>
    %c0_279 = arith.constant 0 : index
    %c0_280 = arith.constant 0 : index
    %249 = vector.load %arg20[%c0_279, %c0_280] : memref<2x10xf32, #tpu.memory_space<vmem>>, vector<2x10xf32>
    tpu.vector_store %arg20[%c0_279, %c0_280], %248 {strides = array<i32>} : memref<2x10xf32, #tpu.memory_space<vmem>>, vector<2x10xf32>,
    return
  }
  func.func @transform_0(%arg0: i32) -> (i32, i32, i32) {
    %c0_i32 = arith.constant 0 : i32
    %c0_i32_0 = arith.constant 0 : i32
    %c0_i32_1 = arith.constant 0 : i32
    %c0_i32_2 = arith.constant 0 : i32
    return %c0_i32, %c0_i32_0, %c0_i32_1 : i32, i32, i32
  }
  func.func @transform_1(%arg0: i32) -> (i32, i32, i32) {
    %c0_i32 = arith.constant 0 : i32
    %c0_i32_0 = arith.constant 0 : i32
    %c0_i32_1 = arith.constant 0 : i32
    %c0_i32_2 = arith.constant 0 : i32
    return %c0_i32, %c0_i32_0, %c0_i32_1 : i32, i32, i32
  }
  func.func @transform_2(%arg0: i32) -> (i32, i32) {
    %c0_i32 = arith.constant 0 : i32
    %c0_i32_0 = arith.constant 0 : i32
    %c0_i32_1 = arith.constant 0 : i32
    return %c0_i32, %c0_i32_0 : i32, i32
  }
  func.func @transform_3(%arg0: i32) -> (i32, i32) {
    %c0_i32 = arith.constant 0 : i32
    %c0_i32_0 = arith.constant 0 : i32
    %c0_i32_1 = arith.constant 0 : i32
    return %c0_i32, %c0_i32_0 : i32, i32
  }
  func.func @transform_4(%arg0: i32) -> (i32, i32) {
    %c0_i32 = arith.constant 0 : i32
    %c0_i32_0 = arith.constant 0 : i32
    %c0_i32_1 = arith.constant 0 : i32
    return %c0_i32, %c0_i32_0 : i32, i32
  }
  func.func @transform_5(%arg0: i32) -> (i32, i32) {
    %c0_i32 = arith.constant 0 : i32
    %c0_i32_0 = arith.constant 0 : i32
    %c0_i32_1 = arith.constant 0 : i32
    return %c0_i32, %c0_i32_0 : i32, i32
  }
  func.func @transform_6(%arg0: i32) -> (i32, i32) {
    %c0_i32 = arith.constant 0 : i32
    %c0_i32_0 = arith.constant 0 : i32
    %c0_i32_1 = arith.constant 0 : i32
    return %c0_i32, %c0_i32_0 : i32, i32
  }
  func.func @transform_7(%arg0: i32) -> (i32, i32, i32) {
    %c0_i32 = arith.constant 0 : i32
    %c0_i32_0 = arith.constant 0 : i32
    %c0_i32_1 = arith.constant 0 : i32
    %c0_i32_2 = arith.constant 0 : i32
    return %c0_i32, %c0_i32_0, %c0_i32_1 : i32, i32, i32
  }
  func.func @transform_8(%arg0: i32) -> (i32, i32) {
    %c0_i32 = arith.constant 0 : i32
    %c0_i32_0 = arith.constant 0 : i32
    %c0_i32_1 = arith.constant 0 : i32
    return %c0_i32, %c0_i32_0 : i32, i32
  }
  func.func @transform_9(%arg0: i32) -> (i32, i32) {
    %c0_i32 = arith.constant 0 : i32
    %c0_i32_0 = arith.constant 0 : i32
    %c0_i32_1 = arith.constant 0 : i32
    return %c0_i32, %c0_i32_0 : i32, i32
  }
  func.func @transform_10(%arg0: i32) -> (i32, i32) {
    %c0_i32 = arith.constant 0 : i32
    %c0_i32_0 = arith.constant 0 : i32
    %c0_i32_1 = arith.constant 0 : i32
    return %c0_i32, %c0_i32_0 : i32, i32
  }
  func.func @transform_11(%arg0: i32) -> (i32, i32) {
    %c0_i32 = arith.constant 0 : i32
    %c0_i32_0 = arith.constant 0 : i32
    %c0_i32_1 = arith.constant 0 : i32
    return %c0_i32, %c0_i32_0 : i32, i32
  }
  func.func @transform_12(%arg0: i32) -> (i32, i32) {
    %c0_i32 = arith.constant 0 : i32
    %c0_i32_0 = arith.constant 0 : i32
    %c0_i32_1 = arith.constant 0 : i32
    return %c0_i32, %c0_i32_0 : i32, i32
  }
  func.func @transform_13(%arg0: i32) -> (i32, i32, i32) {
    %c0_i32 = arith.constant 0 : i32
    %c0_i32_0 = arith.constant 0 : i32
    %c0_i32_1 = arith.constant 0 : i32
    %c0_i32_2 = arith.constant 0 : i32
    return %c0_i32, %c0_i32_0, %c0_i32_1 : i32, i32, i32
  }
  func.func @transform_14(%arg0: i32) -> (i32, i32) {
    %c0_i32 = arith.constant 0 : i32
    %c0_i32_0 = arith.constant 0 : i32
    %c0_i32_1 = arith.constant 0 : i32
    return %c0_i32, %c0_i32_0 : i32, i32
  }
  func.func @transform_15(%arg0: i32) -> (i32, i32) {
    %c0_i32 = arith.constant 0 : i32
    %c0_i32_0 = arith.constant 0 : i32
    %c0_i32_1 = arith.constant 0 : i32
    return %c0_i32, %c0_i32_0 : i32, i32
  }
  func.func @transform_16(%arg0: i32) -> (i32, i32) {
    %c0_i32 = arith.constant 0 : i32
    %c0_i32_0 = arith.constant 0 : i32
    %c0_i32_1 = arith.constant 0 : i32
    return %c0_i32, %c0_i32_0 : i32, i32
  }
  func.func @transform_17(%arg0: i32) -> (i32, i32) {
    %c0_i32 = arith.constant 0 : i32
    %c0_i32_0 = arith.constant 0 : i32
    %c0_i32_1 = arith.constant 0 : i32
    return %c0_i32, %c0_i32_0 : i32, i32
  }
  func.func @transform_18(%arg0: i32) -> (i32, i32) {
    %c0_i32 = arith.constant 0 : i32
    %c0_i32_0 = arith.constant 0 : i32
    %c0_i32_1 = arith.constant 0 : i32
    return %c0_i32, %c0_i32_0 : i32, i32
  }
  func.func @transform_19(%arg0: i32) -> (i32, i32) {
    %c0_i32 = arith.constant 0 : i32
    %c0_i32_0 = arith.constant 0 : i32
    %c0_i32_1 = arith.constant 0 : i32
    return %c0_i32, %c0_i32_0 : i32, i32
  }
}

</mosaic_0001>

<bundles_post_ra>
// kernel: lenet_forward.1
= control target key start
LH: loop header
LB: loop body
LE: loop exit
PB: predicated region body
PF: predicated region fallthrough
CT: control target
= control target key end

     0   :  { %s9496_s0 = inlined_call_operand.vmem [shape: f32[2,32,96], index: 0, kind: input, shape index: {}]   ;;  %s9497_s1 = inlined_call_operand.vmem [shape: f32[5,96,168], index: 1, kind: input, shape index: {}]   ;;  %s9498_s2 = inlined_call_operand.vmem [shape: f32[1,168], index: 2, kind: input, shape index: {}]   ;;  %s9499_s3 = inlined_call_operand.vmem [shape: f32[168,84], index: 3, kind: input, shape index: {}]   ;;  %s9500_s4 = inlined_call_operand.vmem [shape: f32[168,84], index: 4, kind: input, shape index: {}]   ;;  %s9501_s5 = inlined_call_operand.vmem [shape: f32[14,28], index: 5, kind: input, shape index: {}]   ;;  %s9502_s6 = inlined_call_operand.vmem [shape: f32[14,28], index: 6, kind: input, shape index: {}]   ;;  %s9503_s7 = inlined_call_operand.vmem [shape: f32[5,84,160], index: 7, kind: input, shape index: {}]   ;;  %s9504_s8 = inlined_call_operand.vmem [shape: f32[1,160], index: 8, kind: input, shape index: {}]   ;;  %s9505_s9 = inlined_call_operand.vmem [shape: f32[160,80], index: 9, kind: input, shape index: {}]   ;;  %s9506_s10 = inlined_call_operand.vmem [shape: f32[160,80], index: 10, kind: input, shape index: {}]   ;;  %s9507_s11 = inlined_call_operand.vmem [shape: f32[5,10], index: 11, kind: input, shape index: {}]   ;;  %s9508_s12 = inlined_call_operand.vmem [shape: f32[5,10], index: 12, kind: input, shape index: {}]   ;;  %s9509_s13 = inlined_call_operand.vmem [shape: f32[5,80,120], index: 13, kind: input, shape index: {}]   ;;  %s9510_s14 = inlined_call_operand.vmem [shape: f32[1,120], index: 14, kind: input, shape index: {}]   ;;  %s9511_s15 = inlined_call_operand.vmem [shape: f32[120,84], index: 15, kind: input, shape index: {}]   ;;  %s9512_s16 = inlined_call_operand.vmem [shape: f32[1,84], index: 16, kind: input, shape index: {}]   ;;  %s9513_s17 = inlined_call_operand.vmem [shape: f32[84,10], index: 17, kind: input, shape index: {}]   ;;  %s9514_s18 = inlined_call_operand.vmem [shape: f32[1,10], index: 18, kind: input, shape index: {}]   ;;  %s9515_s19 = inlined_call_operand.hbm [shape: f32[2,10], index: 19, kind: output, shape index: {}]  }
   0x1   :  { %9520 = sst [smem:[#allocation8_spill]] %s9496_s0 }
   0x2   :  { %9521 = sst [smem:[#allocation9_spill]] %s9497_s1 }
   0x3   :  { %9522 = sst [smem:[#allocation10_spill]] %s9498_s2 }
   0x4   :  { %9523 = sst [smem:[#allocation11_spill]] %s9499_s3 }
   0x5   :  { %s9524_s20 = sld [smem:[#allocation9_spill]]  ;;  %vm120_vm0 = vcmask 785408   ;;  %v6410_v50 = vmov 0.0  }
   0x6   :  { %s9525_s0 = sld [smem:[#allocation8_spill]]  ;;  %197 = vmatprep.mubr.f32.mxu0 %v6410_v50  ;;  %298 = vmatprep.mubr.f32.mxu1 %v6410_v50 }
   0xb   :  { %v5267_v0 = vld [vmem:[%s9524_s20 + $0x178] sm:$0xff]  ;;  %v5266_v2 = vld [vmem:[%s9524_s20 + $0x170] sm:$0xff]  ;;  %v5265_v4 = vld [vmem:[%s9524_s20 + $0x168] sm:$0xff] }
   0xc   :  { %v90_v1 = vld [vmem:[%s9524_s20 + $0xb8] sm:$0xff]  ;;  %141 = vmatprep.subr.mxu0 %v5267_v0  ;;  %v89_v3 = vld [vmem:[%s9524_s20 + $0xb0] sm:$0xff]  ;;  %v88_v5 = vld [vmem:[%s9524_s20 + $0xa8] sm:$0xff] }
   0xd   :  { %242 = vmatprep.subr.mxu1 %v90_v1  ;;  %142 = vmatpush1.msra.mxu0 %v5266_v2  ;;  %v5264_v6 = vld [vmem:[%s9524_s20 + $0x160] sm:$0xff]  ;;  %v5263_v8 = vld [vmem:[%s9524_s20 + $0x158] sm:$0xff]  ;;  %v5262_v10 = vld [vmem:[%s9524_s20 + $0x150] sm:$0xff] }
   0xe   :  { %243 = vmatpush1.msra.mxu1 %v89_v3  ;;  %v87_v7 = vld [vmem:[%s9524_s20 + $0xa0] sm:$0xff]  ;;  %143 = vmatprep.subr.mxu0 %v5265_v4  ;;  %v86_v9 = vld [vmem:[%s9524_s20 + $0x98] sm:$0xff]  ;;  %v85_v11 = vld [vmem:[%s9524_s20 + $0x90] sm:$0xff] }
   0xf   :  { %244 = vmatprep.subr.mxu1 %v88_v5  ;;  %144 = vmatpush1.msra.mxu0 %v5264_v6  ;;  %v5261_v12 = vld [vmem:[%s9524_s20 + $0x148] sm:$0xff]  ;;  %v5260_v14 = vld [vmem:[%s9524_s20 + $0x140] sm:$0xff]  ;;  %v5259_v16 = vld [vmem:[%s9524_s20 + $0x138] sm:$0xff] }
  0x10   :  { %245 = vmatpush1.msra.mxu1 %v87_v7  ;;  %v84_v13 = vld [vmem:[%s9524_s20 + $0x88] sm:$0xff]  ;;  %145 = vmatprep.subr.mxu0 %v5263_v8  ;;  %v83_v15 = vld [vmem:[%s9524_s20 + $0x80] sm:$0xff]  ;;  %v82_v17 = vld [vmem:[%s9524_s20 + $0x78] sm:$0xff] }
  0x11   :  { %246 = vmatprep.subr.mxu1 %v86_v9  ;;  %146 = vmatpush1.msra.mxu0 %v5262_v10  ;;  %v5258_v18 = vld [vmem:[%s9524_s20 + $0x130] sm:$0xff]  ;;  %v5257_v20 = vld [vmem:[%s9524_s20 + $0x128] sm:$0xff]  ;;  %v5256_v22 = vld [vmem:[%s9524_s20 + $0x120] sm:$0xff] }
  0x12   :  { %247 = vmatpush1.msra.mxu1 %v85_v11  ;;  %147 = vmatprep.subr.mxu0 %v5261_v12  ;;  %v81_v19 = vld [vmem:[%s9524_s20 + $0x70] sm:$0xff]  ;;  %v80_v21 = vld [vmem:[%s9524_s20 + $0x68] sm:$0xff]  ;;  %v79_v23 = vld [vmem:[%s9524_s20 + $0x60] sm:$0xff] }
  0x13   :  { %248 = vmatprep.subr.mxu1 %v84_v13  ;;  %148 = vmatpush1.msra.mxu0 %v5260_v14  ;;  %v5255_v24 = vld [vmem:[%s9524_s20 + $0x118] sm:$0xff]  ;;  %v5254_v26 = vld [vmem:[%s9524_s20 + $0x110] sm:$0xff]  ;;  %v5253_v28 = vld [vmem:[%s9524_s20 + $0x108] sm:$0xff] }
  0x14   :  { %249 = vmatpush1.msra.mxu1 %v83_v15  ;;  %149 = vmatprep.subr.mxu0 %v5259_v16  ;;  %v78_v25 = vld [vmem:[%s9524_s20 + $0x58] sm:$0xff]  ;;  %v77_v27 = vld [vmem:[%s9524_s20 + $0x50] sm:$0xff]  ;;  %v76_v29 = vld [vmem:[%s9524_s20 + $0x48] sm:$0xff] }
  0x15   :  { %250 = vmatprep.subr.mxu1 %v82_v17  ;;  %150 = vmatpush1.msra.mxu0 %v5258_v18  ;;  %v5252_v30 = vld [vmem:[%s9524_s20 + $0x100] sm:$0xff]  ;;  %v5251_v32 = vld [vmem:[%s9524_s20 + $0xf8] sm:$0xff]  ;;  %v5250_v34 = vld [vmem:[%s9524_s20 + $0xf0] sm:$0xff] }
  0x16   :  { %251 = vmatpush1.msra.mxu1 %v81_v19  ;;  %151 = vmatprep.subr.mxu0 %v5257_v20  ;;  %v75_v31 = vld [vmem:[%s9524_s20 + $0x40] sm:$0xff]  ;;  %v74_v33 = vld [vmem:[%s9524_s20 + $0x38] sm:$0xff]  ;;  %v73_v35 = vld [vmem:[%s9524_s20 + $0x30] sm:$0xff] }
  0x17   :  { %252 = vmatprep.subr.mxu1 %v80_v21  ;;  %152 = vmatpush1.msra.mxu0 %v5256_v22  ;;  %v5249_v36 = vld [vmem:[%s9524_s20 + $0xe8] sm:$0xff]  ;;  %v5248_v38 = vld [vmem:[%s9524_s20 + $0xe0] sm:$0xff]  ;;  %v5247_v40 = vld [vmem:[%s9524_s20 + $0xd8] sm:$0xff] }
  0x18   :  { %253 = vmatpush1.msra.mxu1 %v79_v23  ;;  %153 = vmatprep.subr.mxu0 %v5255_v24  ;;  %v72_v37 = vld [vmem:[%s9524_s20 + $0x28] sm:$0xff]  ;;  %v71_v39 = vld [vmem:[%s9524_s20 + $0x20] sm:$0xff]  ;;  %v70_v41 = vld [vmem:[%s9524_s20 + $0x18] sm:$0xff] }
  0x19   :  { %254 = vmatprep.subr.mxu1 %v78_v25  ;;  %154 = vmatpush1.msra.mxu0 %v5254_v26  ;;  %v5246_v42 = vld [vmem:[%s9524_s20 + $0xd0] sm:$0xff]  ;;  %v5245_v44 = vld [vmem:[%s9524_s20 + $0xc8] sm:$0xff]  ;;  %v5244_v46 = vld [vmem:[%s9524_s20 + $0xc0] sm:$0xff] }
  0x1a   :  { %255 = vmatpush1.msra.mxu1 %v77_v27  ;;  %155 = vmatprep.subr.mxu0 %v5253_v28  ;;  %v69_v43 = vld [vmem:[%s9524_s20 + $0x10] sm:$0xff]  ;;  %v68_v45 = vld [vmem:[%s9524_s20 + $0x8] sm:$0xff]  ;;  %v67_v47 = vld [vmem:[%s9524_s20] sm:$0xff] }
  0x1b   :  { %256 = vmatprep.subr.mxu1 %v76_v29  ;;  %156 = vmatpush1.msra.mxu0 %v5252_v30  ;;  %v91_v48 = vld [vmem:[%s9525_s0 + $0x1] sm:$0xff]  ;;  %v5299_v51 = vld [vmem:[%s9524_s20 + $0x238] sm:$0xff]  ;;  %v5298_v53 = vld [vmem:[%s9524_s20 + $0x230] sm:$0xff] }
  0x1c   :  { %257 = vmatpush1.msra.mxu1 %v75_v31  ;;  %157 = vmatprep.subr.mxu0 %v5251_v32  ;;  %v63_v49 = vld [vmem:[%s9525_s0] sm:$0xff]  ;;  %v5327_v52 = vld [vmem:[%s9524_s20 + $0x2f8] sm:$0xff]  ;;  %v5326_v54 = vld [vmem:[%s9524_s20 + $0x2f0] sm:$0xff] }
  0x1d   :  { %258 = vmatprep.subr.mxu1 %v74_v33  ;;  %158 = vmatpush1.msra.mxu0 %v5250_v34  ;;  %v5297_v55 = vld [vmem:[%s9524_s20 + $0x228] sm:$0xff]  ;;  %v5296_v57 = vld [vmem:[%s9524_s20 + $0x220] sm:$0xff]  ;;  %v5295_v59 = vld [vmem:[%s9524_s20 + $0x218] sm:$0xff] }
  0x1e   :  { %259 = vmatpush1.msra.mxu1 %v73_v35  ;;  %159 = vmatprep.subr.mxu0 %v5249_v36  ;;  %v5325_v56 = vld [vmem:[%s9524_s20 + $0x2e8] sm:$0xff]  ;;  %v5324_v58 = vld [vmem:[%s9524_s20 + $0x2e0] sm:$0xff]  ;;  %v5323_v60 = vld [vmem:[%s9524_s20 + $0x2d8] sm:$0xff] }
  0x1f   :  { %260 = vmatprep.subr.mxu1 %v72_v37  ;;  %160 = vmatpush1.msra.mxu0 %v5248_v38  ;;  %v5294_v61 = vld [vmem:[%s9524_s20 + $0x210] sm:$0xff]  ;;  %v5293_v63 = vld [vmem:[%s9524_s20 + $0x208] sm:$0xff]  ;;  %v5292_v1 = vld [vmem:[%s9524_s20 + $0x200] sm:$0xff] }
  0x20   :  { %261 = vmatpush1.msra.mxu1 %v71_v39  ;;  %161 = vmatprep.subr.mxu0 %v5247_v40  ;;  %v5322_v62 = vld [vmem:[%s9524_s20 + $0x2d0] sm:$0xff]  ;;  %v5321_v0 = vld [vmem:[%s9524_s20 + $0x2c8] sm:$0xff]  ;;  %v5320_v2 = vld [vmem:[%s9524_s20 + $0x2c0] sm:$0xff] }
  0x21   :  { %262 = vmatprep.subr.mxu1 %v70_v41  ;;  %162 = vmatpush1.msra.mxu0 %v5246_v42  ;;  %v5291_v3 = vld [vmem:[%s9524_s20 + $0x1f8] sm:$0xff]  ;;  %v5290_v4 = vld [vmem:[%s9524_s20 + $0x1f0] sm:$0xff]  ;;  %v5289_v5 = vld [vmem:[%s9524_s20 + $0x1e8] sm:$0xff] }
  0x22   :  { %263 = vmatpush1.msra.mxu1 %v69_v43  ;;  %163 = vmatprep.subr.mxu0 %v5245_v44  ;;  %v5319_v6 = vld [vmem:[%s9524_s20 + $0x2b8] sm:$0xff]  ;;  %v92_v7 = vld [vmem:[%s9525_s0 + $0x9] sm:$0xff]  ;;  %v5288_v9 = vld [vmem:[%s9524_s20 + $0x1e0] sm:$0xff] }
  0x23   :  { %264 = vmatprep.subr.mxu1 %v68_v45  ;;  %164 = vmatpush1.msra.mxu0 %v5244_v46  ;;  %v64_v8 = vld [vmem:[%s9525_s0 + $0x8] sm:$0xff]  ;;  %v5318_v10 = vld [vmem:[%s9524_s20 + $0x2b0] sm:$0xff]  ;;  %v5287_v11 = vld [vmem:[%s9524_s20 + $0x1d8] sm:$0xff] }
  0x24   :  { %265 = vmatpush1.msra.mxu1 %v67_v47  ;;  %5268 = vmatmul.mubr.msk.f32.vlgmr.msra.gmra.mxu0 %vm120_vm0, %v91_v48  ;;  %v5317_v12 = vld [vmem:[%s9524_s20 + $0x2a8] sm:$0xff]  ;;  %v5286_v13 = vld [vmem:[%s9524_s20 + $0x1d0] sm:$0xff]  ;;  %v5316_v14 = vld [vmem:[%s9524_s20 + $0x2a0] sm:$0xff] }
  0x25   :  { %5272 = vmatmul.mubr.msk.f32.vlgmr.msra.gmra.mxu1 %vm120_vm0, %v63_v49  ;;  %372 = vmatprep.subr.mxu0 %v5299_v51  ;;  %v5285_v15 = vld [vmem:[%s9524_s20 + $0x1c8] sm:$0xff]  ;;  %v5315_v16 = vld [vmem:[%s9524_s20 + $0x298] sm:$0xff]  ;;  %v65_v18 = vld [vmem:[%s9525_s0 + $0x10] sm:$0xff] }
  0x26   :  { %510 = vmatprep.subr.mxu1 %v5327_v52  ;;  %373 = vmatpush1.msra.mxu0 %v5298_v53  ;;  %v93_v17 = vld [vmem:[%s9525_s0 + $0x11] sm:$0xff]  ;;  %v5284_v19 = vld [vmem:[%s9524_s20 + $0x1c0] sm:$0xff]  ;;  %v5313_v22 = vld [vmem:[%s9524_s20 + $0x288] sm:$0xff] }
  0x27   :  { %511 = vmatpush1.msra.mxu1 %v5326_v54  ;;  %374 = vmatprep.subr.mxu0 %v5297_v55  ;;  %v5314_v20 = vld [vmem:[%s9524_s20 + $0x290] sm:$0xff]  ;;  %v5283_v21 = vld [vmem:[%s9524_s20 + $0x1b8] sm:$0xff]  ;;  %v5312_v24 = vld [vmem:[%s9524_s20 + $0x280] sm:$0xff] }
  0x28   :  { %512 = vmatprep.subr.mxu1 %v5325_v56  ;;  %375 = vmatpush1.msra.mxu0 %v5296_v57  ;;  %v5282_v23 = vld [vmem:[%s9524_s20 + $0x1b0] sm:$0xff]  ;;  %v5281_v25 = vld [vmem:[%s9524_s20 + $0x1a8] sm:$0xff]  ;;  %v5311_v26 = vld [vmem:[%s9524_s20 + $0x278] sm:$0xff] }
  0x29   :  { %513 = vmatpush1.msra.mxu1 %v5324_v58  ;;  %376 = vmatprep.subr.mxu0 %v5295_v59 }
  0x2a   :  { %514 = vmatprep.subr.mxu1 %v5323_v60  ;;  %377 = vmatpush1.msra.mxu0 %v5294_v61 }
  0x2b   :  { %515 = vmatpush1.msra.mxu1 %v5322_v62  ;;  %378 = vmatprep.subr.mxu0 %v5293_v63 }
  0x2c   :  { %516 = vmatprep.subr.mxu1 %v5321_v0  ;;  %379 = vmatpush1.msra.mxu0 %v5292_v1 }
  0x2d   :  { %517 = vmatpush1.msra.mxu1 %v5320_v2  ;;  %380 = vmatprep.subr.mxu0 %v5291_v3 }
  0x2e   :  { %203 = vmatprep.mubr.f32.mxu0 %v6410_v50  ;;  %381 = vmatpush1.msra.mxu0 %v5290_v4 }
  0x2f   :  { %304 = vmatprep.mubr.f32.mxu1 %v6410_v50  ;;  %382 = vmatprep.subr.mxu0 %v5289_v5 }
  0x30   :  { %518 = vmatprep.subr.mxu1 %v5319_v6  ;;  %5269 = vmatmul.mubr.msk.f32.gmra.mxu0 %vm120_vm0, %v92_v7 }
  0x31   :  { %5273 = vmatmul.mubr.msk.f32.gmra.mxu1 %vm120_vm0, %v64_v8  ;;  %383 = vmatpush1.msra.mxu0 %v5288_v9 }
  0x32   :  { %519 = vmatpush1.msra.mxu1 %v5318_v10  ;;  %384 = vmatprep.subr.mxu0 %v5287_v11 }
  0x33   :  { %520 = vmatprep.subr.mxu1 %v5317_v12  ;;  %385 = vmatpush1.msra.mxu0 %v5286_v13 }
  0x34   :  { %521 = vmatpush1.msra.mxu1 %v5316_v14  ;;  %209 = vmatprep.mubr.f32.mxu0 %v6410_v50 }
  0x35   :  { %310 = vmatprep.mubr.f32.mxu1 %v6410_v50  ;;  %386 = vmatprep.subr.mxu0 %v5285_v15 }
  0x36   :  { %522 = vmatprep.subr.mxu1 %v5315_v16  ;;  %5270 = vmatmul.mubr.msk.f32.gmra.mxu0 %vm120_vm0, %v93_v17 }
  0x37   :  { %5274 = vmatmul.mubr.msk.f32.gmra.mxu1 %vm120_vm0, %v65_v18  ;;  %387 = vmatpush1.msra.mxu0 %v5284_v19 }
  0x38   :  { %523 = vmatpush1.msra.mxu1 %v5314_v20  ;;  %388 = vmatprep.subr.mxu0 %v5283_v21 }
  0x39   :  { %524 = vmatprep.subr.mxu1 %v5313_v22 }
  0x3a   :  { %24 = vsyncpa [#allocation6], 0  ;;  %389 = vmatpush1.msra.mxu0 %v5282_v23  ;;  %525 = vmatpush1.msra.mxu1 %v5312_v24  ;;  %v94_v27 = vld [vmem:[%s9525_s0 + $0x19] sm:$0xf]  ;;  %v5280_v29 = vld [vmem:[%s9524_s20 + $0x1a0] sm:$0xff]  ;;  %s9526_s1 = sld [smem:[#allocation11_spill]] }
  0x3b   :  { %v66_v28 = vld [vmem:[%s9525_s0 + $0x18] sm:$0xf]  ;;  %215 = vmatprep.mubr.f32.mxu0 %v6410_v50  ;;  %316 = vmatprep.mubr.f32.mxu1 %v6410_v50  ;;  %v5310_v30 = vld [vmem:[%s9524_s20 + $0x270] sm:$0xff]  ;;  %v5309_v32 = vld [vmem:[%s9524_s20 + $0x268] sm:$0xff]  ;;  %s9527_s22 = sld [smem:[#allocation10_spill]]  ;;  %vm786_vm1 = vcmask 326656  }
  0x3c   :  { %390 = vmatprep.subr.mxu0 %v5281_v25  ;;  %526 = vmatprep.subr.mxu1 %v5311_v26  ;;  %v5279_v31 = vld [vmem:[%s9524_s20 + $0x198] sm:$0xff]  ;;  %v5278_v33 = vld [vmem:[%s9524_s20 + $0x190] sm:$0xff]  ;;  %v5308_v34 = vld [vmem:[%s9524_s20 + $0x260] sm:$0xff]  ;;  %vm996_vm2 = vcmask 228352   ;;  %vm1003_vm3 = vcmask 1043456   ;;  %vm1169_vm4 = vcmask 685056  }
  0x3d   :  { %5271 = vmatmul.mubr.msk.f32.gmra.mxu0 %vm120_vm0, %v94_v27  ;;  %5275 = vmatmul.mubr.msk.f32.gmra.mxu1 %vm120_vm0, %v66_v28  ;;  %v5277_v35 = vld [vmem:[%s9524_s20 + $0x188] sm:$0xff]  ;;  %v5307_v36 = vld [vmem:[%s9524_s20 + $0x258] sm:$0xff]  ;;  %v5276_v37 = vld [vmem:[%s9524_s20 + $0x180] sm:$0xff]  ;;  %vm1167_vm5 = vcmask 687104   ;;  %vm1792_vm6 = vcmask 261120   ;;  %vm6411_vm7 = vmmov 0  }
  0x3e   :  { %391 = vmatpush1.msra.mxu0 %v5280_v29  ;;  %527 = vmatpush1.msra.mxu1 %v5310_v30  ;;  %v5306_v38 = vld [vmem:[%s9524_s20 + $0x250] sm:$0xff]  ;;  %v323_v39 = vld [vmem:[%s9525_s0 + $0x2] sm:$0xff]  ;;  %v5355_v41 = vld [vmem:[%s9524_s20 + $0x3b8] sm:$0xff]  ;;  %vm1976_vm8 = vcmask 1041408   ;;  %vm1972_vm9 = vcmask 80896   ;;  %vm2125_vm10 = vcmask 651264  }
  0x3f   :  { %392 = vmatprep.subr.mxu0 %v5279_v31  ;;  %528 = vmatprep.subr.mxu1 %v5309_v32  ;;  %v5305_v40 = vld [vmem:[%s9524_s20 + $0x248] sm:$0xff]  ;;  %v5304_v42 = vld [vmem:[%s9524_s20 + $0x240] sm:$0xff]  ;;  %v5354_v43 = vld [vmem:[%s9524_s20 + $0x3b0] sm:$0xff]  ;;  %vm2139_vm11 = vcmask 654336   ;;  %vm2559_vm12 = vcmask 974848   ;;  %vm5059_vm13 = vcmask 982016  }
  0x40   :  { %393 = vmatpush1.msra.mxu0 %v5278_v33  ;;  %529 = vmatpush1.msra.mxu1 %v5308_v34  ;;  %v461_v44 = vld [vmem:[%s9525_s0 + $0x3] sm:$0xff]  ;;  %v5351_v48 = vld [vmem:[%s9524_s20 + $0x398] sm:$0xff]  ;;  %v5350_v49 = vld [vmem:[%s9524_s20 + $0x390] sm:$0xff]  ;;  %vm5228_vm14 = vcmask 74752  }
  0x41   :  { %394 = vmatprep.subr.mxu0 %v5277_v35  ;;  %530 = vmatprep.subr.mxu1 %v5307_v36  ;;  %v5353_v45 = vld [vmem:[%s9524_s20 + $0x3a8] sm:$0xff]  ;;  %v5352_v46 = vld [vmem:[%s9524_s20 + $0x3a0] sm:$0xff]  ;;  %v325_v54 = vld [vmem:[%s9525_s0 + $0x12] sm:$0xff] }
  0x42   :  { %395 = vmatpush1.msra.mxu0 %v5276_v37  ;;  %428 = vmatprep.mubr.f32.mxu0 %v6410_v50  ;;  %v324_v47 = vld [vmem:[%s9525_s0 + $0xa] sm:$0xff]  ;;  %v5348_v53 = vld [vmem:[%s9524_s20 + $0x380] sm:$0xff]  ;;  %v5347_v55 = vld [vmem:[%s9524_s20 + $0x378] sm:$0xff] }
  0x43   :  { %531 = vmatpush1.msra.mxu1 %v5306_v38  ;;  %5300 = vmatmul.mubr.msk.f32.vlgmr.msra.gmra.mxu0 %vm120_vm0, %v323_v39  ;;  %v462_v51 = vld [vmem:[%s9525_s0 + $0xb] sm:$0xff]  ;;  %v463_v57 = vld [vmem:[%s9525_s0 + $0x13] sm:$0xff]  ;;  %v5344_v59 = vld [vmem:[%s9524_s20 + $0x360] sm:$0xff] }
  0x44   :  { %532 = vmatprep.subr.mxu1 %v5305_v40  ;;  %648 = vmatprep.subr.mxu0 %v5355_v41  ;;  %v5349_v52 = vld [vmem:[%s9524_s20 + $0x388] sm:$0xff]  ;;  %v5346_v56 = vld [vmem:[%s9524_s20 + $0x370] sm:$0xff]  ;;  %v326_v60 = vld [vmem:[%s9525_s0 + $0x1a] sm:$0xf] }
  0x45   :  { %533 = vmatpush1.msra.mxu1 %v5304_v42  ;;  %566 = vmatprep.mubr.f32.mxu1 %v6410_v50  ;;  %v5345_v58 = vld [vmem:[%s9524_s20 + $0x368] sm:$0xff]  ;;  %v5343_v61 = vld [vmem:[%s9524_s20 + $0x358] sm:$0xff]  ;;  %v5342_v62 = vld [vmem:[%s9524_s20 + $0x350] sm:$0xff] }
  0x46   :  { %649 = vmatpush1.msra.mxu0 %v5354_v43  ;;  %5328 = vmatmul.mubr.msk.f32.vlgmr.msra.gmra.mxu1 %vm120_vm0, %v461_v44  ;;  %v464_v63 = vld [vmem:[%s9525_s0 + $0x1b] sm:$0xf]  ;;  %v5341_v0 = vld [vmem:[%s9524_s20 + $0x348] sm:$0xff]  ;;  %v5340_v1 = vld [vmem:[%s9524_s20 + $0x340] sm:$0xff] }
  0x47   :  { %650 = vmatprep.subr.mxu0 %v5353_v45  ;;  %434 = vmatprep.mubr.f32.mxu0 %v6410_v50  ;;  %v5339_v2 = vld [vmem:[%s9524_s20 + $0x338] sm:$0xff]  ;;  %v5338_v3 = vld [vmem:[%s9524_s20 + $0x330] sm:$0xff]  ;;  %v5337_v4 = vld [vmem:[%s9524_s20 + $0x328] sm:$0xff] }
  0x48   :  { %651 = vmatpush1.msra.mxu0 %v5352_v46  ;;  %572 = vmatprep.mubr.f32.mxu1 %v6410_v50  ;;  %v5336_v5 = vld [vmem:[%s9524_s20 + $0x320] sm:$0xff]  ;;  %v5335_v6 = vld [vmem:[%s9524_s20 + $0x318] sm:$0xff]  ;;  %v5334_v7 = vld [vmem:[%s9524_s20 + $0x310] sm:$0xff] }
  0x49   :  { %5301 = vmatmul.mubr.msk.f32.gmra.mxu0 %vm120_vm0, %v324_v47  ;;  %652 = vmatprep.subr.mxu0 %v5351_v48  ;;  %v5333_v8 = vld [vmem:[%s9524_s20 + $0x308] sm:$0xff]  ;;  %v5332_v9 = vld [vmem:[%s9524_s20 + $0x300] sm:$0xff]  ;;  %v601_v12 = vld [vmem:[%s9525_s0 + $0x14] sm:$0xff] }
  0x4a   :  { %653 = vmatpush1.msra.mxu0 %v5350_v49  ;;  %5329 = vmatmul.mubr.msk.f32.gmra.mxu1 %vm120_vm0, %v462_v51  ;;  %v599_v10 = vld [vmem:[%s9525_s0 + $0x4] sm:$0xff]  ;;  %v600_v11 = vld [vmem:[%s9525_s0 + $0xc] sm:$0xff]  ;;  %v602_v13 = vld [vmem:[%s9525_s0 + $0x1c] sm:$0xf] }
  0x4b   :  { %654 = vmatprep.subr.mxu0 %v5349_v52  ;;  %440 = vmatprep.mubr.f32.mxu0 %v6410_v50  ;;  %v780_v14 = vld [vmem:[%s9526_s1 + $0x78] sm:$0xff]  ;;  %v779_v16 = vld [vmem:[%s9526_s1 + $0x70] sm:$0xff]  ;;  %v778_v18 = vld [vmem:[%s9526_s1 + $0x68] sm:$0xff] }
  0x4c   :  { %655 = vmatpush1.msra.mxu0 %v5348_v53  ;;  %578 = vmatprep.mubr.f32.mxu1 %v6410_v50  ;;  %v899_v15 = vld [vmem:[%s9500_s4 + $0x78] sm:$0xff]  ;;  %v898_v17 = vld [vmem:[%s9500_s4 + $0x70] sm:$0xff]  ;;  %v897_v19 = vld [vmem:[%s9500_s4 + $0x68] sm:$0xff] }
  0x4d   :  { %5302 = vmatmul.mubr.msk.f32.gmra.mxu0 %vm120_vm0, %v325_v54  ;;  %656 = vmatprep.subr.mxu0 %v5347_v55  ;;  %v777_v20 = vld [vmem:[%s9526_s1 + $0x60] sm:$0xff]  ;;  %v776_v22 = vld [vmem:[%s9526_s1 + $0x58] sm:$0xff]  ;;  %v775_v24 = vld [vmem:[%s9526_s1 + $0x50] sm:$0xff] }
  0x4e   :  { %657 = vmatpush1.msra.mxu0 %v5346_v56  ;;  %5330 = vmatmul.mubr.msk.f32.gmra.mxu1 %vm120_vm0, %v463_v57  ;;  %v896_v21 = vld [vmem:[%s9500_s4 + $0x60] sm:$0xff]  ;;  %v895_v23 = vld [vmem:[%s9500_s4 + $0x58] sm:$0xff]  ;;  %v894_v25 = vld [vmem:[%s9500_s4 + $0x50] sm:$0xff] }
  0x4f   :  { %658 = vmatprep.subr.mxu0 %v5345_v58  ;;  %446 = vmatprep.mubr.f32.mxu0 %v6410_v50  ;;  %v774_v26 = vld [vmem:[%s9526_s1 + $0x48] sm:$0xff]  ;;  %v773_v28 = vld [vmem:[%s9526_s1 + $0x40] sm:$0xff]  ;;  %v772_v30 = vld [vmem:[%s9526_s1 + $0x38] sm:$0xff] }
  0x50   :  { %659 = vmatpush1.msra.mxu0 %v5344_v59  ;;  %584 = vmatprep.mubr.f32.mxu1 %v6410_v50  ;;  %v893_v27 = vld [vmem:[%s9500_s4 + $0x48] sm:$0xff]  ;;  %v892_v29 = vld [vmem:[%s9500_s4 + $0x40] sm:$0xff]  ;;  %v891_v31 = vld [vmem:[%s9500_s4 + $0x38] sm:$0xff] }
  0x51   :  { %5303 = vmatmul.mubr.msk.f32.gmra.mxu0 %vm120_vm0, %v326_v60  ;;  %660 = vmatprep.subr.mxu0 %v5343_v61  ;;  %v771_v32 = vld [vmem:[%s9526_s1 + $0x30] sm:$0xff]  ;;  %v770_v34 = vld [vmem:[%s9526_s1 + $0x28] sm:$0xff]  ;;  %v769_v36 = vld [vmem:[%s9526_s1 + $0x20] sm:$0xff] }
  0x52   :  { %661 = vmatpush1.msra.mxu0 %v5342_v62  ;;  %5331 = vmatmul.mubr.msk.f32.gmra.mxu1 %vm120_vm0, %v464_v63  ;;  %v890_v33 = vld [vmem:[%s9500_s4 + $0x30] sm:$0xff]  ;;  %v889_v35 = vld [vmem:[%s9500_s4 + $0x28] sm:$0xff]  ;;  %v888_v37 = vld [vmem:[%s9500_s4 + $0x20] sm:$0xff] }
  0x53   :  { %662 = vmatprep.subr.mxu0 %v5341_v0  ;;  %704 = vmatprep.mubr.f32.mxu0 %v6410_v50  ;;  %v768_v38 = vld [vmem:[%s9526_s1 + $0x18] sm:$0xff]  ;;  %v767_v40 = vld [vmem:[%s9526_s1 + $0x10] sm:$0xff]  ;;  %v766_v42 = vld [vmem:[%s9526_s1 + $0x8] sm:$0xff] }
  0x54   :  { %663 = vmatpush1.msra.mxu0 %v5340_v1  ;;  %799 = vmatprep.subr.mxu1 %v6410_v50  ;;  %v887_v39 = vld [vmem:[%s9500_s4 + $0x18] sm:$0xff]  ;;  %v886_v41 = vld [vmem:[%s9500_s4 + $0x10] sm:$0xff]  ;;  %v885_v43 = vld [vmem:[%s9500_s4 + $0x8] sm:$0xff] }
  0x55   :  { %664 = vmatprep.subr.mxu0 %v5339_v2  ;;  %800 = vmatpush1.msra.mxu1 %v780_v14  ;;  %v765_v44 = vld [vmem:[%s9526_s1] sm:$0xff]  ;;  %v784_v48 = vld [vmem:[%s9526_s1 + $0x98] sm:$0xff]  ;;  %v783_v51 = vld [vmem:[%s9526_s1 + $0x90] sm:$0xff] }
  0x56   :  { %665 = vmatpush1.msra.mxu0 %v5338_v3  ;;  %801 = vmatprep.subr.mxu1 %v6410_v50  ;;  %v884_v45 = vld [vmem:[%s9500_s4] sm:$0xff]  ;;  %v903_v49 = vld [vmem:[%s9500_s4 + $0x98] sm:$0xff]  ;;  %v902_v52 = vld [vmem:[%s9500_s4 + $0x90] sm:$0xff] }
  0x57   :  { %666 = vmatprep.subr.mxu0 %v5337_v4  ;;  %802 = vmatpush1.msra.mxu1 %v779_v16  ;;  %v785_v46 = vld [vmem:[%s9526_s1 + $0xa0] sm:$0xff]  ;;  %v782_v53 = vld [vmem:[%s9526_s1 + $0x88] sm:$0xff]  ;;  %v739_v16 = vlaneseq }
  0x58   :  { %667 = vmatpush1.msra.mxu0 %v5336_v5  ;;  %803 = vmatprep.subr.mxu1 %v6410_v50  ;;  %v904_v47 = vld [vmem:[%s9500_s4 + $0xa0] sm:$0xff]  ;;  %v901_v54 = vld [vmem:[%s9500_s4 + $0x88] sm:$0xff] }
  0x59   :  { %668 = vmatprep.subr.mxu0 %v5335_v6  ;;  %804 = vmatpush1.msra.mxu1 %v778_v18  ;;  %v781_v55 = vld [vmem:[%s9526_s1 + $0x80] sm:$0xff] }
  0x5a   :  { %669 = vmatpush1.msra.mxu0 %v5334_v7  ;;  %805 = vmatprep.subr.mxu1 %v6410_v50  ;;  %v900_v56 = vld [vmem:[%s9500_s4 + $0x80] sm:$0xff] }
  0x5b   :  { %670 = vmatprep.subr.mxu0 %v5333_v8  ;;  %806 = vmatpush1.msra.mxu1 %v777_v20 }
  0x5c   :  { %671 = vmatpush1.msra.mxu0 %v5332_v9  ;;  %807 = vmatprep.subr.mxu1 %v6410_v50 }
  0x5d   :  { %5356 = vmatmul.mubr.msk.f32.vlgmr.msra.gmra.mxu0 %vm120_vm0, %v599_v10  ;;  %905 = vmatprep.subr.mxu0 %v6410_v50 }
  0x5e   :  { %710 = vmatprep.mubr.f32.mxu0 %v6410_v50  ;;  %906 = vmatpush1.msra.mxu0 %v899_v15 }
  0x5f   :  { %907 = vmatprep.subr.mxu0 %v6410_v50  ;;  %808 = vmatpush1.msra.mxu1 %v776_v22 }
  0x60   :  { %908 = vmatpush1.msra.mxu0 %v898_v17  ;;  %809 = vmatprep.subr.mxu1 %v6410_v50 }
  0x61   :  { %5357 = vmatmul.mubr.msk.f32.gmra.mxu0 %vm120_vm0, %v600_v11  ;;  %909 = vmatprep.subr.mxu0 %v6410_v50 }
  0x62   :  { %716 = vmatprep.mubr.f32.mxu0 %v6410_v50  ;;  %910 = vmatpush1.msra.mxu0 %v897_v19  ;;  %v740_v19 = vshrl.u32 %v739_v16, 7 }
  0x63   :  { %911 = vmatprep.subr.mxu0 %v6410_v50  ;;  %810 = vmatpush1.msra.mxu1 %v775_v24 }
  0x64   :  { %912 = vmatpush1.msra.mxu0 %v896_v21  ;;  %811 = vmatprep.subr.mxu1 %v6410_v50 }
  0x65   :  { %5358 = vmatmul.mubr.msk.f32.gmra.mxu0 %vm120_vm0, %v601_v12  ;;  %913 = vmatprep.subr.mxu0 %v6410_v50 }
  0x66   :  { %722 = vmatprep.mubr.f32.mxu0 %v6410_v50  ;;  %914 = vmatpush1.msra.mxu0 %v895_v23 }
  0x67   :  { %915 = vmatprep.subr.mxu0 %v6410_v50  ;;  %812 = vmatpush1.msra.mxu1 %v774_v26  ;;  %v7143_v26 = vsub.s32 1, %v740_v19 }
  0x68   :  { %916 = vmatpush1.msra.mxu0 %v894_v25  ;;  %813 = vmatprep.subr.mxu1 %v6410_v50  ;;  %v7141_v25 = vsub.s32 0, %v740_v19 }
  0x69   :  { %5359 = vmatmul.mubr.msk.f32.gmra.mxu0 %vm120_vm0, %v602_v13  ;;  %917 = vmatprep.subr.mxu0 %v6410_v50 }
  0x6a   :  { %918 = vmatpush1.msra.mxu0 %v893_v27  ;;  %814 = vmatpush1.msra.mxu1 %v773_v28 }
  0x6b   :  { %919 = vmatprep.subr.mxu0 %v6410_v50  ;;  %815 = vmatprep.subr.mxu1 %v6410_v50 }
  0x6c   :  { %920 = vmatpush1.msra.mxu0 %v892_v29  ;;  %816 = vmatpush1.msra.mxu1 %v772_v30  ;;  %v737_v29 = vld [vmem:[%s9527_s22] sm:$0x3] }
  0x6d   :  { %921 = vmatprep.subr.mxu0 %v6410_v50  ;;  %817 = vmatprep.subr.mxu1 %v6410_v50 }
  0x6e   :  { %922 = vmatpush1.msra.mxu0 %v891_v31  ;;  %818 = vmatpush1.msra.mxu1 %v771_v32 }
  0x6f   :  { %923 = vmatprep.subr.mxu0 %v6410_v50  ;;  %819 = vmatprep.subr.mxu1 %v6410_v50 }
  0x70   :  { %924 = vmatpush1.msra.mxu0 %v890_v33  ;;  %820 = vmatpush1.msra.mxu1 %v770_v34 }
  0x71   :  { %925 = vmatprep.subr.mxu0 %v6410_v50  ;;  %821 = vmatprep.subr.mxu1 %v6410_v50 }
  0x72   :  { %926 = vmatpush1.msra.mxu0 %v889_v35  ;;  %822 = vmatpush1.msra.mxu1 %v769_v36  ;;  %v742_v36 = vrot.slane %v737_v29, %v7141_v25 }
  0x73   :  { %927 = vmatprep.subr.mxu0 %v6410_v50  ;;  %823 = vmatprep.subr.mxu1 %v6410_v50 }
  0x74   :  { %928 = vmatpush1.msra.mxu0 %v888_v37  ;;  %824 = vmatpush1.msra.mxu1 %v768_v38  ;;  %v746_v37 = vrot.slane %v737_v29, %v7143_v26  ;;  %v5394_v29 = vld [vmem:[%s9503_s7 + $0x150] sm:$0xf] }
  0x75   :  { %929 = vmatprep.subr.mxu0 %v6410_v50  ;;  %825 = vmatprep.subr.mxu1 %v6410_v50 }
  0x76   :  { %930 = vmatpush1.msra.mxu0 %v887_v39  ;;  %826 = vmatpush1.msra.mxu1 %v767_v40 }
  0x77   :  { %931 = vmatprep.subr.mxu0 %v6410_v50  ;;  %827 = vmatprep.subr.mxu1 %v6410_v50 }
  0x78   :  { %932 = vmatpush1.msra.mxu0 %v886_v41  ;;  %828 = vmatpush1.msra.mxu1 %v766_v42 }
  0x79   :  { %933 = vmatprep.subr.mxu0 %v6410_v50  ;;  %829 = vmatprep.subr.mxu1 %v6410_v50 }
  0x7a   :  { %934 = vmatpush1.msra.mxu0 %v885_v43  ;;  %830 = vmatpush1.msra.mxu1 %v765_v44 }
  0x7b   :  { %935 = vmatprep.subr.mxu0 %v6410_v50  ;;  %853 = vmatprep.subr.mxu1 %v6410_v50 }
  0x7c   :  { %936 = vmatpush1.msra.mxu0 %v884_v45  ;;  %854 = vmatpush2.msra.mxu1 %v785_v46 }
  0x7d   :  { %959 = vmatprep.subr.mxu0 %v6410_v50  ;;  %855 = vmatprep.subr.mxu1 %v6410_v50 }
  0x7e   :  { %960 = vmatpush2.msra.mxu0 %v904_v47  ;;  %856 = vmatpush2.msra.mxu1 %v784_v48 }
  0x7f   :  { %961 = vmatprep.subr.mxu0 %v6410_v50  ;;  %857 = vmatprep.subr.mxu1 %v6410_v50 }
  0x80   :  { %962 = vmatpush2.msra.mxu0 %v903_v49  ;;  %858 = vmatpush2.msra.mxu1 %v783_v51 }
  0x81   :  { %963 = vmatprep.subr.mxu0 %v6410_v50  ;;  %859 = vmatprep.subr.mxu1 %v6410_v50 }
  0x82   :  { %964 = vmatpush2.msra.mxu0 %v902_v52  ;;  %860 = vmatpush2.msra.mxu1 %v782_v53 }
  0x83   :  { %965 = vmatprep.subr.mxu0 %v6410_v50  ;;  %861 = vmatprep.subr.mxu1 %v6410_v50 }
  0x84   :  { %966 = vmatpush2.msra.mxu0 %v901_v54  ;;  %862 = vmatpush2.msra.mxu1 %v781_v55 }
  0x85   :  { %967 = vmatprep.subr.mxu0 %v6410_v50 }
  0x86   :  { %968 = vmatpush2.msra.mxu0 %v900_v56 }
  0xe4   :  { %v199_v57 = vpop.f32.mrf.mxu0 }
  0xe5   :  { %v300_v58 = vpop.f32.mrf.mxu1 }
  0xe6   :  { %v201_v59 = vpop.f32.mrf.mxu0  ;;  %v301_v20 = vadd.f32 %v300_v58, %v199_v57 }
  0xe7   :  { %v302_v61 = vpop.f32.mrf.mxu1 }
  0xe8   :  { %v303_v23 = vadd.f32 %v302_v61, %v201_v59 }
  0xf0   :  { %v205_v60 = vpop.f32.mrf.mxu0 }
  0xf1   :  { %v306_v63 = vpop.f32.mrf.mxu1 }
  0xf2   :  { %v207_v62 = vpop.f32.mrf.mxu0  ;;  %v307_v27 = vadd.f32 %v306_v63, %v205_v60 }
  0xf3   :  { %v308_v1 = vpop.f32.mrf.mxu1 }
  0xf4   :  { %v309_v32 = vadd.f32 %v308_v1, %v207_v62 }
  0xf6   :  { %v211_v0 = vpop.f32.mrf.mxu0 }
  0xf7   :  { %v312_v3 = vpop.f32.mrf.mxu1 }
  0xf8   :  { %v213_v2 = vpop.f32.mrf.mxu0  ;;  %v313_v38 = vadd.f32 %v312_v3, %v211_v0 }
  0xf9   :  { %v314_v6 = vpop.f32.mrf.mxu1 }
  0xfa   :  { %v315_v42 = vadd.f32 %v314_v6, %v213_v2 }
  0xfd   :  { %v217_v4 = vpop.f32.mrf.mxu0  ;;  %v318_v8 = vpop.f32.mrf.mxu1 }
  0xfe   :  { %v319_v52 = vadd.f32 %v318_v8, %v217_v4 }
  0xff   :  { %v219_v5 = vpop.f32.mrf.mxu0  ;;  %v320_v10 = vpop.f32.mrf.mxu1 }
 0x100   :  { %v321_v56 = vadd.f32 %v320_v10, %v219_v5 }
 0x103   :  { %v430_v7 = vpop.f32.mrf.mxu0 }
 0x104   :  { %v453_v24 = vadd.f32 %v430_v7, %v301_v20 }
 0x105   :  { %v432_v9 = vpop.f32.mrf.mxu0 }
 0x106   :  { %v568_v12 = vpop.f32.mrf.mxu1  ;;  %v454_v28 = vadd.f32 %v432_v9, %v303_v23 }
 0x107   :  { %v591_v33 = vadd.f32 %v568_v12, %v453_v24 }
 0x108   :  { %v570_v14 = vpop.f32.mrf.mxu1 }
 0x109   :  { %v436_v11 = vpop.f32.mrf.mxu0  ;;  %v592_v39 = vadd.f32 %v570_v14, %v454_v28  ;;  %v5395_v28 = vld [vmem:[%s9503_s7 + $0x158] sm:$0xf] }
 0x10a   :  { %v574_v17 = vpop.f32.mrf.mxu1  ;;  %v455_v34 = vadd.f32 %v436_v11, %v307_v27  ;;  %v994_v27 = vld [vmem:[%s9501_s5] sm:$0xff]  ;;  %5396 = vmatprep.subr.msk.mxu0 %vm1003_vm3, %v5395_v28 }
 0x10b   :  { %v438_v13 = vpop.f32.mrf.mxu0  ;;  %v5376_v28 = vld [vmem:[%s9503_s7 + $0xc0] sm:$0xff] }
 0x10c   :  { %v576_v21 = vpop.f32.mrf.mxu1  ;;  %v456_v40 = vadd.f32 %v438_v13, %v309_v32  ;;  %v593_v45 = vadd.f32 %v574_v17, %v455_v34 }
 0x10d   :  { %v442_v15 = vpop.f32.mrf.mxu0 }
 0x10e   :  { %v580_v30 = vpop.f32.mrf.mxu1  ;;  %v457_v46 = vadd.f32 %v442_v15, %v313_v38  ;;  %v594_v53 = vadd.f32 %v576_v21, %v456_v40 }
 0x10f   :  { %v444_v18 = vpop.f32.mrf.mxu0 }
 0x110   :  { %v582_v43 = vpop.f32.mrf.mxu1  ;;  %v458_v48 = vadd.f32 %v444_v18, %v315_v42  ;;  %v595_v59 = vadd.f32 %v580_v30, %v457_v46 }
 0x111   :  { %v448_v22 = vpop.f32.mrf.mxu0 }
 0x112   :  { %v586_v57 = vpop.f32.mrf.mxu1  ;;  %v459_v60 = vadd.f32 %v448_v22, %v319_v52  ;;  %v596_v63 = vadd.f32 %v582_v43, %v458_v48  ;;  %v1082_v52 = vld [vmem:[%s9502_s6] sm:$0xff] }
 0x113   :  { %v450_v31 = vpop.f32.mrf.mxu0 }
 0x114   :  { %v460_v3 = vadd.f32 %v450_v31, %v321_v56  ;;  %v588_v4 = vpop.f32.mrf.mxu1  ;;  %v597_v8 = vadd.f32 %v586_v57, %v459_v60  ;;  %v5393_v56 = vld [vmem:[%s9503_s7 + $0x148] sm:$0xff]  ;;  %v1192_v57 = vld [vmem:[%s9503_s7 + $0x98] sm:$0xff] }
 0x115   :  { %v5391_v60 = vld [vmem:[%s9503_s7 + $0x138] sm:$0xff] }
 0x116   :  { %v598_v14 = vadd.f32 %v588_v4, %v460_v3  ;;  %v1187_v3 = vld [vmem:[%s9503_s7 + $0x70] sm:$0xff] }
 0x117   :  { %v5386_v4 = vld [vmem:[%s9503_s7 + $0x110] sm:$0xff] }
 0x11d   :  { %v706_v35 = vpop.f32.mrf.mxu0 }
 0x11e   :  { %v729_v41 = vadd.f32 %v706_v35, %v591_v33 }
 0x11f   :  { %v708_v44 = vpop.f32.mrf.mxu0 }
 0x120   :  { %v730_v47 = vadd.f32 %v708_v44, %v592_v39  ;;  %v749_v49 = vadd.f32 %v742_v36, %v729_v41 }
 0x121   :  { %v712_v51 = vpop.f32.mrf.mxu0 }
 0x122   :  { %v750_v54 = vadd.f32 %v746_v37, %v730_v47  ;;  %v731_v55 = vadd.f32 %v712_v51, %v593_v45  ;;  %v757_v0 = vmax.f32 %v749_v49, 0.0  ;;  %v995_v51 = vld [vmem:[%s9501_s5 + $0x8] sm:$0x3f] }
 0x123   :  { %v714_v58 = vpop.f32.mrf.mxu0 }
 0x124   :  { %v758_v61 = vmax.f32 %v750_v54, 0.0  ;;  %v732_v62 = vadd.f32 %v714_v58, %v594_v53  ;;  %v751_v1 = vadd.f32 %v742_v36, %v731_v55  ;;  %v1083_v53 = vld [vmem:[%s9502_s6 + $0x8] sm:$0x3f]  ;;  %v1193_v55 = vld [vmem:[%s9503_s7 + $0xa0] sm:$0xf] }
 0x125   :  { %v718_v2 = vpop.f32.mrf.mxu0  ;;  %v1194_v54 = vld [vmem:[%s9503_s7 + $0xa8] sm:$0xf]  ;;  %v5392_v58 = vld [vmem:[%s9503_s7 + $0x140] sm:$0xff] }
 0x126   :  { %v752_v6 = vadd.f32 %v746_v37, %v732_v62  ;;  %v733_v7 = vadd.f32 %v718_v2, %v595_v59  ;;  %5360 = vmatprep.mubr.msk.f32.mxu1 %vm786_vm1, %v758_v61  ;;  %5364 = vmatprep.mubr.msk.f32.mxu0 %vm786_vm1, %v758_v61  ;;  %v759_v11 = vmax.f32 %v751_v1, 0.0  ;;  %v1191_v59 = vld [vmem:[%s9503_s7 + $0x90] sm:$0xff]  ;;  %v1190_v61 = vld [vmem:[%s9503_s7 + $0x88] sm:$0xff]  ;;  %v1188_v1 = vld [vmem:[%s9503_s7 + $0x78] sm:$0xff] }
 0x127   :  { %v720_v5 = vpop.f32.mrf.mxu0  ;;  %864 = vmatmul.mubr.f32.vlgmr.msra.gmra.mxu1 %v757_v0  ;;  %970 = vmatmul.mubr.f32.vlgmr.msra.gmra.mxu0 %v757_v0  ;;  %v5390_v62 = vld [vmem:[%s9503_s7 + $0x130] sm:$0xff]  ;;  %v5389_v0 = vld [vmem:[%s9503_s7 + $0x128] sm:$0xff]  ;;  %v5388_v2 = vld [vmem:[%s9503_s7 + $0x120] sm:$0xff] }
 0x128   :  { %v760_v9 = vmax.f32 %v752_v6, 0.0  ;;  %v734_v10 = vadd.f32 %v720_v5, %v596_v63  ;;  %v753_v12 = vadd.f32 %v742_v36, %v733_v7  ;;  %5397 = vmatpush1.msk.msra.mxu0 %vm1003_vm3, %v5394_v29  ;;  %v1189_v63 = vld [vmem:[%s9503_s7 + $0x80] sm:$0xff]  ;;  %v5387_v6 = vld [vmem:[%s9503_s7 + $0x118] sm:$0xff]  ;;  %v1186_v7 = vld [vmem:[%s9503_s7 + $0x68] sm:$0xff] }
 0x129   :  { %v724_v13 = vpop.f32.mrf.mxu0  ;;  %1244 = vmatprep.subr.mxu0 %v5393_v56  ;;  %v1185_v5 = vld [vmem:[%s9503_s7 + $0x60] sm:$0xff]  ;;  %v1175_v29 = vld [vmem:[%s9503_s7 + $0x10] sm:$0xff] }
 0x12a   :  { %v754_v15 = vadd.f32 %v746_v37, %v734_v10  ;;  %v735_v16 = vadd.f32 %v724_v13, %v597_v8  ;;  %5361 = vmatprep.mubr.msk.f32.mxu1 %vm786_vm1, %v760_v9  ;;  %5365 = vmatprep.mubr.msk.f32.mxu0 %vm786_vm1, %v760_v9  ;;  %v761_v20 = vmax.f32 %v753_v12, 0.0  ;;  %v5385_v8 = vld [vmem:[%s9503_s7 + $0x108] sm:$0xff]  ;;  %v1184_v9 = vld [vmem:[%s9503_s7 + $0x58] sm:$0xff]  ;;  %v5384_v10 = vld [vmem:[%s9503_s7 + $0x100] sm:$0xff] }
 0x12b   :  { %v726_v17 = vpop.f32.mrf.mxu0  ;;  %869 = vmatmul.mubr.f32.gmra.mxu1 %v759_v11  ;;  %975 = vmatmul.mubr.f32.gmra.mxu0 %v759_v11  ;;  %v1183_v11 = vld [vmem:[%s9503_s7 + $0x50] sm:$0xff]  ;;  %v5383_v12 = vld [vmem:[%s9503_s7 + $0xf8] sm:$0xff]  ;;  %v1182_v13 = vld [vmem:[%s9503_s7 + $0x48] sm:$0xff] }
 0x12c   :  { %v762_v18 = vmax.f32 %v754_v15, 0.0  ;;  %v736_v19 = vadd.f32 %v726_v17, %v598_v14  ;;  %v755_v21 = vadd.f32 %v742_v36, %v735_v16  ;;  %1245 = vmatpush1.msra.mxu0 %v5392_v58  ;;  %v5382_v14 = vld [vmem:[%s9503_s7 + $0xf0] sm:$0xff]  ;;  %v1181_v15 = vld [vmem:[%s9503_s7 + $0x40] sm:$0xff]  ;;  %v5381_v16 = vld [vmem:[%s9503_s7 + $0xe8] sm:$0xff] }
 0x12d   :  { %1246 = vmatprep.subr.mxu0 %v5391_v60  ;;  %v1180_v17 = vld [vmem:[%s9503_s7 + $0x38] sm:$0xff]  ;;  %v5445_v58 = vld [vmem:[%s9503_s7 + $0x288] sm:$0xff]  ;;  %v5444_v60 = vld [vmem:[%s9503_s7 + $0x280] sm:$0xff] }
 0x12e   :  { %v756_v22 = vadd.f32 %v746_v37, %v736_v19  ;;  %5362 = vmatprep.mubr.msk.f32.mxu1 %vm786_vm1, %v762_v18  ;;  %5366 = vmatprep.mubr.msk.f32.mxu0 %vm786_vm1, %v762_v18  ;;  %v763_v24 = vmax.f32 %v755_v21, 0.0  ;;  %v5380_v18 = vld [vmem:[%s9503_s7 + $0xe0] sm:$0xff]  ;;  %v1179_v19 = vld [vmem:[%s9503_s7 + $0x30] sm:$0xff]  ;;  %v1178_v21 = vld [vmem:[%s9503_s7 + $0x28] sm:$0xff] }
 0x12f   :  { %874 = vmatmul.mubr.f32.gmra.mxu1 %v761_v20  ;;  %980 = vmatmul.mubr.f32.gmra.mxu0 %v761_v20  ;;  %v5379_v20 = vld [vmem:[%s9503_s7 + $0xd8] sm:$0xff] }
 0x130   :  { %v764_v23 = vmax.f32 %v756_v22, 0.0  ;;  %1247 = vmatpush1.msra.mxu0 %v5390_v62  ;;  %v5378_v22 = vld [vmem:[%s9503_s7 + $0xd0] sm:$0xff]  ;;  %v5443_v62 = vld [vmem:[%s9503_s7 + $0x278] sm:$0xff] }
 0x131   :  { %1248 = vmatprep.subr.mxu0 %v5389_v0  ;;  %v5442_v0 = vld [vmem:[%s9503_s7 + $0x270] sm:$0xff] }
 0x132   :  { %5363 = vmatprep.mubr.msk.f32.mxu1 %vm786_vm1, %v764_v23  ;;  %5367 = vmatprep.mubr.msk.f32.mxu0 %vm786_vm1, %v764_v23  ;;  %v1177_v23 = vld [vmem:[%s9503_s7 + $0x20] sm:$0xff] }
 0x133   :  { %879 = vmatmul.mubr.f32.gmra.mxu1 %v763_v24  ;;  %985 = vmatmul.mubr.f32.gmra.mxu0 %v763_v24  ;;  %v5377_v24 = vld [vmem:[%s9503_s7 + $0xc8] sm:$0xff] }
 0x134   :  { %1296 = vmatprep.mubr.f32.mxu0 %v6410_v50  ;;  %6033 = vmatprep.mubr.msk.f32.mxu1 %vm996_vm2, %v994_v27  ;;  %v1176_v27 = vld [vmem:[%s9503_s7 + $0x18] sm:$0xff] }
 0x135   :  { %1249 = vmatpush1.msra.mxu0 %v5388_v2  ;;  %v5441_v2 = vld [vmem:[%s9503_s7 + $0x268] sm:$0xff] }
 0x136   :  { %1250 = vmatprep.subr.mxu0 %v5387_v6  ;;  %v5440_v6 = vld [vmem:[%s9503_s7 + $0x260] sm:$0xff] }
 0x137   :  { %1251 = vmatpush1.msra.mxu0 %v5386_v4  ;;  %v5439_v4 = vld [vmem:[%s9503_s7 + $0x258] sm:$0xff] }
 0x138   :  { %1252 = vmatprep.subr.mxu0 %v5385_v8  ;;  %v5438_v8 = vld [vmem:[%s9503_s7 + $0x250] sm:$0xff] }
 0x139   :  { %1253 = vmatpush1.msra.mxu0 %v5384_v10  ;;  %v5437_v10 = vld [vmem:[%s9503_s7 + $0x248] sm:$0xff] }
 0x13a   :  { %1254 = vmatprep.subr.mxu0 %v5383_v12  ;;  %v5436_v12 = vld [vmem:[%s9503_s7 + $0x240] sm:$0xff] }
 0x13b   :  { %1255 = vmatpush1.msra.mxu0 %v5382_v14  ;;  %v5435_v14 = vld [vmem:[%s9503_s7 + $0x238] sm:$0xff] }
 0x13c   :  { %1256 = vmatprep.subr.mxu0 %v5381_v16  ;;  %v5434_v16 = vld [vmem:[%s9503_s7 + $0x230] sm:$0xff] }
 0x13d   :  { %1257 = vmatpush1.msra.mxu0 %v5380_v18  ;;  %v5433_v18 = vld [vmem:[%s9503_s7 + $0x228] sm:$0xff] }
 0x13e   :  { %1258 = vmatprep.subr.mxu0 %v5379_v20  ;;  %v5432_v20 = vld [vmem:[%s9503_s7 + $0x220] sm:$0xff] }
 0x13f   :  { %1259 = vmatpush1.msra.mxu0 %v5378_v22  ;;  %v5431_v22 = vld [vmem:[%s9503_s7 + $0x218] sm:$0xff] }
 0x140   :  { %1260 = vmatprep.subr.mxu0 %v5377_v24  ;;  %v5430_v24 = vld [vmem:[%s9503_s7 + $0x210] sm:$0xff] }
 0x141   :  { %1261 = vmatpush1.msra.mxu0 %v5376_v28 }
 0x1e7   :  { %v865_v30 = vpop.f32.mrf.mxu1  ;;  %v971_v31 = vpop.f32.mrf.mxu0 }
 0x1e8   :  { %v990_v49 = vmax.f32 %v865_v30, %v971_v31  ;;  %v5375_v30 = vld [vmem:[%s9503_s7 + $0xb8] sm:$0xff]  ;;  %v1174_v31 = vld [vmem:[%s9503_s7 + $0x8] sm:$0xff] }
 0x1e9   :  { %v867_v32 = vpop.f32.mrf.mxu1  ;;  %v973_v33 = vpop.f32.mrf.mxu0  ;;  %1262 = vmatprep.subr.mxu0 %v5375_v30  ;;  %v5476_v30 = vld [vmem:[%s9503_s7 + $0x360] sm:$0xf] }
 0x1ea   :  { %v5374_v32 = vld [vmem:[%s9503_s7 + $0xb0] sm:$0xff]  ;;  %v1173_v33 = vld [vmem:[%s9503_s7] sm:$0xff] }
 0x1eb   :  { %v870_v34 = vpop.f32.mrf.mxu1  ;;  %v976_v35 = vpop.f32.mrf.mxu0  ;;  %1263 = vmatpush1.msra.mxu0 %v5374_v32  ;;  %v5474_v32 = vld [vmem:[%s9503_s7 + $0x350] sm:$0xff] }
 0x1ec   :  { %v991_v48 = vmax.f32 %v870_v34, %v976_v35  ;;  %v5425_v34 = vld [vmem:[%s9503_s7 + $0x208] sm:$0xf]  ;;  %v5451_v35 = vld [vmem:[%s9503_s7 + $0x2b8] sm:$0xf] }
 0x1ed   :  { %v872_v36 = vpop.f32.mrf.mxu1  ;;  %v978_v37 = vpop.f32.mrf.mxu0  ;;  %5426 = vmatprep.subr.msk.mxu0 %vm1003_vm3, %v5425_v34 }
 0x1ef   :  { %v875_v38 = vpop.f32.mrf.mxu1  ;;  %v981_v39 = vpop.f32.mrf.mxu0 }
 0x1f0   :  { %v992_v47 = vmax.f32 %v875_v38, %v981_v39 }
 0x1f1   :  { %v877_v40 = vpop.f32.mrf.mxu1  ;;  %v983_v41 = vpop.f32.mrf.mxu0 }
 0x1f3   :  { %v880_v42 = vpop.f32.mrf.mxu1  ;;  %v986_v43 = vpop.f32.mrf.mxu0 }
 0x1f4   :  { %v993_v44 = vmax.f32 %v880_v42, %v986_v43  ;;  %v5424_v42 = vld [vmem:[%s9503_s7 + $0x200] sm:$0xf]  ;;  %v5450_v43 = vld [vmem:[%s9503_s7 + $0x2b0] sm:$0xf] }
 0x1f5   :  { %v882_v45 = vpop.f32.mrf.mxu1  ;;  %v988_v46 = vpop.f32.mrf.mxu0 }
 0x1f6   :  { %6025 = vmatprep.subr.msk.mxu1 %vm1003_vm3, %v993_v44 }
 0x1f7   :  { %6026 = vmatpush3.msk.msra.mxu1 %vm1003_vm3, %v993_v44 }
 0x1f8   :  { %6027 = vmatprep.subr.mxu1 %v992_v47 }
 0x1f9   :  { %6028 = vmatpush3.msra.mxu1 %v992_v47 }
 0x1fa   :  { %6029 = vmatprep.subr.mxu1 %v991_v48 }
 0x1fb   :  { %6030 = vmatpush3.msra.mxu1 %v991_v48 }
 0x1fc   :  { %6031 = vmatprep.subr.mxu1 %v990_v49 }
 0x1fd   :  { %6032 = vmatpush3.msra.mxu1 %v990_v49 }
 0x1fe   :  { %6034 = vmatmul.mubr.msk.f32.vlgmr.msra.gmra.mxu1 %vm996_vm2, %v995_v51  ;;  %6036 = vmatprep.subr.msk.mxu1 %vm1003_vm3, %v993_v44  ;;  %v5421_v51 = vld [vmem:[%s9503_s7 + $0x1e8] sm:$0xff] }
 0x1ff   :  { %6037 = vmatpush3.msk.msra.mxu1 %vm1003_vm3, %v993_v44  ;;  %6044 = vmatprep.mubr.msk.f32.mxu1 %vm996_vm2, %v1082_v52  ;;  %v5423_v44 = vld [vmem:[%s9503_s7 + $0x1f8] sm:$0xff] }
 0x200   :  { %6038 = vmatprep.subr.mxu1 %v992_v47  ;;  %v5447_v52 = vld [vmem:[%s9503_s7 + $0x298] sm:$0xff] }
 0x201   :  { %6039 = vmatpush3.msra.mxu1 %v992_v47  ;;  %v5449_v47 = vld [vmem:[%s9503_s7 + $0x2a8] sm:$0xff] }
 0x202   :  { %6040 = vmatprep.subr.mxu1 %v991_v48 }
 0x203   :  { %6041 = vmatpush3.msra.mxu1 %v991_v48  ;;  %v5422_v48 = vld [vmem:[%s9503_s7 + $0x1f0] sm:$0xff] }
 0x204   :  { %6042 = vmatprep.subr.mxu1 %v990_v49 }
 0x205   :  { %6043 = vmatpush3.msra.mxu1 %v990_v49  ;;  %v5448_v49 = vld [vmem:[%s9503_s7 + $0x2a0] sm:$0xff] }
 0x206   :  { %6045 = vmatmul.mubr.msk.f32.vlgmr.msra.gmra.mxu1 %vm996_vm2, %v1083_v53  ;;  %5400 = vmatprep.subr.msk.mxu1 %vm1003_vm3, %v1194_v54  ;;  %v5420_v53 = vld [vmem:[%s9503_s7 + $0x1e0] sm:$0xff]  ;;  %v5446_v54 = vld [vmem:[%s9503_s7 + $0x290] sm:$0xff] }
 0x207   :  { %5401 = vmatpush1.msk.msra.mxu1 %vm1003_vm3, %v1193_v55  ;;  %1385 = vmatprep.mubr.f32.mxu1 %v6410_v50  ;;  %v5419_v55 = vld [vmem:[%s9503_s7 + $0x1d8] sm:$0xff] }
 0x208   :  { %1333 = vmatprep.subr.mxu1 %v1192_v57 }
 0x209   :  { %1334 = vmatpush1.msra.mxu1 %v1191_v59  ;;  %v5418_v59 = vld [vmem:[%s9503_s7 + $0x1d0] sm:$0xff] }
 0x20a   :  { %1335 = vmatprep.subr.mxu1 %v1190_v61  ;;  %v5417_v61 = vld [vmem:[%s9503_s7 + $0x1c8] sm:$0xff] }
 0x20b   :  { %1336 = vmatpush1.msra.mxu1 %v1189_v63  ;;  %v5416_v63 = vld [vmem:[%s9503_s7 + $0x1c0] sm:$0xff] }
 0x20c   :  { %1337 = vmatprep.subr.mxu1 %v1188_v1  ;;  %v5415_v1 = vld [vmem:[%s9503_s7 + $0x1b8] sm:$0xff] }
 0x20d   :  { %1338 = vmatpush1.msra.mxu1 %v1187_v3  ;;  %v5414_v3 = vld [vmem:[%s9503_s7 + $0x1b0] sm:$0xff] }
 0x20e   :  { %1339 = vmatprep.subr.mxu1 %v1186_v7  ;;  %v5413_v7 = vld [vmem:[%s9503_s7 + $0x1a8] sm:$0xff] }
 0x20f   :  { %1340 = vmatpush1.msra.mxu1 %v1185_v5  ;;  %v5412_v5 = vld [vmem:[%s9503_s7 + $0x1a0] sm:$0xff] }
 0x210   :  { %1341 = vmatprep.subr.mxu1 %v1184_v9  ;;  %v5411_v9 = vld [vmem:[%s9503_s7 + $0x198] sm:$0xff] }
 0x211   :  { %1342 = vmatpush1.msra.mxu1 %v1183_v11  ;;  %v5410_v11 = vld [vmem:[%s9503_s7 + $0x190] sm:$0xff] }
 0x212   :  { %1343 = vmatprep.subr.mxu1 %v1182_v13  ;;  %v5409_v13 = vld [vmem:[%s9503_s7 + $0x188] sm:$0xff] }
 0x213   :  { %1344 = vmatpush1.msra.mxu1 %v1181_v15  ;;  %v5408_v15 = vld [vmem:[%s9503_s7 + $0x180] sm:$0xff] }
 0x214   :  { %1345 = vmatprep.subr.mxu1 %v1180_v17  ;;  %v5407_v17 = vld [vmem:[%s9503_s7 + $0x178] sm:$0xff] }
 0x215   :  { %1346 = vmatpush1.msra.mxu1 %v1179_v19  ;;  %v5406_v19 = vld [vmem:[%s9503_s7 + $0x170] sm:$0xff] }
 0x216   :  { %1347 = vmatprep.subr.mxu1 %v1178_v21  ;;  %v5405_v21 = vld [vmem:[%s9503_s7 + $0x168] sm:$0xff] }
 0x217   :  { %1348 = vmatpush1.msra.mxu1 %v1177_v23  ;;  %v5404_v23 = vld [vmem:[%s9503_s7 + $0x160] sm:$0xff] }
 0x218   :  { %1349 = vmatprep.subr.mxu1 %v1176_v27  ;;  %v5477_v27 = vld [vmem:[%s9503_s7 + $0x368] sm:$0xf] }
 0x219   :  { %1350 = vmatpush1.msra.mxu1 %v1175_v29 }
 0x21a   :  { %1351 = vmatprep.subr.mxu1 %v1174_v31  ;;  %v5475_v31 = vld [vmem:[%s9503_s7 + $0x358] sm:$0xff] }
 0x21b   :  { %1352 = vmatpush1.msra.mxu1 %v1173_v33  ;;  %v5473_v33 = vld [vmem:[%s9503_s7 + $0x348] sm:$0xff] }
 0x21c   :  { %5452 = vmatprep.subr.msk.mxu1 %vm1003_vm3, %v5451_v35  ;;  %v5472_v35 = vld [vmem:[%s9503_s7 + $0x340] sm:$0xff] }
 0x2be   :  { %v6035_v36 = vpop.f32.mrf.mxu1 }
 0x2c0   :  { %v1073_v37 = vpop.f32.mrf.mxu1 }
 0x2c6   :  { %v6046_v38 = vpop.f32.mrf.mxu1 }
 0x2c7   :  { %v1166_v39 = vmax.f32 %v6035_v36, %v6046_v38  ;;  %v5470_v38 = vld [vmem:[%s9503_s7 + $0x330] sm:$0xff] }
 0x2c8   :  { %v1156_v40 = vpop.f32.mrf.mxu1 }
 0x2c9   :  { %1170 = vst.msk [vmem:[#allocation2 + $0x8] sm:$0x3f] %vm1169_vm4, %v1166_v39  ;;  %v1165_v41 = vmax.f32 %v1073_v37, %v1156_v40  ;;  %v5471_v37 = vld [vmem:[%s9503_s7 + $0x338] sm:$0xff]  ;;  %v5469_v39 = vld [vmem:[%s9503_s7 + $0x328] sm:$0xff]  ;;  %v5468_v40 = vld [vmem:[%s9503_s7 + $0x320] sm:$0xff] }
 0x2cb   :  { %1168 = vst.msk [vmem:[#allocation2] sm:$0xff] %vm1167_vm5, %v1165_v41  ;;  %v5467_v41 = vld [vmem:[%s9503_s7 + $0x318] sm:$0xff] }
 0x2d0   :  { %v1196_v56 = vld [vmem:[#allocation2 + $0x9] sm:$0x3]  ;;  %v1517_v34 = vld [vmem:[#allocation2 + $0xb] sm:$0x3] }
 0x2d1   :  { %v1172_v57 = vld [vmem:[#allocation2 + $0x8] sm:$0x3]  ;;  %v1399_v36 = vld [vmem:[#allocation2 + $0xa] sm:$0x3] }
 0x2d2   :  { %v1195_v45 = vld [vmem:[#allocation2 + $0x1] sm:$0xff] }
 0x2d3   :  { %v1171_v46 = vld [vmem:[#allocation2] sm:$0xff]  ;;  %5398 = vmatmul.mubr.msk.f32.vlgmr.msra.gmra.mxu0 %vm1167_vm5, %v1195_v45  ;;  %v5463_v45 = vld [vmem:[%s9503_s7 + $0x2f8] sm:$0xff] }
 0x2d4   :  { %5402 = vmatmul.mubr.msk.f32.vlgmr.msra.gmra.mxu1 %vm1167_vm5, %v1171_v46  ;;  %5427 = vmatpush1.msk.msra.mxu0 %vm1003_vm3, %v5424_v42  ;;  %v1398_v28 = vld [vmem:[#allocation2 + $0x2] sm:$0xff]  ;;  %v5466_v42 = vld [vmem:[%s9503_s7 + $0x310] sm:$0xff] }
 0x2d5   :  { %5453 = vmatpush1.msk.msra.mxu1 %vm1003_vm3, %v5450_v43  ;;  %1447 = vmatprep.subr.mxu0 %v5423_v44  ;;  %v1516_v29 = vld [vmem:[#allocation2 + $0x3] sm:$0xff]  ;;  %v5462_v46 = vld [vmem:[%s9503_s7 + $0x2f0] sm:$0xff] }
 0x2d6   :  { %1565 = vmatprep.subr.mxu1 %v5449_v47  ;;  %1448 = vmatpush1.msra.mxu0 %v5422_v48  ;;  %v5465_v43 = vld [vmem:[%s9503_s7 + $0x308] sm:$0xff]  ;;  %v5464_v44 = vld [vmem:[%s9503_s7 + $0x300] sm:$0xff] }
 0x2d7   :  { %1566 = vmatpush1.msra.mxu1 %v5448_v49  ;;  %1302 = vmatprep.mubr.f32.mxu0 %v6410_v50  ;;  %v5461_v47 = vld [vmem:[%s9503_s7 + $0x2e8] sm:$0xff]  ;;  %v5460_v48 = vld [vmem:[%s9503_s7 + $0x2e0] sm:$0xff]  ;;  %v5459_v49 = vld [vmem:[%s9503_s7 + $0x2d8] sm:$0xff] }
 0x2d8   :  { %1391 = vmatprep.mubr.f32.mxu1 %v6410_v50  ;;  %1449 = vmatprep.subr.mxu0 %v5421_v51  ;;  %v5458_v51 = vld [vmem:[%s9503_s7 + $0x2d0] sm:$0xff] }
 0x2d9   :  { %1567 = vmatprep.subr.mxu1 %v5447_v52  ;;  %5399 = vmatmul.mubr.msk.f32.gmra.mxu0 %vm1167_vm5, %v1196_v56  ;;  %v5457_v52 = vld [vmem:[%s9503_s7 + $0x2c8] sm:$0xff]  ;;  %v1787_v56 = vld [vmem:[%s9505_s9 + $0x78] sm:$0xff] }
 0x2da   :  { %5403 = vmatmul.mubr.msk.f32.gmra.mxu1 %vm1167_vm5, %v1172_v57  ;;  %1450 = vmatpush1.msra.mxu0 %v5420_v53  ;;  %v5456_v53 = vld [vmem:[%s9503_s7 + $0x2c0] sm:$0xff]  ;;  %v1889_v57 = vld [vmem:[%s9506_s10 + $0x78] sm:$0xff] }
 0x2db   :  { %1568 = vmatpush1.msra.mxu1 %v5446_v54  ;;  %1451 = vmatprep.subr.mxu0 %v5419_v55  ;;  %v1634_v54 = vld [vmem:[#allocation2 + $0x4] sm:$0xff]  ;;  %v1635_v55 = vld [vmem:[#allocation2 + $0xc] sm:$0x3] }
 0x2dc   :  { %1569 = vmatprep.subr.mxu1 %v5445_v58  ;;  %1452 = vmatpush1.msra.mxu0 %v5418_v59  ;;  %v1786_v58 = vld [vmem:[%s9505_s9 + $0x70] sm:$0xff] }
 0x2dd   :  { %1570 = vmatpush1.msra.mxu1 %v5444_v60  ;;  %1453 = vmatprep.subr.mxu0 %v5417_v61  ;;  %v1888_v59 = vld [vmem:[%s9506_s10 + $0x70] sm:$0xff]  ;;  %v1785_v60 = vld [vmem:[%s9505_s9 + $0x68] sm:$0xff] }
 0x2de   :  { %1571 = vmatprep.subr.mxu1 %v5443_v62  ;;  %1454 = vmatpush1.msra.mxu0 %v5416_v63  ;;  %v1887_v61 = vld [vmem:[%s9506_s10 + $0x68] sm:$0xff]  ;;  %v1784_v62 = vld [vmem:[%s9505_s9 + $0x60] sm:$0xff] }
 0x2df   :  { %1572 = vmatpush1.msra.mxu1 %v5442_v0  ;;  %1455 = vmatprep.subr.mxu0 %v5415_v1  ;;  %v1886_v63 = vld [vmem:[%s9506_s10 + $0x60] sm:$0xff]  ;;  %v1783_v0 = vld [vmem:[%s9505_s9 + $0x58] sm:$0xff] }
 0x2e0   :  { %1573 = vmatprep.subr.mxu1 %v5441_v2  ;;  %1456 = vmatpush1.msra.mxu0 %v5414_v3  ;;  %v1885_v1 = vld [vmem:[%s9506_s10 + $0x58] sm:$0xff]  ;;  %v1782_v2 = vld [vmem:[%s9505_s9 + $0x50] sm:$0xff] }
 0x2e1   :  { %1574 = vmatpush1.msra.mxu1 %v5440_v6  ;;  %1457 = vmatprep.subr.mxu0 %v5413_v7  ;;  %v1884_v3 = vld [vmem:[%s9506_s10 + $0x50] sm:$0xff]  ;;  %v1781_v6 = vld [vmem:[%s9505_s9 + $0x48] sm:$0xff] }
 0x2e2   :  { %1575 = vmatprep.subr.mxu1 %v5439_v4  ;;  %1458 = vmatpush1.msra.mxu0 %v5412_v5  ;;  %v1883_v7 = vld [vmem:[%s9506_s10 + $0x48] sm:$0xff]  ;;  %v1780_v4 = vld [vmem:[%s9505_s9 + $0x40] sm:$0xff] }
 0x2e3   :  { %1576 = vmatpush1.msra.mxu1 %v5438_v8  ;;  %1459 = vmatprep.subr.mxu0 %v5411_v9  ;;  %v1882_v5 = vld [vmem:[%s9506_s10 + $0x40] sm:$0xff]  ;;  %v1779_v8 = vld [vmem:[%s9505_s9 + $0x38] sm:$0xff] }
 0x2e4   :  { %1577 = vmatprep.subr.mxu1 %v5437_v10  ;;  %1460 = vmatpush1.msra.mxu0 %v5410_v11  ;;  %v1881_v9 = vld [vmem:[%s9506_s10 + $0x38] sm:$0xff]  ;;  %v1778_v10 = vld [vmem:[%s9505_s9 + $0x30] sm:$0xff] }
 0x2e5   :  { %1578 = vmatpush1.msra.mxu1 %v5436_v12  ;;  %1461 = vmatprep.subr.mxu0 %v5409_v13  ;;  %v1880_v11 = vld [vmem:[%s9506_s10 + $0x30] sm:$0xff]  ;;  %v1777_v12 = vld [vmem:[%s9505_s9 + $0x28] sm:$0xff] }
 0x2e6   :  { %1579 = vmatprep.subr.mxu1 %v5435_v14  ;;  %1462 = vmatpush1.msra.mxu0 %v5408_v15  ;;  %v1879_v13 = vld [vmem:[%s9506_s10 + $0x28] sm:$0xff]  ;;  %v1776_v14 = vld [vmem:[%s9505_s9 + $0x20] sm:$0xff] }
 0x2e7   :  { %1580 = vmatpush1.msra.mxu1 %v5434_v16  ;;  %1463 = vmatprep.subr.mxu0 %v5407_v17  ;;  %v1878_v15 = vld [vmem:[%s9506_s10 + $0x20] sm:$0xff]  ;;  %v1775_v16 = vld [vmem:[%s9505_s9 + $0x18] sm:$0xff] }
 0x2e8   :  { %1581 = vmatprep.subr.mxu1 %v5433_v18  ;;  %1464 = vmatpush1.msra.mxu0 %v5406_v19  ;;  %v1877_v17 = vld [vmem:[%s9506_s10 + $0x18] sm:$0xff]  ;;  %v1774_v18 = vld [vmem:[%s9505_s9 + $0x10] sm:$0xff] }
 0x2e9   :  { %1582 = vmatpush1.msra.mxu1 %v5432_v20  ;;  %1465 = vmatprep.subr.mxu0 %v5405_v21  ;;  %v1876_v19 = vld [vmem:[%s9506_s10 + $0x10] sm:$0xff]  ;;  %v1773_v20 = vld [vmem:[%s9505_s9 + $0x8] sm:$0xff] }
 0x2ea   :  { %1583 = vmatprep.subr.mxu1 %v5431_v22  ;;  %1466 = vmatpush1.msra.mxu0 %v5404_v23  ;;  %v1875_v21 = vld [vmem:[%s9506_s10 + $0x8] sm:$0xff]  ;;  %v1772_v22 = vld [vmem:[%s9505_s9] sm:$0xff] }
 0x2eb   :  { %1499 = vmatprep.mubr.f32.mxu0 %v6410_v50  ;;  %1584 = vmatpush1.msra.mxu1 %v5430_v24  ;;  %v1874_v23 = vld [vmem:[%s9506_s10] sm:$0xff]  ;;  %v1791_v24 = vld [vmem:[%s9505_s9 + $0x98] sm:$0xff] }
 0x2ec   :  { %1617 = vmatprep.mubr.f32.mxu1 %v6410_v50  ;;  %5428 = vmatmul.mubr.msk.f32.vlgmr.msra.gmra.mxu0 %vm1167_vm5, %v1398_v28  ;;  %v1790_v28 = vld [vmem:[%s9505_s9 + $0x90] sm:$0xff] }
 0x2ed   :  { %5454 = vmatmul.mubr.msk.f32.vlgmr.msra.gmra.mxu1 %vm1167_vm5, %v1516_v29  ;;  %5478 = vmatprep.subr.msk.mxu0 %vm1003_vm3, %v5477_v27  ;;  %v1893_v27 = vld [vmem:[%s9506_s10 + $0x98] sm:$0xff]  ;;  %v1892_v29 = vld [vmem:[%s9506_s10 + $0x90] sm:$0xff] }
 0x2ee   :  { %1505 = vmatprep.mubr.f32.mxu0 %v6410_v50  ;;  %5479 = vmatpush1.msk.msra.mxu0 %vm1003_vm3, %v5476_v30  ;;  %v1789_v30 = vld [vmem:[%s9505_s9 + $0x88] sm:$0xff] }
 0x2ef   :  { %1623 = vmatprep.mubr.f32.mxu1 %v6410_v50  ;;  %1683 = vmatprep.subr.mxu0 %v5475_v31  ;;  %v1891_v31 = vld [vmem:[%s9506_s10 + $0x88] sm:$0xff] }
 0x2f0   :  { %1799 = vmatprep.subr.mxu1 %v6410_v50  ;;  %1684 = vmatpush1.msra.mxu0 %v5474_v32  ;;  %v1788_v32 = vld [vmem:[%s9505_s9 + $0x80] sm:$0xff] }
 0x2f1   :  { %5455 = vmatmul.mubr.msk.f32.gmra.mxu1 %vm1167_vm5, %v1517_v34  ;;  %5429 = vmatmul.mubr.msk.f32.gmra.mxu0 %vm1167_vm5, %v1399_v36 }
 0x2f2   :  { %1685 = vmatprep.subr.mxu0 %v5473_v33  ;;  %1735 = vmatprep.mubr.f32.mxu0 %v6410_v50  ;;  %v1890_v33 = vld [vmem:[%s9506_s10 + $0x80] sm:$0xff] }
 0x2f3   :  { %1686 = vmatpush1.msra.mxu0 %v5472_v35  ;;  %1800 = vmatpush1.msra.mxu1 %v1787_v56 }
 0x2f4   :  { %1687 = vmatprep.subr.mxu0 %v5471_v37  ;;  %1801 = vmatprep.subr.mxu1 %v6410_v50 }
 0x2f5   :  { %1688 = vmatpush1.msra.mxu0 %v5470_v38  ;;  %1802 = vmatpush1.msra.mxu1 %v1786_v58 }
 0x2f6   :  { %1689 = vmatprep.subr.mxu0 %v5469_v39  ;;  %1803 = vmatprep.subr.mxu1 %v6410_v50 }
 0x2f7   :  { %1690 = vmatpush1.msra.mxu0 %v5468_v40  ;;  %1804 = vmatpush1.msra.mxu1 %v1785_v60 }
 0x2f8   :  { %1691 = vmatprep.subr.mxu0 %v5467_v41  ;;  %1805 = vmatprep.subr.mxu1 %v6410_v50 }
 0x2f9   :  { %1692 = vmatpush1.msra.mxu0 %v5466_v42  ;;  %1806 = vmatpush1.msra.mxu1 %v1784_v62 }
 0x2fa   :  { %1693 = vmatprep.subr.mxu0 %v5465_v43  ;;  %1807 = vmatprep.subr.mxu1 %v6410_v50 }
 0x2fb   :  { %1694 = vmatpush1.msra.mxu0 %v5464_v44  ;;  %1808 = vmatpush1.msra.mxu1 %v1783_v0 }
 0x2fc   :  { %1695 = vmatprep.subr.mxu0 %v5463_v45  ;;  %1809 = vmatprep.subr.mxu1 %v6410_v50 }
 0x2fd   :  { %1696 = vmatpush1.msra.mxu0 %v5462_v46  ;;  %1810 = vmatpush1.msra.mxu1 %v1782_v2 }
 0x2fe   :  { %1697 = vmatprep.subr.mxu0 %v5461_v47  ;;  %1811 = vmatprep.subr.mxu1 %v6410_v50 }
 0x2ff   :  { %1698 = vmatpush1.msra.mxu0 %v5460_v48  ;;  %1812 = vmatpush1.msra.mxu1 %v1781_v6 }
 0x300   :  { %1699 = vmatprep.subr.mxu0 %v5459_v49  ;;  %1813 = vmatprep.subr.mxu1 %v6410_v50 }
 0x301   :  { %1700 = vmatpush1.msra.mxu0 %v5458_v51  ;;  %1814 = vmatpush1.msra.mxu1 %v1780_v4 }
 0x302   :  { %1701 = vmatprep.subr.mxu0 %v5457_v52  ;;  %1815 = vmatprep.subr.mxu1 %v6410_v50 }
 0x303   :  { %1702 = vmatpush1.msra.mxu0 %v5456_v53  ;;  %1816 = vmatpush1.msra.mxu1 %v1779_v8  ;;  %v1752_v53 = vld [vmem:[%s9504_s8] sm:$0x3] }
 0x304   :  { %5480 = vmatmul.mubr.msk.f32.vlgmr.msra.gmra.mxu0 %vm1167_vm5, %v1634_v54  ;;  %1894 = vmatprep.subr.mxu0 %v6410_v50  ;;  %v1757_v60 = vrot.slane %v1752_v53, %v7141_v25  ;;  %v1761_v0 = vrot.slane %v1752_v53, %v7143_v26 }
 0x305   :  { %1741 = vmatprep.mubr.f32.mxu0 %v6410_v50  ;;  %1895 = vmatpush1.msra.mxu0 %v1889_v57 }
 0x306   :  { %1896 = vmatprep.subr.mxu0 %v6410_v50  ;;  %1817 = vmatprep.subr.mxu1 %v6410_v50 }
 0x307   :  { %1897 = vmatpush1.msra.mxu0 %v1888_v59  ;;  %1818 = vmatpush1.msra.mxu1 %v1778_v10 }
 0x308   :  { %5481 = vmatmul.mubr.msk.f32.gmra.mxu0 %vm1167_vm5, %v1635_v55  ;;  %1898 = vmatprep.subr.mxu0 %v6410_v50 }
 0x309   :  { %1899 = vmatpush1.msra.mxu0 %v1887_v61  ;;  %1819 = vmatprep.subr.mxu1 %v6410_v50 }
 0x30a   :  { %1900 = vmatprep.subr.mxu0 %v6410_v50  ;;  %1820 = vmatpush1.msra.mxu1 %v1777_v12 }
 0x30b   :  { %1901 = vmatpush1.msra.mxu0 %v1886_v63  ;;  %1821 = vmatprep.subr.mxu1 %v6410_v50 }
 0x30c   :  { %1902 = vmatprep.subr.mxu0 %v6410_v50  ;;  %1822 = vmatpush1.msra.mxu1 %v1776_v14 }
 0x30d   :  { %1903 = vmatpush1.msra.mxu0 %v1885_v1  ;;  %1823 = vmatprep.subr.mxu1 %v6410_v50 }
 0x30e   :  { %1904 = vmatprep.subr.mxu0 %v6410_v50  ;;  %1824 = vmatpush1.msra.mxu1 %v1775_v16 }
 0x30f   :  { %1905 = vmatpush1.msra.mxu0 %v1884_v3  ;;  %1825 = vmatprep.subr.mxu1 %v6410_v50 }
 0x310   :  { %1906 = vmatprep.subr.mxu0 %v6410_v50  ;;  %1826 = vmatpush1.msra.mxu1 %v1774_v18  ;;  %v5500_v18 = vld [vmem:[%s9509_s13 + $0x98] sm:$0xff] }
 0x311   :  { %1907 = vmatpush1.msra.mxu0 %v1883_v7  ;;  %1827 = vmatprep.subr.mxu1 %v6410_v50 }
 0x312   :  { %1908 = vmatprep.subr.mxu0 %v6410_v50  ;;  %1828 = vmatpush1.msra.mxu1 %v1773_v20  ;;  %v5498_v20 = vld [vmem:[%s9509_s13 + $0x88] sm:$0xff] }
 0x313   :  { %1909 = vmatpush1.msra.mxu0 %v1882_v5  ;;  %1829 = vmatprep.subr.mxu1 %v6410_v50 }
 0x314   :  { %1910 = vmatprep.subr.mxu0 %v6410_v50  ;;  %1830 = vmatpush1.msra.mxu1 %v1772_v22 }
 0x315   :  { %1911 = vmatpush1.msra.mxu0 %v1881_v9  ;;  %1855 = vmatprep.subr.mxu1 %v6410_v50 }
 0x316   :  { %1912 = vmatprep.subr.mxu0 %v6410_v50  ;;  %1856 = vmatpush2.msra.mxu1 %v1791_v24 }
 0x317   :  { %1913 = vmatpush1.msra.mxu0 %v1880_v11  ;;  %1857 = vmatprep.subr.mxu1 %v6410_v50 }
 0x318   :  { %1914 = vmatprep.subr.mxu0 %v6410_v50  ;;  %1858 = vmatpush2.msra.mxu1 %v1790_v28 }
 0x319   :  { %1915 = vmatpush1.msra.mxu0 %v1879_v13  ;;  %1859 = vmatprep.subr.mxu1 %v6410_v50 }
 0x31a   :  { %1916 = vmatprep.subr.mxu0 %v6410_v50  ;;  %1860 = vmatpush2.msra.mxu1 %v1789_v30 }
 0x31b   :  { %1917 = vmatpush1.msra.mxu0 %v1878_v15  ;;  %1861 = vmatprep.subr.mxu1 %v6410_v50 }
 0x31c   :  { %1918 = vmatprep.subr.mxu0 %v6410_v50  ;;  %1862 = vmatpush2.msra.mxu1 %v1788_v32 }
 0x31d   :  { %1919 = vmatpush1.msra.mxu0 %v1877_v17  ;;  %6047 = vmatprep.subr.mxu1 %v6410_v50 }
 0x31e   :  { %1920 = vmatprep.subr.mxu0 %v6410_v50 }
 0x31f   :  { %1921 = vmatpush1.msra.mxu0 %v1876_v19  ;;  %v5499_v19 = vld [vmem:[%s9509_s13 + $0x90] sm:$0xff] }
 0x320   :  { %1922 = vmatprep.subr.mxu0 %v6410_v50 }
 0x321   :  { %1923 = vmatpush1.msra.mxu0 %v1875_v21 }
 0x322   :  { %1924 = vmatprep.subr.mxu0 %v6410_v50 }
 0x323   :  { %1925 = vmatpush1.msra.mxu0 %v1874_v23 }
 0x324   :  { %1950 = vmatprep.subr.mxu0 %v6410_v50 }
 0x325   :  { %1951 = vmatpush2.msra.mxu0 %v1893_v27 }
 0x326   :  { %1952 = vmatprep.subr.mxu0 %v6410_v50 }
 0x327   :  { %1953 = vmatpush2.msra.mxu0 %v1892_v29 }
 0x328   :  { %1954 = vmatprep.subr.mxu0 %v6410_v50 }
 0x329   :  { %1955 = vmatpush2.msra.mxu0 %v1891_v31 }
 0x32a   :  { %1956 = vmatprep.subr.mxu0 %v6410_v50 }
 0x32b   :  { %1957 = vmatpush2.msra.mxu0 %v1890_v33  ;;  %v1971_v33 = vld [vmem:[%s9507_s11] sm:$0x1f] }
 0x32c   :  { %6084 = vmatprep.subr.mxu0 %v6410_v50 }
 0x393   :  { %v1298_v34 = vpop.f32.mrf.mxu0 }
 0x394   :  { %v1387_v36 = vpop.f32.mrf.mxu1 }
 0x395   :  { %v1300_v35 = vpop.f32.mrf.mxu0  ;;  %v1388_v45 = vadd.f32 %v1387_v36, %v1298_v34  ;;  %v2050_v34 = vld [vmem:[%s9508_s12] sm:$0x1f] }
 0x396   :  { %v1389_v38 = vpop.f32.mrf.mxu1  ;;  %v2137_v36 = vld [vmem:[%s9509_s13 + $0x40] sm:$0xff] }
 0x397   :  { %v1390_v47 = vadd.f32 %v1389_v38, %v1300_v35  ;;  %v2138_v35 = vld [vmem:[%s9509_s13 + $0x48] sm:$0xff]  ;;  %v2135_v38 = vld [vmem:[%s9509_s13 + $0x30] sm:$0xff] }
 0x399   :  { %v1304_v37 = vpop.f32.mrf.mxu0 }
 0x39a   :  { %v1393_v40 = vpop.f32.mrf.mxu1 }
 0x39b   :  { %v1306_v39 = vpop.f32.mrf.mxu0  ;;  %v1394_v51 = vadd.f32 %v1393_v40, %v1304_v37  ;;  %v2136_v37 = vld [vmem:[%s9509_s13 + $0x38] sm:$0xff]  ;;  %v2134_v40 = vld [vmem:[%s9509_s13 + $0x28] sm:$0xff] }
 0x39c   :  { %v1395_v42 = vpop.f32.mrf.mxu1 }
 0x39d   :  { %v1396_v55 = vadd.f32 %v1395_v42, %v1306_v39  ;;  %v5497_v39 = vld [vmem:[%s9509_s13 + $0x80] sm:$0xff] }
 0x39e   :  { %v2133_v42 = vld [vmem:[%s9509_s13 + $0x20] sm:$0xff] }
 0x3ac   :  { %v1501_v41 = vpop.f32.mrf.mxu0 }
 0x3ad   :  { %v1619_v44 = vpop.f32.mrf.mxu1  ;;  %v1512_v48 = vadd.f32 %v1501_v41, %v1388_v45  ;;  %v5496_v41 = vld [vmem:[%s9509_s13 + $0x78] sm:$0xff]  ;;  %v5494_v45 = vld [vmem:[%s9509_s13 + $0x68] sm:$0xff] }
 0x3ae   :  { %v1503_v43 = vpop.f32.mrf.mxu0 }
 0x3af   :  { %v1621_v49 = vpop.f32.mrf.mxu1  ;;  %v1513_v52 = vadd.f32 %v1503_v43, %v1390_v47  ;;  %v1630_v56 = vadd.f32 %v1619_v44, %v1512_v48  ;;  %v5495_v43 = vld [vmem:[%s9509_s13 + $0x70] sm:$0xff]  ;;  %v2132_v44 = vld [vmem:[%s9509_s13 + $0x18] sm:$0xff]  ;;  %v5493_v47 = vld [vmem:[%s9509_s13 + $0x60] sm:$0xff] }
 0x3b0   :  { %v2130_v48 = vld [vmem:[%s9509_s13 + $0x8] sm:$0xff] }
 0x3b1   :  { %v1507_v46 = vpop.f32.mrf.mxu0  ;;  %v1625_v58 = vpop.f32.mrf.mxu1  ;;  %v1631_v61 = vadd.f32 %v1621_v49, %v1513_v52  ;;  %v5492_v49 = vld [vmem:[%s9509_s13 + $0x58] sm:$0xff]  ;;  %v5491_v52 = vld [vmem:[%s9509_s13 + $0x50] sm:$0xff] }
 0x3b2   :  { %v1514_v57 = vadd.f32 %v1507_v46, %v1394_v51  ;;  %v2131_v46 = vld [vmem:[%s9509_s13 + $0x10] sm:$0xff]  ;;  %v2129_v51 = vld [vmem:[%s9509_s13] sm:$0xff] }
 0x3b3   :  { %v1509_v54 = vpop.f32.mrf.mxu0  ;;  %v1627_v6 = vpop.f32.mrf.mxu1 }
 0x3b4   :  { %v1515_v62 = vadd.f32 %v1509_v54, %v1396_v55  ;;  %v1632_v2 = vadd.f32 %v1625_v58, %v1514_v57  ;;  %v5511_v58 = vld [vmem:[%s9509_s13 + $0xe8] sm:$0xff] }
 0x3b6   :  { %v1633_v5 = vadd.f32 %v1627_v6, %v1515_v62  ;;  %v5510_v62 = vld [vmem:[%s9509_s13 + $0xe0] sm:$0xff]  ;;  %v5507_v6 = vld [vmem:[%s9509_s13 + $0xc8] sm:$0xff] }
 0x3c4   :  { %v1737_v59 = vpop.f32.mrf.mxu0 }
 0x3c5   :  { %v1748_v63 = vadd.f32 %v1737_v59, %v1630_v56  ;;  %v5522_v59 = vld [vmem:[%s9509_s13 + $0x138] sm:$0xff] }
 0x3c6   :  { %v1739_v1 = vpop.f32.mrf.mxu0 }
 0x3c7   :  { %v1749_v3 = vadd.f32 %v1739_v1, %v1631_v61  ;;  %v1764_v7 = vadd.f32 %v1757_v60, %v1748_v63  ;;  %v5521_v63 = vld [vmem:[%s9509_s13 + $0x130] sm:$0xff]  ;;  %v5520_v1 = vld [vmem:[%s9509_s13 + $0x128] sm:$0xff] }
 0x3c8   :  { %v1743_v4 = vpop.f32.mrf.mxu0 }
 0x3c9   :  { %v1765_v8 = vadd.f32 %v1761_v0, %v1749_v3  ;;  %v1750_v9 = vadd.f32 %v1743_v4, %v1632_v2  ;;  %v1768_v13 = vmax.f32 %v1764_v7, 0.0  ;;  %v5508_v2 = vld [vmem:[%s9509_s13 + $0xd0] sm:$0xff]  ;;  %v5519_v3 = vld [vmem:[%s9509_s13 + $0x120] sm:$0xff]  ;;  %v5518_v7 = vld [vmem:[%s9509_s13 + $0x118] sm:$0xff] }
 0x3ca   :  { %v1745_v10 = vpop.f32.mrf.mxu0  ;;  %v5506_v4 = vld [vmem:[%s9509_s13 + $0xc0] sm:$0xff] }
 0x3cb   :  { %v1769_v11 = vmax.f32 %v1765_v8, 0.0  ;;  %v1751_v12 = vadd.f32 %v1745_v10, %v1633_v5  ;;  %v1766_v14 = vadd.f32 %v1757_v60, %v1750_v9  ;;  %v5517_v5 = vld [vmem:[%s9509_s13 + $0x110] sm:$0xff]  ;;  %v5505_v8 = vld [vmem:[%s9509_s13 + $0xb8] sm:$0xff]  ;;  %v5516_v9 = vld [vmem:[%s9509_s13 + $0x108] sm:$0xff] }
 0x3cc   :  { %v5504_v10 = vld [vmem:[%s9509_s13 + $0xb0] sm:$0xff] }
 0x3cd   :  { %v1767_v15 = vadd.f32 %v1761_v0, %v1751_v12  ;;  %5482 = vmatprep.mubr.msk.f32.mxu1 %vm1792_vm6, %v1769_v11  ;;  %5484 = vmatprep.mubr.msk.f32.mxu0 %vm1792_vm6, %v1769_v11  ;;  %v1770_v17 = vmax.f32 %v1766_v14, 0.0  ;;  %v5509_v0 = vld [vmem:[%s9509_s13 + $0xd8] sm:$0xff]  ;;  %v5515_v11 = vld [vmem:[%s9509_s13 + $0x100] sm:$0xff]  ;;  %v5503_v12 = vld [vmem:[%s9509_s13 + $0xa8] sm:$0xff] }
 0x3ce   :  { %1864 = vmatmul.mubr.f32.vlgmr.msra.gmra.mxu1 %v1768_v13  ;;  %1959 = vmatmul.mubr.f32.vlgmr.msra.gmra.mxu0 %v1768_v13  ;;  %v5514_v13 = vld [vmem:[%s9509_s13 + $0xf8] sm:$0xff]  ;;  %v5502_v14 = vld [vmem:[%s9509_s13 + $0xa0] sm:$0xff] }
 0x3cf   :  { %v1771_v16 = vmax.f32 %v1767_v15, 0.0  ;;  %6085 = vmatpush3.msra.mxu0 %v5500_v18  ;;  %v5513_v15 = vld [vmem:[%s9509_s13 + $0xf0] sm:$0xff] }
 0x3d0   :  { %6086 = vmatprep.subr.mxu0 %v6410_v50 }
 0x3d1   :  { %5483 = vmatprep.mubr.msk.f32.mxu1 %vm1792_vm6, %v1771_v16  ;;  %5485 = vmatprep.mubr.msk.f32.mxu0 %vm1792_vm6, %v1771_v16  ;;  %v5566_v16 = vld [vmem:[%s9524_s20 + $0x178] sm:$0xff] }
 0x3d2   :  { %1869 = vmatmul.mubr.f32.gmra.mxu1 %v1770_v17  ;;  %1964 = vmatmul.mubr.f32.gmra.mxu0 %v1770_v17  ;;  %v5533_v17 = vld [vmem:[%s9509_s13 + $0x188] sm:$0xff] }
 0x3d3   :  { %6051 = vmatprep.mubr.msk.f32.mxu1 %vm6411_vm7, %v6410_v50  ;;  %6104 = vmatprep.mubr.msk.f32.mxu0 %vm6411_vm7, %v6410_v50 }
 0x3d4   :  { %6087 = vmatpush3.msra.mxu0 %v5499_v19 }
 0x3d5   :  { %6088 = vmatprep.subr.mxu0 %v6410_v50 }
 0x3d6   :  { %6089 = vmatpush3.msra.mxu0 %v5498_v20  ;;  %v5565_v20 = vld [vmem:[%s9524_s20 + $0x170] sm:$0xff] }
 0x3d7   :  { %6090 = vmatprep.subr.mxu0 %v6410_v50 }
 0x3d8   :  { %6091 = vmatpush3.msra.mxu0 %v5497_v39  ;;  %v5527_v39 = vld [vmem:[%s9509_s13 + $0x158] sm:$0xff] }
 0x3d9   :  { %6092 = vmatprep.subr.mxu0 %v6410_v50 }
 0x3da   :  { %6093 = vmatpush3.msra.mxu0 %v5496_v41  ;;  %v5552_v41 = vld [vmem:[%s9524_s20 + $0x108] sm:$0xff] }
 0x3db   :  { %6094 = vmatprep.subr.mxu0 %v6410_v50 }
 0x3dc   :  { %6095 = vmatpush3.msra.mxu0 %v5495_v43  ;;  %v5551_v43 = vld [vmem:[%s9524_s20 + $0x100] sm:$0xff] }
 0x3dd   :  { %6096 = vmatprep.subr.mxu0 %v6410_v50 }
 0x3de   :  { %6097 = vmatpush3.msra.mxu0 %v5494_v45  ;;  %v5525_v45 = vld [vmem:[%s9509_s13 + $0x148] sm:$0xff] }
 0x3df   :  { %6098 = vmatprep.subr.mxu0 %v6410_v50 }
 0x3e0   :  { %6099 = vmatpush3.msra.mxu0 %v5493_v47  ;;  %v5548_v47 = vld [vmem:[%s9524_s20 + $0xe8] sm:$0xff] }
 0x3e1   :  { %6100 = vmatprep.subr.mxu0 %v6410_v50 }
 0x3e2   :  { %6101 = vmatpush3.msra.mxu0 %v5492_v49  ;;  %v5547_v49 = vld [vmem:[%s9524_s20 + $0xe0] sm:$0xff] }
 0x3e3   :  { %6102 = vmatprep.subr.mxu0 %v6410_v50 }
 0x3e4   :  { %6103 = vmatpush3.msra.mxu0 %v5491_v52  ;;  %v2589_v52 = vld [vmem:[%s9524_s20 + $0xb8] sm:$0xff] }
 0x3e5   :  { %6130 = vmatprep.subr.mxu0 %v6410_v50 }
 0x48e   :  { %v1865_v21 = vpop.f32.mrf.mxu1  ;;  %v1960_v22 = vpop.f32.mrf.mxu0 }
 0x48f   :  { %v1969_v32 = vmax.f32 %v1865_v21, %v1960_v22  ;;  %v5564_v21 = vld [vmem:[%s9524_s20 + $0x168] sm:$0xff]  ;;  %v5532_v22 = vld [vmem:[%s9509_s13 + $0x180] sm:$0xff] }
 0x490   :  { %v1867_v23 = vpop.f32.mrf.mxu1  ;;  %v1962_v24 = vpop.f32.mrf.mxu0 }
 0x491   :  { %v5563_v23 = vld [vmem:[%s9524_s20 + $0x160] sm:$0xff]  ;;  %v5562_v24 = vld [vmem:[%s9524_s20 + $0x158] sm:$0xff] }
 0x492   :  { %v1870_v27 = vpop.f32.mrf.mxu1  ;;  %v1965_v28 = vpop.f32.mrf.mxu0 }
 0x493   :  { %v1970_v29 = vmax.f32 %v1870_v27, %v1965_v28  ;;  %v5531_v27 = vld [vmem:[%s9509_s13 + $0x178] sm:$0xff]  ;;  %v5561_v28 = vld [vmem:[%s9524_s20 + $0x150] sm:$0xff] }
 0x494   :  { %v1872_v30 = vpop.f32.mrf.mxu1  ;;  %v1967_v31 = vpop.f32.mrf.mxu0 }
 0x495   :  { %6048 = vmatpush3.msk.msra.mxu1 %vm1976_vm8, %v1970_v29  ;;  %v5530_v30 = vld [vmem:[%s9509_s13 + $0x170] sm:$0xff]  ;;  %v5559_v31 = vld [vmem:[%s9524_s20 + $0x140] sm:$0xff] }
 0x496   :  { %6049 = vmatprep.subr.mxu1 %v6410_v50 }
 0x497   :  { %6050 = vmatpush3.msra.mxu1 %v1969_v32 }
 0x498   :  { %6052 = vmatmul.mubr.msk.f32.vlgmr.msra.gmra.mxu1 %vm1972_vm9, %v1971_v33  ;;  %6054 = vmatprep.subr.mxu1 %v6410_v50  ;;  %v5529_v33 = vld [vmem:[%s9509_s13 + $0x168] sm:$0xff] }
 0x499   :  { %6055 = vmatpush3.msk.msra.mxu1 %vm1976_vm8, %v1970_v29  ;;  %6058 = vmatprep.mubr.msk.f32.mxu1 %vm6411_vm7, %v6410_v50  ;;  %v5560_v29 = vld [vmem:[%s9524_s20 + $0x148] sm:$0xff] }
 0x49a   :  { %6056 = vmatprep.subr.mxu1 %v6410_v50 }
 0x49b   :  { %6057 = vmatpush3.msra.mxu1 %v1969_v32  ;;  %v5558_v32 = vld [vmem:[%s9524_s20 + $0x138] sm:$0xff] }
 0x49c   :  { %6059 = vmatmul.mubr.msk.f32.vlgmr.msra.gmra.mxu1 %vm1972_vm9, %v2050_v34  ;;  %6061 = vmatprep.subr.mxu1 %v6410_v50  ;;  %v5557_v34 = vld [vmem:[%s9524_s20 + $0x130] sm:$0xff] }
 0x49d   :  { %6062 = vmatpush3.msra.mxu1 %v2138_v35  ;;  %6081 = vmatprep.mubr.msk.f32.mxu1 %vm6411_vm7, %v6410_v50  ;;  %v5556_v35 = vld [vmem:[%s9524_s20 + $0x128] sm:$0xff] }
 0x49e   :  { %6063 = vmatprep.subr.mxu1 %v6410_v50 }
 0x49f   :  { %6064 = vmatpush3.msra.mxu1 %v2137_v36  ;;  %v5528_v36 = vld [vmem:[%s9509_s13 + $0x160] sm:$0xff] }
 0x4a0   :  { %6065 = vmatprep.subr.mxu1 %v6410_v50 }
 0x4a1   :  { %6066 = vmatpush3.msra.mxu1 %v2136_v37  ;;  %v5555_v37 = vld [vmem:[%s9524_s20 + $0x120] sm:$0xff] }
 0x4a2   :  { %6067 = vmatprep.subr.mxu1 %v6410_v50 }
 0x4a3   :  { %6068 = vmatpush3.msra.mxu1 %v2135_v38  ;;  %v5554_v38 = vld [vmem:[%s9524_s20 + $0x118] sm:$0xff] }
 0x4a4   :  { %6069 = vmatprep.subr.mxu1 %v6410_v50 }
 0x4a5   :  { %6070 = vmatpush3.msra.mxu1 %v2134_v40  ;;  %v5553_v40 = vld [vmem:[%s9524_s20 + $0x110] sm:$0xff] }
 0x4a6   :  { %6071 = vmatprep.subr.mxu1 %v6410_v50 }
 0x4a7   :  { %6072 = vmatpush3.msra.mxu1 %v2133_v42  ;;  %v5526_v42 = vld [vmem:[%s9509_s13 + $0x150] sm:$0xff] }
 0x4a8   :  { %6073 = vmatprep.subr.mxu1 %v6410_v50 }
 0x4a9   :  { %6074 = vmatpush3.msra.mxu1 %v2132_v44  ;;  %v5550_v44 = vld [vmem:[%s9524_s20 + $0xf8] sm:$0xff] }
 0x4aa   :  { %6075 = vmatprep.subr.mxu1 %v6410_v50 }
 0x4ab   :  { %6076 = vmatpush3.msra.mxu1 %v2131_v46  ;;  %v5549_v46 = vld [vmem:[%s9524_s20 + $0xf0] sm:$0xff] }
 0x4ac   :  { %6077 = vmatprep.subr.mxu1 %v6410_v50 }
 0x4ad   :  { %6078 = vmatpush3.msra.mxu1 %v2130_v48  ;;  %v5524_v48 = vld [vmem:[%s9509_s13 + $0x140] sm:$0xff] }
 0x4ae   :  { %6079 = vmatprep.subr.mxu1 %v6410_v50 }
 0x4af   :  { %6080 = vmatpush3.msra.mxu1 %v2129_v51  ;;  %v5546_v51 = vld [vmem:[%s9524_s20 + $0xd8] sm:$0xff] }
 0x4b0   :  { %6107 = vmatprep.subr.mxu1 %v6410_v50 }
 0x558   :  { %v2046_v53 = vpop.f32.mrf.mxu1 }
 0x55a   :  { %v6053_v54 = vpop.f32.mrf.mxu1 }
 0x55b   :  { %v5545_v54 = vld [vmem:[%s9524_s20 + $0xd0] sm:$0xff] }
 0x55c   :  { %v2120_v55 = vpop.f32.mrf.mxu1 }
 0x55d   :  { %v2124_v56 = vmax.f32 %v2046_v53, %v2120_v55  ;;  %v2588_v55 = vld [vmem:[%s9524_s20 + $0xb0] sm:$0xff] }
 0x55e   :  { %v6060_v57 = vpop.f32.mrf.mxu1 }
 0x55f   :  { %2126 = vst.msk [vmem:[#allocation3] sm:$0x1f] %vm2125_vm10, %v2124_v56  ;;  %v5544_v56 = vld [vmem:[%s9524_s20 + $0xc8] sm:$0xff] }
 0x560   :  { %v2587_v57 = vld [vmem:[%s9524_s20 + $0xa8] sm:$0xff] }
 0x566   :  { %v2128_v60 = vld [vmem:[#allocation3] sm:$0x1]  ;;  %v2214_v61 = vld [vmem:[#allocation3 + $0x1] sm:$0x1]  ;;  %v2300_v18 = vld [vmem:[#allocation3 + $0x2] sm:$0x1] }
 0x567   :  { %6082 = vmatmul.mubr.msk.f32.vlgmr.msra.gmra.mxu1 %vm2139_vm11, %v2128_v60  ;;  %6105 = vmatmul.mubr.msk.f32.vlgmr.msra.gmra.mxu0 %vm2139_vm11, %v2214_v61  ;;  %v2386_v19 = vld [vmem:[#allocation3 + $0x3] sm:$0x1]  ;;  %v2472_v53 = vld [vmem:[#allocation3 + $0x4] sm:$0x1]  ;;  %v5539_v60 = vld [vmem:[%s9525_s0 + $0x21] sm:$0xff] }
 0x568   :  { %6108 = vmatpush3.msra.mxu1 %v5511_v58  ;;  %6131 = vmatpush3.msra.mxu0 %v5522_v59  ;;  %v5543_v58 = vld [vmem:[%s9524_s20 + $0xc0] sm:$0xff]  ;;  %v2585_v61 = vld [vmem:[%s9524_s20 + $0x98] sm:$0xff] }
 0x569   :  { %6109 = vmatprep.subr.mxu1 %v6410_v50  ;;  %6132 = vmatprep.subr.mxu0 %v6410_v50  ;;  %v2586_v59 = vld [vmem:[%s9524_s20 + $0xa0] sm:$0xff] }
 0x56a   :  { %6110 = vmatpush3.msra.mxu1 %v5510_v62  ;;  %6133 = vmatpush3.msra.mxu0 %v5521_v63  ;;  %v5602_v62 = vld [vmem:[%s9524_s20 + $0x238] sm:$0xff]  ;;  %v2584_v63 = vld [vmem:[%s9524_s20 + $0x90] sm:$0xff] }
 0x56b   :  { %6111 = vmatprep.subr.mxu1 %v6410_v50  ;;  %6134 = vmatprep.subr.mxu0 %v6410_v50 }
 0x56c   :  { %6112 = vmatpush3.msra.mxu1 %v5509_v0  ;;  %6135 = vmatpush3.msra.mxu0 %v5520_v1  ;;  %v5601_v0 = vld [vmem:[%s9524_s20 + $0x230] sm:$0xff]  ;;  %v2583_v1 = vld [vmem:[%s9524_s20 + $0x88] sm:$0xff] }
 0x56d   :  { %6113 = vmatprep.subr.mxu1 %v6410_v50  ;;  %6136 = vmatprep.subr.mxu0 %v6410_v50 }
 0x56e   :  { %6114 = vmatpush3.msra.mxu1 %v5508_v2  ;;  %6137 = vmatpush3.msra.mxu0 %v5519_v3  ;;  %v5600_v2 = vld [vmem:[%s9524_s20 + $0x228] sm:$0xff]  ;;  %v2582_v3 = vld [vmem:[%s9524_s20 + $0x80] sm:$0xff] }
 0x56f   :  { %6115 = vmatprep.subr.mxu1 %v6410_v50  ;;  %6138 = vmatprep.subr.mxu0 %v6410_v50 }
 0x570   :  { %6116 = vmatpush3.msra.mxu1 %v5507_v6  ;;  %6139 = vmatpush3.msra.mxu0 %v5518_v7  ;;  %v5599_v6 = vld [vmem:[%s9524_s20 + $0x220] sm:$0xff]  ;;  %v2581_v7 = vld [vmem:[%s9524_s20 + $0x78] sm:$0xff] }
 0x571   :  { %6117 = vmatprep.subr.mxu1 %v6410_v50  ;;  %6140 = vmatprep.subr.mxu0 %v6410_v50 }
 0x572   :  { %6118 = vmatpush3.msra.mxu1 %v5506_v4  ;;  %6141 = vmatpush3.msra.mxu0 %v5517_v5  ;;  %v5598_v4 = vld [vmem:[%s9524_s20 + $0x218] sm:$0xff]  ;;  %v2580_v5 = vld [vmem:[%s9524_s20 + $0x70] sm:$0xff] }
 0x573   :  { %6119 = vmatprep.subr.mxu1 %v6410_v50  ;;  %6142 = vmatprep.subr.mxu0 %v6410_v50 }
 0x574   :  { %6120 = vmatpush3.msra.mxu1 %v5505_v8  ;;  %6143 = vmatpush3.msra.mxu0 %v5516_v9  ;;  %v5597_v8 = vld [vmem:[%s9524_s20 + $0x210] sm:$0xff]  ;;  %v2579_v9 = vld [vmem:[%s9524_s20 + $0x68] sm:$0xff] }
 0x575   :  { %6121 = vmatprep.subr.mxu1 %v6410_v50  ;;  %6144 = vmatprep.subr.mxu0 %v6410_v50 }
 0x576   :  { %6122 = vmatpush3.msra.mxu1 %v5504_v10  ;;  %6145 = vmatpush3.msra.mxu0 %v5515_v11  ;;  %v5596_v10 = vld [vmem:[%s9524_s20 + $0x208] sm:$0xff]  ;;  %v2578_v11 = vld [vmem:[%s9524_s20 + $0x60] sm:$0xff] }
 0x577   :  { %6123 = vmatprep.subr.mxu1 %v6410_v50  ;;  %6146 = vmatprep.subr.mxu0 %v6410_v50 }
 0x578   :  { %6124 = vmatpush3.msra.mxu1 %v5503_v12  ;;  %6147 = vmatpush3.msra.mxu0 %v5514_v13  ;;  %v5595_v12 = vld [vmem:[%s9524_s20 + $0x200] sm:$0xff]  ;;  %v2577_v13 = vld [vmem:[%s9524_s20 + $0x58] sm:$0xff] }
 0x579   :  { %6125 = vmatprep.subr.mxu1 %v6410_v50  ;;  %6148 = vmatprep.subr.mxu0 %v6410_v50 }
 0x57a   :  { %6126 = vmatpush3.msra.mxu1 %v5502_v14  ;;  %6127 = vmatprep.mubr.msk.f32.mxu1 %vm6411_vm7, %v6410_v50  ;;  %v5594_v14 = vld [vmem:[%s9524_s20 + $0x1f8] sm:$0xff] }
 0x57b   :  { %6149 = vmatpush3.msra.mxu0 %v5513_v15  ;;  %6150 = vmatprep.mubr.msk.f32.mxu0 %vm6411_vm7, %v6410_v50  ;;  %v2576_v15 = vld [vmem:[%s9524_s20 + $0x50] sm:$0xff] }
 0x57c   :  { %6128 = vmatmul.mubr.msk.f32.vlgmr.msra.gmra.mxu1 %vm2139_vm11, %v2300_v18  ;;  %6151 = vmatmul.mubr.msk.f32.vlgmr.msra.gmra.mxu0 %vm2139_vm11, %v2386_v19  ;;  %v5592_v18 = vld [vmem:[%s9524_s20 + $0x1e8] sm:$0xff] }
 0x57d   :  { %6153 = vmatprep.subr.mxu1 %v6410_v50  ;;  %2638 = vmatprep.subr.mxu0 %v5566_v16  ;;  %v5593_v16 = vld [vmem:[%s9524_s20 + $0x1f0] sm:$0xff] }
 0x57e   :  { %6154 = vmatpush3.msra.mxu1 %v5533_v17  ;;  %2639 = vmatpush1.msra.mxu0 %v5565_v20  ;;  %v2575_v17 = vld [vmem:[%s9524_s20 + $0x48] sm:$0xff]  ;;  %v2574_v20 = vld [vmem:[%s9524_s20 + $0x40] sm:$0xff] }
 0x57f   :  { %6155 = vmatprep.subr.mxu1 %v6410_v50  ;;  %2640 = vmatprep.subr.mxu0 %v5564_v21  ;;  %v5540_v19 = vld [vmem:[%s9525_s0 + $0x29] sm:$0xff]  ;;  %v5591_v21 = vld [vmem:[%s9524_s20 + $0x1e0] sm:$0xff] }
 0x580   :  { %6156 = vmatpush3.msra.mxu1 %v5532_v22  ;;  %2641 = vmatpush1.msra.mxu0 %v5563_v23  ;;  %v2573_v22 = vld [vmem:[%s9524_s20 + $0x38] sm:$0xff] }
 0x581   :  { %6157 = vmatprep.subr.mxu1 %v6410_v50  ;;  %2642 = vmatprep.subr.mxu0 %v5562_v24  ;;  %v5590_v23 = vld [vmem:[%s9524_s20 + $0x1d8] sm:$0xff]  ;;  %v2572_v24 = vld [vmem:[%s9524_s20 + $0x30] sm:$0xff] }
 0x582   :  { %6158 = vmatpush3.msra.mxu1 %v5531_v27  ;;  %2643 = vmatpush1.msra.mxu0 %v5561_v28  ;;  %v5589_v27 = vld [vmem:[%s9524_s20 + $0x1d0] sm:$0xff]  ;;  %v2571_v28 = vld [vmem:[%s9524_s20 + $0x28] sm:$0xff] }
 0x583   :  { %6159 = vmatprep.subr.mxu1 %v6410_v50  ;;  %2644 = vmatprep.subr.mxu0 %v5560_v29  ;;  %v5588_v29 = vld [vmem:[%s9524_s20 + $0x1c8] sm:$0xff] }
 0x584   :  { %6160 = vmatpush3.msra.mxu1 %v5530_v30  ;;  %2645 = vmatpush1.msra.mxu0 %v5559_v31  ;;  %v5541_v30 = vld [vmem:[%s9525_s0 + $0x31] sm:$0xff]  ;;  %v2570_v31 = vld [vmem:[%s9524_s20 + $0x20] sm:$0xff] }
 0x585   :  { %6161 = vmatprep.subr.mxu1 %v6410_v50  ;;  %2646 = vmatprep.subr.mxu0 %v5558_v32  ;;  %v5587_v32 = vld [vmem:[%s9524_s20 + $0x1c0] sm:$0xff] }
 0x586   :  { %6162 = vmatpush3.msra.mxu1 %v5529_v33  ;;  %2647 = vmatpush1.msra.mxu0 %v5557_v34  ;;  %v2569_v33 = vld [vmem:[%s9524_s20 + $0x18] sm:$0xff] }
 0x587   :  { %6163 = vmatprep.subr.mxu1 %v6410_v50  ;;  %2648 = vmatprep.subr.mxu0 %v5556_v35  ;;  %v5586_v34 = vld [vmem:[%s9524_s20 + $0x1b8] sm:$0xff]  ;;  %v2568_v35 = vld [vmem:[%s9524_s20 + $0x10] sm:$0xff] }
 0x588   :  { %6164 = vmatpush3.msra.mxu1 %v5528_v36  ;;  %2649 = vmatpush1.msra.mxu0 %v5555_v37  ;;  %v5585_v36 = vld [vmem:[%s9524_s20 + $0x1b0] sm:$0xff]  ;;  %v2567_v37 = vld [vmem:[%s9524_s20 + $0x8] sm:$0xff] }
 0x589   :  { %6165 = vmatprep.subr.mxu1 %v6410_v50  ;;  %2650 = vmatprep.subr.mxu0 %v5554_v38  ;;  %v5584_v38 = vld [vmem:[%s9524_s20 + $0x1a8] sm:$0xff] }
 0x58a   :  { %6166 = vmatpush3.msra.mxu1 %v5527_v39  ;;  %2651 = vmatpush1.msra.mxu0 %v5553_v40  ;;  %v5542_v39 = vld [vmem:[%s9525_s0 + $0x39] sm:$0xf]  ;;  %v2566_v40 = vld [vmem:[%s9524_s20] sm:$0xff] }
 0x58b   :  { %6167 = vmatprep.subr.mxu1 %v6410_v50  ;;  %2652 = vmatprep.subr.mxu0 %v5552_v41  ;;  %v5583_v41 = vld [vmem:[%s9524_s20 + $0x1a0] sm:$0xff] }
 0x58c   :  { %6168 = vmatpush3.msra.mxu1 %v5526_v42  ;;  %2653 = vmatpush1.msra.mxu0 %v5551_v43  ;;  %v5535_v42 = vld [vmem:[%s9525_s0 + $0x20] sm:$0xff]  ;;  %v5582_v43 = vld [vmem:[%s9524_s20 + $0x198] sm:$0xff] }
 0x58d   :  { %6169 = vmatprep.subr.mxu1 %v6410_v50  ;;  %2654 = vmatprep.subr.mxu0 %v5550_v44  ;;  %v5634_v44 = vld [vmem:[%s9524_s20 + $0x2f8] sm:$0xff] }
 0x58e   :  { %6170 = vmatpush3.msra.mxu1 %v5525_v45  ;;  %2655 = vmatpush1.msra.mxu0 %v5549_v46  ;;  %v5581_v45 = vld [vmem:[%s9524_s20 + $0x190] sm:$0xff] }
 0x58f   :  { %6171 = vmatprep.subr.mxu1 %v6410_v50  ;;  %2656 = vmatprep.subr.mxu0 %v5548_v47  ;;  %v5633_v46 = vld [vmem:[%s9524_s20 + $0x2f0] sm:$0xff]  ;;  %v5580_v47 = vld [vmem:[%s9524_s20 + $0x188] sm:$0xff] }
 0x590   :  { %6172 = vmatpush3.msra.mxu1 %v5524_v48  ;;  %6173 = vmatprep.mubr.msk.f32.mxu1 %vm6411_vm7, %v6410_v50  ;;  %v5632_v48 = vld [vmem:[%s9524_s20 + $0x2e8] sm:$0xff] }
 0x591   :  { %2657 = vmatpush1.msra.mxu0 %v5547_v49  ;;  %6174 = vmatmul.mubr.msk.f32.vlgmr.msra.gmra.mxu1 %vm2139_vm11, %v2472_v53  ;;  %v5579_v49 = vld [vmem:[%s9524_s20 + $0x180] sm:$0xff] }
 0x592   :  { %2658 = vmatprep.subr.mxu0 %v5546_v51  ;;  %2739 = vmatprep.subr.mxu1 %v2589_v52  ;;  %v5631_v51 = vld [vmem:[%s9524_s20 + $0x2e0] sm:$0xff]  ;;  %v5536_v52 = vld [vmem:[%s9525_s0 + $0x28] sm:$0xff] }
 0x593   :  { %2659 = vmatpush1.msra.mxu0 %v5545_v54  ;;  %2740 = vmatpush1.msra.mxu1 %v2588_v55  ;;  %v5575_v53 = vld [vmem:[%s9525_s0 + $0x22] sm:$0xff]  ;;  %v5630_v54 = vld [vmem:[%s9524_s20 + $0x2d8] sm:$0xff] }
 0x594   :  { %2660 = vmatprep.subr.mxu0 %v5544_v56  ;;  %2741 = vmatprep.subr.mxu1 %v2587_v57  ;;  %v5666_v55 = vld [vmem:[%s9524_s20 + $0x3b8] sm:$0xff]  ;;  %v5629_v56 = vld [vmem:[%s9524_s20 + $0x2d0] sm:$0xff] }
 0x595   :  { %2661 = vmatpush1.msra.mxu0 %v5543_v58  ;;  %2694 = vmatprep.mubr.f32.mxu0 %v6410_v50  ;;  %v5665_v57 = vld [vmem:[%s9524_s20 + $0x3b0] sm:$0xff]  ;;  %v5628_v58 = vld [vmem:[%s9524_s20 + $0x2c8] sm:$0xff] }
 0x596   :  { %2742 = vmatpush1.msra.mxu1 %v2586_v59  ;;  %5567 = vmatmul.mubr.msk.f32.vlgmr.msra.gmra.mxu0 %vm120_vm0, %v5539_v60  ;;  %v5664_v59 = vld [vmem:[%s9524_s20 + $0x3a8] sm:$0xff]  ;;  %v5627_v60 = vld [vmem:[%s9524_s20 + $0x2c0] sm:$0xff] }
 0x597   :  { %2743 = vmatprep.subr.mxu1 %v2585_v61  ;;  %2868 = vmatprep.subr.mxu0 %v5602_v62  ;;  %v5663_v61 = vld [vmem:[%s9524_s20 + $0x3a0] sm:$0xff]  ;;  %v5537_v62 = vld [vmem:[%s9525_s0 + $0x30] sm:$0xff] }
 0x598   :  { %2744 = vmatpush1.msra.mxu1 %v2584_v63  ;;  %2869 = vmatpush1.msra.mxu0 %v5601_v0  ;;  %v5576_v63 = vld [vmem:[%s9525_s0 + $0x2a] sm:$0xff]  ;;  %v5626_v0 = vld [vmem:[%s9524_s20 + $0x2b8] sm:$0xff] }
 0x599   :  { %2745 = vmatprep.subr.mxu1 %v2583_v1  ;;  %2870 = vmatprep.subr.mxu0 %v5600_v2  ;;  %v5662_v1 = vld [vmem:[%s9524_s20 + $0x398] sm:$0xff]  ;;  %v5625_v2 = vld [vmem:[%s9524_s20 + $0x2b0] sm:$0xff] }
 0x59a   :  { %2746 = vmatpush1.msra.mxu1 %v2582_v3  ;;  %2871 = vmatpush1.msra.mxu0 %v5599_v6  ;;  %v5661_v3 = vld [vmem:[%s9524_s20 + $0x390] sm:$0xff]  ;;  %v5624_v6 = vld [vmem:[%s9524_s20 + $0x2a8] sm:$0xff] }
 0x59b   :  { %2747 = vmatprep.subr.mxu1 %v2581_v7  ;;  %2872 = vmatprep.subr.mxu0 %v5598_v4  ;;  %v5660_v7 = vld [vmem:[%s9524_s20 + $0x388] sm:$0xff]  ;;  %v5623_v4 = vld [vmem:[%s9524_s20 + $0x2a0] sm:$0xff] }
 0x59c   :  { %2748 = vmatpush1.msra.mxu1 %v2580_v5  ;;  %2873 = vmatpush1.msra.mxu0 %v5597_v8  ;;  %v5659_v5 = vld [vmem:[%s9524_s20 + $0x380] sm:$0xff]  ;;  %v5538_v8 = vld [vmem:[%s9525_s0 + $0x38] sm:$0xf] }
 0x59d   :  { %2749 = vmatprep.subr.mxu1 %v2579_v9  ;;  %2874 = vmatprep.subr.mxu0 %v5596_v10  ;;  %v5577_v9 = vld [vmem:[%s9525_s0 + $0x32] sm:$0xff] }
 0x59e   :  { %2750 = vmatpush1.msra.mxu1 %v2578_v11  ;;  %2875 = vmatpush1.msra.mxu0 %v5595_v12  ;;  %v5622_v10 = vld [vmem:[%s9524_s20 + $0x298] sm:$0xff]  ;;  %v5621_v12 = vld [vmem:[%s9524_s20 + $0x290] sm:$0xff] }
 0x59f   :  { %2751 = vmatprep.subr.mxu1 %v2577_v13  ;;  %2876 = vmatprep.subr.mxu0 %v5594_v14  ;;  %v5658_v11 = vld [vmem:[%s9524_s20 + $0x378] sm:$0xff]  ;;  %v5657_v13 = vld [vmem:[%s9524_s20 + $0x370] sm:$0xff]  ;;  %v5620_v14 = vld [vmem:[%s9524_s20 + $0x288] sm:$0xff] }
 0x5a0   :  { %2752 = vmatpush1.msra.mxu1 %v2576_v15  ;;  %2877 = vmatpush1.msra.mxu0 %v5593_v16  ;;  %v5656_v15 = vld [vmem:[%s9524_s20 + $0x368] sm:$0xff]  ;;  %v5619_v16 = vld [vmem:[%s9524_s20 + $0x280] sm:$0xff] }
 0x5a1   :  { %2700 = vmatprep.mubr.f32.mxu0 %v6410_v50  ;;  %2753 = vmatprep.subr.mxu1 %v2575_v17  ;;  %v5655_v17 = vld [vmem:[%s9524_s20 + $0x360] sm:$0xff] }
 0x5a2   :  { %2878 = vmatprep.subr.mxu0 %v5592_v18  ;;  %5568 = vmatmul.mubr.msk.f32.gmra.mxu0 %vm120_vm0, %v5540_v19  ;;  %v5618_v18 = vld [vmem:[%s9524_s20 + $0x278] sm:$0xff] }
 0x5a3   :  { %2754 = vmatpush1.msra.mxu1 %v2574_v20  ;;  %2879 = vmatpush1.msra.mxu0 %v5591_v21  ;;  %v5578_v19 = vld [vmem:[%s9525_s0 + $0x3a] sm:$0xf]  ;;  %v5617_v21 = vld [vmem:[%s9524_s20 + $0x270] sm:$0xff] }
 0x5a4   :  { %2755 = vmatprep.subr.mxu1 %v2573_v22  ;;  %2880 = vmatprep.subr.mxu0 %v5590_v23  ;;  %v5654_v20 = vld [vmem:[%s9524_s20 + $0x358] sm:$0xff]  ;;  %v5653_v22 = vld [vmem:[%s9524_s20 + $0x350] sm:$0xff]  ;;  %v5616_v23 = vld [vmem:[%s9524_s20 + $0x268] sm:$0xff] }
 0x5a5   :  { %2756 = vmatpush1.msra.mxu1 %v2572_v24  ;;  %2881 = vmatpush1.msra.mxu0 %v5589_v27  ;;  %v5652_v24 = vld [vmem:[%s9524_s20 + $0x348] sm:$0xff]  ;;  %v5615_v27 = vld [vmem:[%s9524_s20 + $0x260] sm:$0xff] }
 0x5a6   :  { %2706 = vmatprep.mubr.f32.mxu0 %v6410_v50  ;;  %2757 = vmatprep.subr.mxu1 %v2571_v28  ;;  %v5651_v28 = vld [vmem:[%s9524_s20 + $0x340] sm:$0xff] }
 0x5a7   :  { %2882 = vmatprep.subr.mxu0 %v5588_v29  ;;  %5569 = vmatmul.mubr.msk.f32.gmra.mxu0 %vm120_vm0, %v5541_v30  ;;  %v5614_v29 = vld [vmem:[%s9524_s20 + $0x258] sm:$0xff] }
 0x5a8   :  { %2758 = vmatpush1.msra.mxu1 %v2570_v31  ;;  %2883 = vmatpush1.msra.mxu0 %v5587_v32  ;;  %v5650_v30 = vld [vmem:[%s9524_s20 + $0x338] sm:$0xff]  ;;  %v5613_v31 = vld [vmem:[%s9524_s20 + $0x250] sm:$0xff] }
 0x5a9   :  { %2759 = vmatprep.subr.mxu1 %v2569_v33  ;;  %2884 = vmatprep.subr.mxu0 %v5586_v34  ;;  %v5649_v32 = vld [vmem:[%s9524_s20 + $0x330] sm:$0xff]  ;;  %v5612_v33 = vld [vmem:[%s9524_s20 + $0x248] sm:$0xff] }
 0x5aa   :  { %2760 = vmatpush1.msra.mxu1 %v2568_v35  ;;  %2885 = vmatpush1.msra.mxu0 %v5585_v36  ;;  %v5648_v34 = vld [vmem:[%s9524_s20 + $0x328] sm:$0xff]  ;;  %v5611_v35 = vld [vmem:[%s9524_s20 + $0x240] sm:$0xff] }
 0x5ab   :  { %2712 = vmatprep.mubr.f32.mxu0 %v6410_v50  ;;  %2761 = vmatprep.subr.mxu1 %v2567_v37  ;;  %v5647_v36 = vld [vmem:[%s9524_s20 + $0x320] sm:$0xff] }
 0x5ac   :  { %2886 = vmatprep.subr.mxu0 %v5584_v38  ;;  %5570 = vmatmul.mubr.msk.f32.gmra.mxu0 %vm120_vm0, %v5542_v39  ;;  %v5607_v37 = vld [vmem:[%s9525_s0 + $0x23] sm:$0xff]  ;;  %v5646_v38 = vld [vmem:[%s9524_s20 + $0x318] sm:$0xff]  ;;  %v5645_v39 = vld [vmem:[%s9524_s20 + $0x310] sm:$0xff] }
 0x5ad   :  { %2762 = vmatpush1.msra.mxu1 %v2566_v40  ;;  %2795 = vmatprep.mubr.f32.mxu1 %v6410_v50  ;;  %v5644_v40 = vld [vmem:[%s9524_s20 + $0x308] sm:$0xff] }
 0x5ae   :  { %2887 = vmatpush1.msra.mxu0 %v5583_v41  ;;  %5571 = vmatmul.mubr.msk.f32.vlgmr.msra.gmra.mxu1 %vm120_vm0, %v5535_v42  ;;  %v5643_v41 = vld [vmem:[%s9524_s20 + $0x300] sm:$0xff]  ;;  %v5608_v42 = vld [vmem:[%s9525_s0 + $0x2b] sm:$0xff]  ;;  %s6412_s20 = smov [#allocation5]  }
 0x5af   :  { %2888 = vmatprep.subr.mxu0 %v5582_v43  ;;  %3005 = vmatprep.subr.mxu1 %v5634_v44  ;;  %v5639_v43 = vld [vmem:[%s9525_s0 + $0x24] sm:$0xff]  ;;  %v5609_v44 = vld [vmem:[%s9525_s0 + $0x33] sm:$0xff] }
 0x5b0   :  { %2889 = vmatpush1.msra.mxu0 %v5581_v45  ;;  %3006 = vmatpush1.msra.mxu1 %v5633_v46  ;;  %v5640_v45 = vld [vmem:[%s9525_s0 + $0x2c] sm:$0xff]  ;;  %v5610_v46 = vld [vmem:[%s9525_s0 + $0x3b] sm:$0xf] }
 0x5b1   :  { %2890 = vmatprep.subr.mxu0 %v5580_v47  ;;  %3007 = vmatprep.subr.mxu1 %v5632_v48  ;;  %v5641_v47 = vld [vmem:[%s9525_s0 + $0x34] sm:$0xff]  ;;  %v5642_v48 = vld [vmem:[%s9525_s0 + $0x3c] sm:$0xf] }
 0x5b2   :  { %2801 = vmatprep.mubr.f32.mxu1 %v6410_v50  ;;  %2891 = vmatpush1.msra.mxu0 %v5579_v49  ;;  %v3274_v49 = vld [vmem:[%s9526_s1 + $0x78] sm:$0xff] }
 0x5b3   :  { %2924 = vmatprep.mubr.f32.mxu0 %v6410_v50  ;;  %3008 = vmatpush1.msra.mxu1 %v5631_v51  ;;  %v3392_v51 = vld [vmem:[%s9500_s4 + $0x78] sm:$0xff] }
 0x5b4   :  { %5572 = vmatmul.mubr.msk.f32.gmra.mxu1 %vm120_vm0, %v5536_v52  ;;  %5603 = vmatmul.mubr.msk.f32.vlgmr.msra.gmra.mxu0 %vm120_vm0, %v5575_v53  ;;  %v3273_v52 = vld [vmem:[%s9526_s1 + $0x70] sm:$0xff] }
 0x5b5   :  { %3009 = vmatprep.subr.mxu1 %v5630_v54  ;;  %3142 = vmatprep.subr.mxu0 %v5666_v55  ;;  %v3391_v53 = vld [vmem:[%s9500_s4 + $0x70] sm:$0xff]  ;;  %v3272_v54 = vld [vmem:[%s9526_s1 + $0x68] sm:$0xff] }
 0x5b6   :  { %3010 = vmatpush1.msra.mxu1 %v5629_v56  ;;  %3143 = vmatpush1.msra.mxu0 %v5665_v57  ;;  %v3390_v55 = vld [vmem:[%s9500_s4 + $0x68] sm:$0xff]  ;;  %v3271_v56 = vld [vmem:[%s9526_s1 + $0x60] sm:$0xff] }
 0x5b7   :  { %3011 = vmatprep.subr.mxu1 %v5628_v58  ;;  %3144 = vmatprep.subr.mxu0 %v5664_v59  ;;  %v3389_v57 = vld [vmem:[%s9500_s4 + $0x60] sm:$0xff]  ;;  %v3270_v58 = vld [vmem:[%s9526_s1 + $0x58] sm:$0xff] }
 0x5b8   :  { %2807 = vmatprep.mubr.f32.mxu1 %v6410_v50  ;;  %2930 = vmatprep.mubr.f32.mxu0 %v6410_v50  ;;  %v3388_v59 = vld [vmem:[%s9500_s4 + $0x58] sm:$0xff] }
 0x5b9   :  { %3012 = vmatpush1.msra.mxu1 %v5627_v60  ;;  %3145 = vmatpush1.msra.mxu0 %v5663_v61  ;;  %v3269_v60 = vld [vmem:[%s9526_s1 + $0x50] sm:$0xff] }
 0x5ba   :  { %5573 = vmatmul.mubr.msk.f32.gmra.mxu1 %vm120_vm0, %v5537_v62  ;;  %5604 = vmatmul.mubr.msk.f32.gmra.mxu0 %vm120_vm0, %v5576_v63  ;;  %v3387_v61 = vld [vmem:[%s9500_s4 + $0x50] sm:$0xff]  ;;  %v3268_v62 = vld [vmem:[%s9526_s1 + $0x48] sm:$0xff] }
 0x5bb   :  { %3013 = vmatprep.subr.mxu1 %v5626_v0  ;;  %3146 = vmatprep.subr.mxu0 %v5662_v1  ;;  %v3386_v63 = vld [vmem:[%s9500_s4 + $0x48] sm:$0xff]  ;;  %v3267_v0 = vld [vmem:[%s9526_s1 + $0x40] sm:$0xff] }
 0x5bc   :  { %3014 = vmatpush1.msra.mxu1 %v5625_v2  ;;  %3147 = vmatpush1.msra.mxu0 %v5661_v3  ;;  %v3385_v1 = vld [vmem:[%s9500_s4 + $0x40] sm:$0xff]  ;;  %v3266_v2 = vld [vmem:[%s9526_s1 + $0x38] sm:$0xff] }
 0x5bd   :  { %3015 = vmatprep.subr.mxu1 %v5624_v6  ;;  %3148 = vmatprep.subr.mxu0 %v5660_v7  ;;  %v3384_v3 = vld [vmem:[%s9500_s4 + $0x38] sm:$0xff]  ;;  %v3265_v6 = vld [vmem:[%s9526_s1 + $0x30] sm:$0xff] }
 0x5be   :  { %2813 = vmatprep.mubr.f32.mxu1 %v6410_v50  ;;  %2936 = vmatprep.mubr.f32.mxu0 %v6410_v50  ;;  %v3383_v7 = vld [vmem:[%s9500_s4 + $0x30] sm:$0xff] }
 0x5bf   :  { %3016 = vmatpush1.msra.mxu1 %v5623_v4  ;;  %3149 = vmatpush1.msra.mxu0 %v5659_v5  ;;  %v3264_v4 = vld [vmem:[%s9526_s1 + $0x28] sm:$0xff] }
 0x5c0   :  { %5574 = vmatmul.mubr.msk.f32.gmra.mxu1 %vm120_vm0, %v5538_v8  ;;  %5605 = vmatmul.mubr.msk.f32.gmra.mxu0 %vm120_vm0, %v5577_v9  ;;  %v3382_v5 = vld [vmem:[%s9500_s4 + $0x28] sm:$0xff]  ;;  %v3263_v8 = vld [vmem:[%s9526_s1 + $0x20] sm:$0xff] }
 0x5c1   :  { %3017 = vmatprep.subr.mxu1 %v5622_v10  ;;  %3150 = vmatprep.subr.mxu0 %v5658_v11  ;;  %v3381_v9 = vld [vmem:[%s9500_s4 + $0x20] sm:$0xff]  ;;  %v3262_v10 = vld [vmem:[%s9526_s1 + $0x18] sm:$0xff] }
 0x5c2   :  { %3018 = vmatpush1.msra.mxu1 %v5621_v12  ;;  %3151 = vmatpush1.msra.mxu0 %v5657_v13  ;;  %v3380_v11 = vld [vmem:[%s9500_s4 + $0x18] sm:$0xff]  ;;  %v3261_v12 = vld [vmem:[%s9526_s1 + $0x10] sm:$0xff] }
 0x5c3   :  { %3019 = vmatprep.subr.mxu1 %v5620_v14  ;;  %3152 = vmatprep.subr.mxu0 %v5656_v15  ;;  %v3379_v13 = vld [vmem:[%s9500_s4 + $0x10] sm:$0xff]  ;;  %v3260_v14 = vld [vmem:[%s9526_s1 + $0x8] sm:$0xff] }
 0x5c4   :  { %2942 = vmatprep.mubr.f32.mxu0 %v6410_v50  ;;  %3020 = vmatpush1.msra.mxu1 %v5619_v16  ;;  %v3378_v15 = vld [vmem:[%s9500_s4 + $0x8] sm:$0xff]  ;;  %v3259_v16 = vld [vmem:[%s9526_s1] sm:$0xff] }
 0x5c5   :  { %3153 = vmatpush1.msra.mxu0 %v5655_v17  ;;  %3021 = vmatprep.subr.mxu1 %v5618_v18  ;;  %v3377_v17 = vld [vmem:[%s9500_s4] sm:$0xff] }
 0x5c6   :  { %5606 = vmatmul.mubr.msk.f32.gmra.mxu0 %vm120_vm0, %v5578_v19  ;;  %3154 = vmatprep.subr.mxu0 %v5654_v20  ;;  %v3279_v18 = vld [vmem:[%s9526_s1 + $0xa0] sm:$0xff]  ;;  %v3278_v20 = vld [vmem:[%s9526_s1 + $0x98] sm:$0xff] }
 0x5c7   :  { %3022 = vmatpush1.msra.mxu1 %v5617_v21  ;;  %3155 = vmatpush1.msra.mxu0 %v5653_v22  ;;  %v3397_v19 = vld [vmem:[%s9500_s4 + $0xa0] sm:$0xff]  ;;  %v3396_v21 = vld [vmem:[%s9500_s4 + $0x98] sm:$0xff]  ;;  %v3277_v22 = vld [vmem:[%s9526_s1 + $0x90] sm:$0xff] }
 0x5c8   :  { %3023 = vmatprep.subr.mxu1 %v5616_v23  ;;  %3156 = vmatprep.subr.mxu0 %v5652_v24  ;;  %v3395_v23 = vld [vmem:[%s9500_s4 + $0x90] sm:$0xff]  ;;  %v3276_v24 = vld [vmem:[%s9526_s1 + $0x88] sm:$0xff] }
 0x5c9   :  { %3024 = vmatpush1.msra.mxu1 %v5615_v27  ;;  %3157 = vmatpush1.msra.mxu0 %v5651_v28  ;;  %v3394_v27 = vld [vmem:[%s9500_s4 + $0x88] sm:$0xff]  ;;  %v3275_v28 = vld [vmem:[%s9526_s1 + $0x80] sm:$0xff] }
 0x5ca   :  { %3025 = vmatprep.subr.mxu1 %v5614_v29  ;;  %3158 = vmatprep.subr.mxu0 %v5650_v30  ;;  %v3393_v29 = vld [vmem:[%s9500_s4 + $0x80] sm:$0xff] }
 0x5cb   :  { %3026 = vmatpush1.msra.mxu1 %v5613_v31  ;;  %3159 = vmatpush1.msra.mxu0 %v5649_v32 }
 0x5cc   :  { %3027 = vmatprep.subr.mxu1 %v5612_v33  ;;  %3160 = vmatprep.subr.mxu0 %v5648_v34 }
 0x5cd   :  { %3028 = vmatpush1.msra.mxu1 %v5611_v35  ;;  %3061 = vmatprep.mubr.f32.mxu1 %v6410_v50 }
 0x5ce   :  { %3161 = vmatpush1.msra.mxu0 %v5647_v36  ;;  %5635 = vmatmul.mubr.msk.f32.vlgmr.msra.gmra.mxu1 %vm120_vm0, %v5607_v37 }
 0x5cf   :  { %3162 = vmatprep.subr.mxu0 %v5646_v38  ;;  %3067 = vmatprep.mubr.f32.mxu1 %v6410_v50  ;;  %v2127_v38 = vld [vmem:[%s9510_s14] sm:$0x1] }
 0x5d0   :  { %3163 = vmatpush1.msra.mxu0 %v5645_v39  ;;  %3198 = vmatprep.mubr.f32.mxu0 %v6410_v50 }
 0x5d1   :  { %3164 = vmatprep.subr.mxu0 %v5644_v40  ;;  %3292 = vmatprep.subr.mxu1 %v6410_v50 }
 0x5d2   :  { %3165 = vmatpush1.msra.mxu0 %v5643_v41  ;;  %5636 = vmatmul.mubr.msk.f32.gmra.mxu1 %vm120_vm0, %v5608_v42 }
 0x5d3   :  { %5667 = vmatmul.mubr.msk.f32.vlgmr.msra.gmra.mxu0 %vm120_vm0, %v5639_v43  ;;  %3073 = vmatprep.mubr.f32.mxu1 %v6410_v50 }
 0x5d4   :  { %3204 = vmatprep.mubr.f32.mxu0 %v6410_v50  ;;  %3398 = vmatprep.subr.mxu0 %v6410_v50 }
 0x5d5   :  { %3293 = vmatpush1.msra.mxu1 %v3274_v49  ;;  %3399 = vmatpush1.msra.mxu0 %v3392_v51 }
 0x5d6   :  { %5637 = vmatmul.mubr.msk.f32.gmra.mxu1 %vm120_vm0, %v5609_v44  ;;  %3294 = vmatprep.subr.mxu1 %v6410_v50 }
 0x5d7   :  { %5668 = vmatmul.mubr.msk.f32.gmra.mxu0 %vm120_vm0, %v5640_v45  ;;  %3079 = vmatprep.mubr.f32.mxu1 %v6410_v50 }
 0x5d8   :  { %3210 = vmatprep.mubr.f32.mxu0 %v6410_v50  ;;  %3400 = vmatprep.subr.mxu0 %v6410_v50 }
 0x5d9   :  { %3295 = vmatpush1.msra.mxu1 %v3273_v52  ;;  %3401 = vmatpush1.msra.mxu0 %v3391_v53 }
 0x5da   :  { %5638 = vmatmul.mubr.msk.f32.gmra.mxu1 %vm120_vm0, %v5610_v46  ;;  %3296 = vmatprep.subr.mxu1 %v6410_v50 }
 0x5db   :  { %5669 = vmatmul.mubr.msk.f32.gmra.mxu0 %vm120_vm0, %v5641_v47  ;;  %3402 = vmatprep.subr.mxu0 %v6410_v50 }
 0x5dc   :  { %3216 = vmatprep.mubr.f32.mxu0 %v6410_v50  ;;  %3297 = vmatpush1.msra.mxu1 %v3272_v54 }
 0x5dd   :  { %3403 = vmatpush1.msra.mxu0 %v3390_v55  ;;  %3298 = vmatprep.subr.mxu1 %v6410_v50 }
 0x5de   :  { %3404 = vmatprep.subr.mxu0 %v6410_v50  ;;  %3299 = vmatpush1.msra.mxu1 %v3271_v56 }
 0x5df   :  { %5670 = vmatmul.mubr.msk.f32.gmra.mxu0 %vm120_vm0, %v5642_v48  ;;  %3300 = vmatprep.subr.mxu1 %v6410_v50 }
 0x5e0   :  { %3405 = vmatpush1.msra.mxu0 %v3389_v57  ;;  %3301 = vmatpush1.msra.mxu1 %v3270_v58 }
 0x5e1   :  { %3406 = vmatprep.subr.mxu0 %v6410_v50  ;;  %3302 = vmatprep.subr.mxu1 %v6410_v50 }
 0x5e2   :  { %3407 = vmatpush1.msra.mxu0 %v3388_v59  ;;  %3303 = vmatpush1.msra.mxu1 %v3269_v60 }
 0x5e3   :  { %3408 = vmatprep.subr.mxu0 %v6410_v50  ;;  %3304 = vmatprep.subr.mxu1 %v6410_v50 }
 0x5e4   :  { %3409 = vmatpush1.msra.mxu0 %v3387_v61  ;;  %3305 = vmatpush1.msra.mxu1 %v3268_v62 }
 0x5e5   :  { %3410 = vmatprep.subr.mxu0 %v6410_v50  ;;  %3306 = vmatprep.subr.mxu1 %v6410_v50 }
 0x5e6   :  { %3411 = vmatpush1.msra.mxu0 %v3386_v63  ;;  %3307 = vmatpush1.msra.mxu1 %v3267_v0 }
 0x5e7   :  { %3412 = vmatprep.subr.mxu0 %v6410_v50  ;;  %3308 = vmatprep.subr.mxu1 %v6410_v50 }
 0x5e8   :  { %3413 = vmatpush1.msra.mxu0 %v3385_v1  ;;  %3309 = vmatpush1.msra.mxu1 %v3266_v2 }
 0x5e9   :  { %3414 = vmatprep.subr.mxu0 %v6410_v50  ;;  %3310 = vmatprep.subr.mxu1 %v6410_v50 }
 0x5ea   :  { %3415 = vmatpush1.msra.mxu0 %v3384_v3  ;;  %3311 = vmatpush1.msra.mxu1 %v3265_v6 }
 0x5eb   :  { %3416 = vmatprep.subr.mxu0 %v6410_v50  ;;  %3312 = vmatprep.subr.mxu1 %v6410_v50 }
 0x5ec   :  { %3417 = vmatpush1.msra.mxu0 %v3383_v7  ;;  %3313 = vmatpush1.msra.mxu1 %v3264_v4 }
 0x5ed   :  { %3418 = vmatprep.subr.mxu0 %v6410_v50  ;;  %3314 = vmatprep.subr.mxu1 %v6410_v50 }
 0x5ee   :  { %3419 = vmatpush1.msra.mxu0 %v3382_v5  ;;  %3315 = vmatpush1.msra.mxu1 %v3263_v8 }
 0x5ef   :  { %3420 = vmatprep.subr.mxu0 %v6410_v50  ;;  %3316 = vmatprep.subr.mxu1 %v6410_v50 }
 0x5f0   :  { %3421 = vmatpush1.msra.mxu0 %v3381_v9  ;;  %3317 = vmatpush1.msra.mxu1 %v3262_v10 }
 0x5f1   :  { %3422 = vmatprep.subr.mxu0 %v6410_v50  ;;  %3318 = vmatprep.subr.mxu1 %v6410_v50 }
 0x5f2   :  { %3423 = vmatpush1.msra.mxu0 %v3380_v11  ;;  %3319 = vmatpush1.msra.mxu1 %v3261_v12  ;;  %v3231_v12 = vld [vmem:[%s9527_s22] sm:$0x3] }
 0x5f3   :  { %3424 = vmatprep.subr.mxu0 %v6410_v50  ;;  %3320 = vmatprep.subr.mxu1 %v6410_v50 }
 0x5f4   :  { %3425 = vmatpush1.msra.mxu0 %v3379_v13  ;;  %3321 = vmatpush1.msra.mxu1 %v3260_v14 }
 0x5f5   :  { %3426 = vmatprep.subr.mxu0 %v6410_v50  ;;  %3322 = vmatprep.subr.mxu1 %v6410_v50 }
 0x5f6   :  { %3427 = vmatpush1.msra.mxu0 %v3378_v15  ;;  %3323 = vmatpush1.msra.mxu1 %v3259_v16 }
 0x5f7   :  { %3428 = vmatprep.subr.mxu0 %v6410_v50  ;;  %3346 = vmatprep.subr.mxu1 %v6410_v50 }
 0x5f8   :  { %3429 = vmatpush1.msra.mxu0 %v3377_v17  ;;  %3347 = vmatpush2.msra.mxu1 %v3279_v18 }
 0x5f9   :  { %3452 = vmatprep.subr.mxu0 %v6410_v50  ;;  %3348 = vmatprep.subr.mxu1 %v6410_v50 }
 0x5fa   :  { %3453 = vmatpush2.msra.mxu0 %v3397_v19  ;;  %3349 = vmatpush2.msra.mxu1 %v3278_v20  ;;  %v3236_v19 = vrot.slane %v3231_v12, %v7141_v25  ;;  %v3240_v20 = vrot.slane %v3231_v12, %v7143_v26 }
 0x5fb   :  { %3454 = vmatprep.subr.mxu0 %v6410_v50  ;;  %3350 = vmatprep.subr.mxu1 %v6410_v50 }
 0x5fc   :  { %3455 = vmatpush2.msra.mxu0 %v3396_v21  ;;  %3351 = vmatpush2.msra.mxu1 %v3277_v22 }
 0x5fd   :  { %3456 = vmatprep.subr.mxu0 %v6410_v50  ;;  %3352 = vmatprep.subr.mxu1 %v6410_v50 }
 0x5fe   :  { %3457 = vmatpush2.msra.mxu0 %v3395_v23  ;;  %3353 = vmatpush2.msra.mxu1 %v3276_v24 }
 0x5ff   :  { %3458 = vmatprep.subr.mxu0 %v6410_v50  ;;  %3354 = vmatprep.subr.mxu1 %v6410_v50 }
 0x600   :  { %3459 = vmatpush2.msra.mxu0 %v3394_v27  ;;  %3355 = vmatpush2.msra.mxu1 %v3275_v28 }
 0x601   :  { %3460 = vmatprep.subr.mxu0 %v6410_v50 }
 0x602   :  { %3461 = vmatpush2.msra.mxu0 %v3393_v29 }
 0x627   :  { %v2209_v30 = vpop.f32.mrf.mxu1  ;;  %v2295_v31 = vpop.f32.mrf.mxu0 }
 0x628   :  { %v2213_v39 = vadd.f32 %v2209_v30, %v2127_v38 }
 0x629   :  { %v6083_v32 = vpop.f32.mrf.mxu1  ;;  %v6106_v33 = vpop.f32.mrf.mxu0 }
 0x62a   :  { %v2299_v40 = vadd.f32 %v2295_v31, %v2213_v39 }
 0x63c   :  { %v2381_v34 = vpop.f32.mrf.mxu1  ;;  %v2467_v35 = vpop.f32.mrf.mxu0 }
 0x63d   :  { %v2385_v41 = vadd.f32 %v2381_v34, %v2299_v40 }
 0x63e   :  { %v6129_v36 = vpop.f32.mrf.mxu1  ;;  %v6152_v37 = vpop.f32.mrf.mxu0 }
 0x63f   :  { %v2471_v42 = vadd.f32 %v2467_v35, %v2385_v41 }
 0x651   :  { %v2553_v43 = vpop.f32.mrf.mxu1 }
 0x652   :  { %v2557_v44 = vadd.f32 %v2553_v43, %v2471_v42 }
 0x653   :  { %v6175_v45 = vpop.f32.mrf.mxu1 }
 0x654   :  { %v2558_v46 = vmax.f32 %v2557_v44, 0.0 }
 0x656   :  { %2560 = vst.msk [vmem:[#allocation4] sm:$0x1] %vm2559_vm12, %v2558_v46  ;;  %v2696_v47 = vpop.f32.mrf.mxu0 }
 0x658   :  { %v2698_v48 = vpop.f32.mrf.mxu0 }
 0x662   :  { %v2702_v49 = vpop.f32.mrf.mxu0 }
 0x664   :  { %v2704_v51 = vpop.f32.mrf.mxu0 }
 0x667   :  { %v2708_v52 = vpop.f32.mrf.mxu0 }
 0x669   :  { %v2710_v53 = vpop.f32.mrf.mxu0 }
 0x66c   :  { %v2714_v54 = vpop.f32.mrf.mxu0 }
 0x66e   :  { %v2797_v55 = vpop.f32.mrf.mxu1  ;;  %v2716_v56 = vpop.f32.mrf.mxu0 }
 0x66f   :  { %v2798_v5 = vadd.f32 %v2797_v55, %v2696_v47 }
 0x670   :  { %v2799_v57 = vpop.f32.mrf.mxu1 }
 0x671   :  { %v2800_v9 = vadd.f32 %v2799_v57, %v2698_v48 }
 0x674   :  { %v2926_v58 = vpop.f32.mrf.mxu0  ;;  %v2803_v59 = vpop.f32.mrf.mxu1 }
 0x675   :  { %v2949_v10 = vadd.f32 %v2926_v58, %v2798_v5  ;;  %v2804_v14 = vadd.f32 %v2803_v59, %v2702_v49 }
 0x676   :  { %v2928_v60 = vpop.f32.mrf.mxu0  ;;  %v2805_v61 = vpop.f32.mrf.mxu1 }
 0x677   :  { %v2950_v15 = vadd.f32 %v2928_v60, %v2800_v9  ;;  %v2806_v21 = vadd.f32 %v2805_v61, %v2704_v51 }
 0x67a   :  { %v2932_v62 = vpop.f32.mrf.mxu0  ;;  %v2809_v63 = vpop.f32.mrf.mxu1 }
 0x67b   :  { %v2951_v22 = vadd.f32 %v2932_v62, %v2804_v14  ;;  %v2810_v29 = vadd.f32 %v2809_v63, %v2708_v52  ;;  %v3487_v14 = vld [vmem:[%s9501_s5] sm:$0xff] }
 0x67c   :  { %v2934_v0 = vpop.f32.mrf.mxu0  ;;  %v2811_v1 = vpop.f32.mrf.mxu1 }
 0x67d   :  { %v2952_v30 = vadd.f32 %v2934_v0, %v2806_v21  ;;  %v2812_v34 = vadd.f32 %v2811_v1, %v2710_v53 }
 0x680   :  { %v2938_v2 = vpop.f32.mrf.mxu0  ;;  %v2815_v3 = vpop.f32.mrf.mxu1 }
 0x681   :  { %v2953_v37 = vadd.f32 %v2938_v2, %v2810_v29  ;;  %v2816_v42 = vadd.f32 %v2815_v3, %v2714_v54 }
 0x682   :  { %v2940_v6 = vpop.f32.mrf.mxu0  ;;  %v2817_v7 = vpop.f32.mrf.mxu1 }
 0x683   :  { %v2954_v44 = vadd.f32 %v2940_v6, %v2812_v34  ;;  %v2818_v49 = vadd.f32 %v2817_v7, %v2716_v56 }
 0x686   :  { %v2944_v4 = vpop.f32.mrf.mxu0 }
 0x687   :  { %v2955_v51 = vadd.f32 %v2944_v4, %v2816_v42  ;;  %v3573_v42 = vld [vmem:[%s9502_s6] sm:$0xff] }
 0x688   :  { %v2946_v13 = vpop.f32.mrf.mxu0 }
 0x689   :  { %v2956_v61 = vadd.f32 %v2946_v13, %v2818_v49  ;;  %v3679_v49 = vld [vmem:[%s9503_s7 + $0x88] sm:$0xff] }
 0x68e   :  { %v3063_v8 = vpop.f32.mrf.mxu1 }
 0x68f   :  { %v3086_v16 = vadd.f32 %v3063_v8, %v2949_v10 }
 0x690   :  { %v3065_v11 = vpop.f32.mrf.mxu1 }
 0x691   :  { %v3087_v23 = vadd.f32 %v3065_v11, %v2950_v15  ;;  %v5706_v15 = vld [vmem:[%s9503_s7 + $0x158] sm:$0xf] }
 0x692   :  { %v3069_v17 = vpop.f32.mrf.mxu1  ;;  %5707 = vmatprep.subr.msk.mxu0 %vm1003_vm3, %v5706_v15  ;;  %v5687_v15 = vld [vmem:[%s9503_s7 + $0xc0] sm:$0xff] }
 0x693   :  { %v3200_v18 = vpop.f32.mrf.mxu0  ;;  %v3088_v31 = vadd.f32 %v3069_v17, %v2951_v22  ;;  %v5704_v17 = vld [vmem:[%s9503_s7 + $0x148] sm:$0xff] }
 0x694   :  { %v3223_v24 = vadd.f32 %v3200_v18, %v3086_v16  ;;  %v3071_v27 = vpop.f32.mrf.mxu1  ;;  %v5705_v16 = vld [vmem:[%s9503_s7 + $0x150] sm:$0xf]  ;;  %v5703_v18 = vld [vmem:[%s9503_s7 + $0x140] sm:$0xff] }
 0x695   :  { %v3202_v28 = vpop.f32.mrf.mxu0  ;;  %v3089_v38 = vadd.f32 %v3071_v27, %v2952_v30 }
 0x696   :  { %v3224_v32 = vadd.f32 %v3202_v28, %v3087_v23  ;;  %v3075_v33 = vpop.f32.mrf.mxu1  ;;  %v3243_v35 = vadd.f32 %v3236_v19, %v3223_v24 }
 0x697   :  { %v3206_v36 = vpop.f32.mrf.mxu0  ;;  %v3090_v46 = vadd.f32 %v3075_v33, %v2953_v37 }
 0x698   :  { %v3244_v39 = vadd.f32 %v3240_v20, %v3224_v32  ;;  %v3225_v40 = vadd.f32 %v3206_v36, %v3088_v31  ;;  %v3077_v41 = vpop.f32.mrf.mxu1  ;;  %v3251_v52 = vmax.f32 %v3243_v35, 0.0 }
 0x699   :  { %v3208_v43 = vpop.f32.mrf.mxu0  ;;  %v3091_v53 = vadd.f32 %v3077_v41, %v2954_v44  ;;  %v3488_v41 = vld [vmem:[%s9501_s5 + $0x8] sm:$0x3f] }
 0x69a   :  { %v3252_v45 = vmax.f32 %v3244_v39, 0.0  ;;  %v3226_v47 = vadd.f32 %v3208_v43, %v3089_v38  ;;  %v3081_v48 = vpop.f32.mrf.mxu1  ;;  %v3245_v55 = vadd.f32 %v3236_v19, %v3225_v40  ;;  %v3574_v43 = vld [vmem:[%s9502_s6 + $0x8] sm:$0x3f] }
 0x69b   :  { %v3212_v57 = vpop.f32.mrf.mxu0  ;;  %v3092_v63 = vadd.f32 %v3081_v48, %v2955_v51  ;;  %v3683_v44 = vld [vmem:[%s9503_s7 + $0xa8] sm:$0xf]  ;;  %v5702_v48 = vld [vmem:[%s9503_s7 + $0x138] sm:$0xff]  ;;  %v5701_v51 = vld [vmem:[%s9503_s7 + $0x130] sm:$0xff] }
 0x69c   :  { %v3246_v58 = vadd.f32 %v3240_v20, %v3226_v47  ;;  %v3227_v59 = vadd.f32 %v3212_v57, %v3090_v46  ;;  %5671 = vmatprep.mubr.msk.f32.mxu1 %vm786_vm1, %v3252_v45  ;;  %5675 = vmatprep.mubr.msk.f32.mxu0 %vm786_vm1, %v3252_v45  ;;  %v3083_v60 = vpop.f32.mrf.mxu1  ;;  %v3253_v56 = vmax.f32 %v3245_v55, 0.0  ;;  %v3682_v45 = vld [vmem:[%s9503_s7 + $0xa0] sm:$0xf]  ;;  %v3681_v46 = vld [vmem:[%s9503_s7 + $0x98] sm:$0xff]  ;;  %v3680_v47 = vld [vmem:[%s9503_s7 + $0x90] sm:$0xff] }
 0x69d   :  { %v3214_v54 = vpop.f32.mrf.mxu0  ;;  %3357 = vmatmul.mubr.f32.vlgmr.msra.gmra.mxu1 %v3251_v52  ;;  %3463 = vmatmul.mubr.f32.vlgmr.msra.gmra.mxu0 %v3251_v52  ;;  %v3093_v3 = vadd.f32 %v3083_v60, %v2956_v61  ;;  %v3678_v52 = vld [vmem:[%s9503_s7 + $0x80] sm:$0xff]  ;;  %v5700_v55 = vld [vmem:[%s9503_s7 + $0x128] sm:$0xff]  ;;  %v3677_v57 = vld [vmem:[%s9503_s7 + $0x78] sm:$0xff] }
 0x69e   :  { %v3254_v62 = vmax.f32 %v3246_v58, 0.0  ;;  %v3228_v0 = vadd.f32 %v3214_v54, %v3091_v53  ;;  %v3247_v1 = vadd.f32 %v3236_v19, %v3227_v59  ;;  %5708 = vmatpush1.msk.msra.mxu0 %vm1003_vm3, %v5705_v16  ;;  %v5699_v53 = vld [vmem:[%s9503_s7 + $0x120] sm:$0xff]  ;;  %v3676_v58 = vld [vmem:[%s9503_s7 + $0x70] sm:$0xff]  ;;  %v5698_v59 = vld [vmem:[%s9503_s7 + $0x118] sm:$0xff] }
 0x69f   :  { %v3218_v2 = vpop.f32.mrf.mxu0  ;;  %3732 = vmatprep.subr.mxu0 %v5704_v17  ;;  %v3675_v60 = vld [vmem:[%s9503_s7 + $0x68] sm:$0xff]  ;;  %v5697_v54 = vld [vmem:[%s9503_s7 + $0x110] sm:$0xff]  ;;  %v3674_v61 = vld [vmem:[%s9503_s7 + $0x60] sm:$0xff] }
 0x6a0   :  { %v3248_v6 = vadd.f32 %v3240_v20, %v3228_v0  ;;  %v3229_v7 = vadd.f32 %v3218_v2, %v3092_v63  ;;  %5672 = vmatprep.mubr.msk.f32.mxu1 %vm786_vm1, %v3254_v62  ;;  %5676 = vmatprep.mubr.msk.f32.mxu0 %vm786_vm1, %v3254_v62  ;;  %v3255_v9 = vmax.f32 %v3247_v1, 0.0  ;;  %v5696_v62 = vld [vmem:[%s9503_s7 + $0x108] sm:$0xff]  ;;  %v3673_v63 = vld [vmem:[%s9503_s7 + $0x58] sm:$0xff]  ;;  %v5695_v0 = vld [vmem:[%s9503_s7 + $0x100] sm:$0xff] }
 0x6a1   :  { %v3220_v4 = vpop.f32.mrf.mxu0  ;;  %3362 = vmatmul.mubr.f32.gmra.mxu1 %v3253_v56  ;;  %3468 = vmatmul.mubr.f32.gmra.mxu0 %v3253_v56  ;;  %v3672_v56 = vld [vmem:[%s9503_s7 + $0x50] sm:$0xff]  ;;  %v5694_v1 = vld [vmem:[%s9503_s7 + $0xf8] sm:$0xff]  ;;  %v3671_v2 = vld [vmem:[%s9503_s7 + $0x48] sm:$0xff] }
 0x6a2   :  { %v3256_v5 = vmax.f32 %v3248_v6, 0.0  ;;  %v3230_v8 = vadd.f32 %v3220_v4, %v3093_v3  ;;  %v3249_v10 = vadd.f32 %v3236_v19, %v3229_v7  ;;  %3733 = vmatpush1.msra.mxu0 %v5703_v18  ;;  %v5693_v3 = vld [vmem:[%s9503_s7 + $0xf0] sm:$0xff]  ;;  %v3670_v6 = vld [vmem:[%s9503_s7 + $0x40] sm:$0xff]  ;;  %v5692_v7 = vld [vmem:[%s9503_s7 + $0xe8] sm:$0xff] }
 0x6a3   :  { %3734 = vmatprep.subr.mxu0 %v5702_v48  ;;  %v3669_v4 = vld [vmem:[%s9503_s7 + $0x38] sm:$0xff]  ;;  %v3664_v16 = vld [vmem:[%s9503_s7 + $0x10] sm:$0xff]  ;;  %v3663_v18 = vld [vmem:[%s9503_s7 + $0x8] sm:$0xff] }
 0x6a4   :  { %v3250_v11 = vadd.f32 %v3240_v20, %v3230_v8  ;;  %5673 = vmatprep.mubr.msk.f32.mxu1 %vm786_vm1, %v3256_v5  ;;  %5677 = vmatprep.mubr.msk.f32.mxu0 %vm786_vm1, %v3256_v5  ;;  %v3257_v13 = vmax.f32 %v3249_v10, 0.0  ;;  %v5691_v5 = vld [vmem:[%s9503_s7 + $0xe0] sm:$0xff]  ;;  %v3668_v8 = vld [vmem:[%s9503_s7 + $0x30] sm:$0xff]  ;;  %v3667_v10 = vld [vmem:[%s9503_s7 + $0x28] sm:$0xff] }
 0x6a5   :  { %3367 = vmatmul.mubr.f32.gmra.mxu1 %v3255_v9  ;;  %3473 = vmatmul.mubr.f32.gmra.mxu0 %v3255_v9  ;;  %v5690_v9 = vld [vmem:[%s9503_s7 + $0xd8] sm:$0xff]  ;;  %v5755_v48 = vld [vmem:[%s9503_s7 + $0x280] sm:$0xff] }
 0x6a6   :  { %v3258_v12 = vmax.f32 %v3250_v11, 0.0  ;;  %3735 = vmatpush1.msra.mxu0 %v5701_v51  ;;  %v5689_v11 = vld [vmem:[%s9503_s7 + $0xd0] sm:$0xff]  ;;  %v5686_v17 = vld [vmem:[%s9503_s7 + $0xb8] sm:$0xff] }
 0x6a7   :  { %3736 = vmatprep.subr.mxu0 %v5700_v55  ;;  %v5754_v51 = vld [vmem:[%s9503_s7 + $0x278] sm:$0xff]  ;;  %v5753_v55 = vld [vmem:[%s9503_s7 + $0x270] sm:$0xff] }
 0x6a8   :  { %5674 = vmatprep.mubr.msk.f32.mxu1 %vm786_vm1, %v3258_v12  ;;  %5678 = vmatprep.mubr.msk.f32.mxu0 %vm786_vm1, %v3258_v12  ;;  %v3666_v12 = vld [vmem:[%s9503_s7 + $0x20] sm:$0xff] }
 0x6a9   :  { %3372 = vmatmul.mubr.f32.gmra.mxu1 %v3257_v13  ;;  %3478 = vmatmul.mubr.f32.gmra.mxu0 %v3257_v13  ;;  %v5688_v13 = vld [vmem:[%s9503_s7 + $0xc8] sm:$0xff] }
 0x6aa   :  { %3784 = vmatprep.mubr.f32.mxu0 %v6410_v50  ;;  %6184 = vmatprep.mubr.msk.f32.mxu1 %vm996_vm2, %v3487_v14  ;;  %v3665_v14 = vld [vmem:[%s9503_s7 + $0x18] sm:$0xff] }
 0x6ab   :  { %3737 = vmatpush1.msra.mxu0 %v5699_v53  ;;  %v5752_v53 = vld [vmem:[%s9503_s7 + $0x268] sm:$0xff] }
 0x6ac   :  { %3738 = vmatprep.subr.mxu0 %v5698_v59  ;;  %v5751_v59 = vld [vmem:[%s9503_s7 + $0x260] sm:$0xff] }
 0x6ad   :  { %3739 = vmatpush1.msra.mxu0 %v5697_v54  ;;  %v5750_v54 = vld [vmem:[%s9503_s7 + $0x258] sm:$0xff] }
 0x6ae   :  { %3740 = vmatprep.subr.mxu0 %v5696_v62  ;;  %v5749_v62 = vld [vmem:[%s9503_s7 + $0x250] sm:$0xff] }
 0x6af   :  { %3741 = vmatpush1.msra.mxu0 %v5695_v0  ;;  %v5748_v0 = vld [vmem:[%s9503_s7 + $0x248] sm:$0xff] }
 0x6b0   :  { %3742 = vmatprep.subr.mxu0 %v5694_v1  ;;  %v5747_v1 = vld [vmem:[%s9503_s7 + $0x240] sm:$0xff] }
 0x6b1   :  { %3743 = vmatpush1.msra.mxu0 %v5693_v3  ;;  %v5746_v3 = vld [vmem:[%s9503_s7 + $0x238] sm:$0xff] }
 0x6b2   :  { %3744 = vmatprep.subr.mxu0 %v5692_v7  ;;  %v5745_v7 = vld [vmem:[%s9503_s7 + $0x230] sm:$0xff] }
 0x6b3   :  { %3745 = vmatpush1.msra.mxu0 %v5691_v5  ;;  %v5744_v5 = vld [vmem:[%s9503_s7 + $0x228] sm:$0xff] }
 0x6b4   :  { %3746 = vmatprep.subr.mxu0 %v5690_v9  ;;  %v5743_v9 = vld [vmem:[%s9503_s7 + $0x220] sm:$0xff] }
 0x6b5   :  { %3747 = vmatpush1.msra.mxu0 %v5689_v11  ;;  %v5742_v11 = vld [vmem:[%s9503_s7 + $0x218] sm:$0xff] }
 0x6b6   :  { %3748 = vmatprep.subr.mxu0 %v5688_v13  ;;  %v5741_v13 = vld [vmem:[%s9503_s7 + $0x210] sm:$0xff] }
 0x6b7   :  { %3749 = vmatpush1.msra.mxu0 %v5687_v15 }
 0x6b8   :  { %3750 = vmatprep.subr.mxu0 %v5686_v17  ;;  %v5787_v17 = vld [vmem:[%s9503_s7 + $0x360] sm:$0xf] }
 0x75d   :  { %v3358_v19 = vpop.f32.mrf.mxu1  ;;  %v3464_v20 = vpop.f32.mrf.mxu0 }
 0x75e   :  { %v3483_v40 = vmax.f32 %v3358_v19, %v3464_v20  ;;  %v5685_v19 = vld [vmem:[%s9503_s7 + $0xb0] sm:$0xff]  ;;  %v3662_v20 = vld [vmem:[%s9503_s7] sm:$0xff] }
 0x75f   :  { %v3360_v21 = vpop.f32.mrf.mxu1  ;;  %v3466_v22 = vpop.f32.mrf.mxu0  ;;  %3751 = vmatpush1.msra.mxu0 %v5685_v19  ;;  %v5785_v19 = vld [vmem:[%s9503_s7 + $0x350] sm:$0xff] }
 0x760   :  { %v5736_v21 = vld [vmem:[%s9503_s7 + $0x208] sm:$0xf]  ;;  %v5762_v22 = vld [vmem:[%s9503_s7 + $0x2b8] sm:$0xf] }
 0x761   :  { %v3363_v23 = vpop.f32.mrf.mxu1  ;;  %v3469_v24 = vpop.f32.mrf.mxu0  ;;  %5737 = vmatprep.subr.msk.mxu0 %vm1003_vm3, %v5736_v21 }
 0x762   :  { %v3484_v39 = vmax.f32 %v3363_v23, %v3469_v24 }
 0x763   :  { %v3365_v27 = vpop.f32.mrf.mxu1  ;;  %v3471_v28 = vpop.f32.mrf.mxu0 }
 0x765   :  { %v3368_v29 = vpop.f32.mrf.mxu1  ;;  %v3474_v30 = vpop.f32.mrf.mxu0 }
 0x766   :  { %v3485_v38 = vmax.f32 %v3368_v29, %v3474_v30 }
 0x767   :  { %v3370_v31 = vpop.f32.mrf.mxu1  ;;  %v3476_v32 = vpop.f32.mrf.mxu0 }
 0x768   :  { %v5735_v31 = vld [vmem:[%s9503_s7 + $0x200] sm:$0xf]  ;;  %v5761_v32 = vld [vmem:[%s9503_s7 + $0x2b0] sm:$0xf] }
 0x769   :  { %v3373_v33 = vpop.f32.mrf.mxu1  ;;  %v3479_v34 = vpop.f32.mrf.mxu0 }
 0x76a   :  { %v3486_v35 = vmax.f32 %v3373_v33, %v3479_v34  ;;  %v5734_v33 = vld [vmem:[%s9503_s7 + $0x1f8] sm:$0xff] }
 0x76b   :  { %v3375_v36 = vpop.f32.mrf.mxu1  ;;  %v3481_v37 = vpop.f32.mrf.mxu0 }
 0x76c   :  { %6176 = vmatprep.subr.msk.mxu1 %vm1003_vm3, %v3486_v35  ;;  %v5760_v36 = vld [vmem:[%s9503_s7 + $0x2a8] sm:$0xff]  ;;  %v5733_v37 = vld [vmem:[%s9503_s7 + $0x1f0] sm:$0xff] }
 0x76d   :  { %6177 = vmatpush3.msk.msra.mxu1 %vm1003_vm3, %v3486_v35 }
 0x76e   :  { %6178 = vmatprep.subr.mxu1 %v3485_v38 }
 0x76f   :  { %6179 = vmatpush3.msra.mxu1 %v3485_v38 }
 0x770   :  { %6180 = vmatprep.subr.mxu1 %v3484_v39 }
 0x771   :  { %6181 = vmatpush3.msra.mxu1 %v3484_v39 }
 0x772   :  { %6182 = vmatprep.subr.mxu1 %v3483_v40 }
 0x773   :  { %6183 = vmatpush3.msra.mxu1 %v3483_v40 }
 0x774   :  { %6187 = vmatprep.subr.msk.mxu1 %vm1003_vm3, %v3486_v35  ;;  %6185 = vmatmul.mubr.msk.f32.vlgmr.msra.gmra.mxu1 %vm996_vm2, %v3488_v41  ;;  %v5731_v41 = vld [vmem:[%s9503_s7 + $0x1e0] sm:$0xff] }
 0x775   :  { %6188 = vmatpush3.msk.msra.mxu1 %vm1003_vm3, %v3486_v35  ;;  %6195 = vmatprep.mubr.msk.f32.mxu1 %vm996_vm2, %v3573_v42  ;;  %v5757_v42 = vld [vmem:[%s9503_s7 + $0x290] sm:$0xff] }
 0x776   :  { %6189 = vmatprep.subr.mxu1 %v3485_v38 }
 0x777   :  { %6190 = vmatpush3.msra.mxu1 %v3485_v38  ;;  %v5759_v38 = vld [vmem:[%s9503_s7 + $0x2a0] sm:$0xff] }
 0x778   :  { %6191 = vmatprep.subr.mxu1 %v3484_v39 }
 0x779   :  { %6192 = vmatpush3.msra.mxu1 %v3484_v39  ;;  %v5732_v39 = vld [vmem:[%s9503_s7 + $0x1e8] sm:$0xff] }
 0x77a   :  { %6193 = vmatprep.subr.mxu1 %v3483_v40 }
 0x77b   :  { %6194 = vmatpush3.msra.mxu1 %v3483_v40  ;;  %v5758_v40 = vld [vmem:[%s9503_s7 + $0x298] sm:$0xff] }
 0x77c   :  { %6196 = vmatmul.mubr.msk.f32.vlgmr.msra.gmra.mxu1 %vm996_vm2, %v3574_v43  ;;  %5711 = vmatprep.subr.msk.mxu1 %vm1003_vm3, %v3683_v44  ;;  %v5730_v43 = vld [vmem:[%s9503_s7 + $0x1d8] sm:$0xff] }
 0x77d   :  { %5712 = vmatpush1.msk.msra.mxu1 %vm1003_vm3, %v3682_v45  ;;  %3873 = vmatprep.mubr.f32.mxu1 %v6410_v50 }
 0x77e   :  { %3821 = vmatprep.subr.mxu1 %v3681_v46  ;;  %v5756_v46 = vld [vmem:[%s9503_s7 + $0x288] sm:$0xff] }
 0x77f   :  { %3822 = vmatpush1.msra.mxu1 %v3680_v47  ;;  %v5729_v47 = vld [vmem:[%s9503_s7 + $0x1d0] sm:$0xff] }
 0x780   :  { %3823 = vmatprep.subr.mxu1 %v3679_v49  ;;  %v5728_v49 = vld [vmem:[%s9503_s7 + $0x1c8] sm:$0xff] }
 0x781   :  { %3824 = vmatpush1.msra.mxu1 %v3678_v52  ;;  %v5727_v52 = vld [vmem:[%s9503_s7 + $0x1c0] sm:$0xff] }
 0x782   :  { %3825 = vmatprep.subr.mxu1 %v3677_v57  ;;  %v5726_v57 = vld [vmem:[%s9503_s7 + $0x1b8] sm:$0xff] }
 0x783   :  { %3826 = vmatpush1.msra.mxu1 %v3676_v58  ;;  %v5725_v58 = vld [vmem:[%s9503_s7 + $0x1b0] sm:$0xff] }
 0x784   :  { %3827 = vmatprep.subr.mxu1 %v3675_v60  ;;  %v5724_v60 = vld [vmem:[%s9503_s7 + $0x1a8] sm:$0xff] }
 0x785   :  { %3828 = vmatpush1.msra.mxu1 %v3674_v61  ;;  %v5723_v61 = vld [vmem:[%s9503_s7 + $0x1a0] sm:$0xff] }
 0x786   :  { %3829 = vmatprep.subr.mxu1 %v3673_v63  ;;  %v5722_v63 = vld [vmem:[%s9503_s7 + $0x198] sm:$0xff] }
 0x787   :  { %3830 = vmatpush1.msra.mxu1 %v3672_v56  ;;  %v5721_v56 = vld [vmem:[%s9503_s7 + $0x190] sm:$0xff] }
 0x788   :  { %3831 = vmatprep.subr.mxu1 %v3671_v2  ;;  %v5720_v2 = vld [vmem:[%s9503_s7 + $0x188] sm:$0xff] }
 0x789   :  { %3832 = vmatpush1.msra.mxu1 %v3670_v6  ;;  %v5719_v6 = vld [vmem:[%s9503_s7 + $0x180] sm:$0xff] }
 0x78a   :  { %3833 = vmatprep.subr.mxu1 %v3669_v4  ;;  %v5718_v4 = vld [vmem:[%s9503_s7 + $0x178] sm:$0xff] }
 0x78b   :  { %3834 = vmatpush1.msra.mxu1 %v3668_v8  ;;  %v5717_v8 = vld [vmem:[%s9503_s7 + $0x170] sm:$0xff] }
 0x78c   :  { %3835 = vmatprep.subr.mxu1 %v3667_v10  ;;  %v5716_v10 = vld [vmem:[%s9503_s7 + $0x168] sm:$0xff] }
 0x78d   :  { %3836 = vmatpush1.msra.mxu1 %v3666_v12  ;;  %v5715_v12 = vld [vmem:[%s9503_s7 + $0x160] sm:$0xff] }
 0x78e   :  { %3837 = vmatprep.subr.mxu1 %v3665_v14  ;;  %v5788_v14 = vld [vmem:[%s9503_s7 + $0x368] sm:$0xf] }
 0x78f   :  { %3838 = vmatpush1.msra.mxu1 %v3664_v16 }
 0x790   :  { %3839 = vmatprep.subr.mxu1 %v3663_v18  ;;  %v5786_v18 = vld [vmem:[%s9503_s7 + $0x358] sm:$0xff] }
 0x791   :  { %3840 = vmatpush1.msra.mxu1 %v3662_v20  ;;  %v5784_v20 = vld [vmem:[%s9503_s7 + $0x348] sm:$0xff] }
 0x792   :  { %5763 = vmatprep.subr.msk.mxu1 %vm1003_vm3, %v5762_v22  ;;  %v5783_v22 = vld [vmem:[%s9503_s7 + $0x340] sm:$0xff] }
 0x834   :  { %v6186_v23 = vpop.f32.mrf.mxu1 }
 0x836   :  { %v3564_v24 = vpop.f32.mrf.mxu1 }
 0x83c   :  { %v6197_v27 = vpop.f32.mrf.mxu1 }
 0x83d   :  { %v3657_v28 = vmax.f32 %v6186_v23, %v6197_v27  ;;  %v5781_v27 = vld [vmem:[%s9503_s7 + $0x330] sm:$0xff] }
 0x83e   :  { %v3647_v29 = vpop.f32.mrf.mxu1 }
 0x83f   :  { %3659 = vst.msk [vmem:[#allocation2 + $0x8] sm:$0x3f] %vm1169_vm4, %v3657_v28  ;;  %v3656_v30 = vmax.f32 %v3564_v24, %v3647_v29  ;;  %v5782_v24 = vld [vmem:[%s9503_s7 + $0x338] sm:$0xff]  ;;  %v5780_v28 = vld [vmem:[%s9503_s7 + $0x328] sm:$0xff]  ;;  %v5779_v29 = vld [vmem:[%s9503_s7 + $0x320] sm:$0xff] }
 0x841   :  { %3658 = vst.msk [vmem:[#allocation2] sm:$0xff] %vm1167_vm5, %v3656_v30  ;;  %v5778_v30 = vld [vmem:[%s9503_s7 + $0x318] sm:$0xff] }
 0x846   :  { %v3685_v44 = vld [vmem:[#allocation2 + $0x9] sm:$0x3]  ;;  %v4004_v21 = vld [vmem:[#allocation2 + $0xb] sm:$0x3] }
 0x847   :  { %v3661_v45 = vld [vmem:[#allocation2 + $0x8] sm:$0x3]  ;;  %v3887_v23 = vld [vmem:[#allocation2 + $0xa] sm:$0x3] }
 0x848   :  { %v3684_v34 = vld [vmem:[#allocation2 + $0x1] sm:$0xff] }
 0x849   :  { %v3660_v35 = vld [vmem:[#allocation2] sm:$0xff]  ;;  %5709 = vmatmul.mubr.msk.f32.vlgmr.msra.gmra.mxu0 %vm1167_vm5, %v3684_v34  ;;  %v5774_v34 = vld [vmem:[%s9503_s7 + $0x2f8] sm:$0xff] }
 0x84a   :  { %5713 = vmatmul.mubr.msk.f32.vlgmr.msra.gmra.mxu1 %vm1167_vm5, %v3660_v35  ;;  %5738 = vmatpush1.msk.msra.mxu0 %vm1003_vm3, %v5735_v31  ;;  %v3886_v15 = vld [vmem:[#allocation2 + $0x2] sm:$0xff]  ;;  %v5777_v31 = vld [vmem:[%s9503_s7 + $0x310] sm:$0xff] }
 0x84b   :  { %5764 = vmatpush1.msk.msra.mxu1 %vm1003_vm3, %v5761_v32  ;;  %3934 = vmatprep.subr.mxu0 %v5734_v33  ;;  %v4003_v16 = vld [vmem:[#allocation2 + $0x3] sm:$0xff]  ;;  %v5773_v35 = vld [vmem:[%s9503_s7 + $0x2f0] sm:$0xff] }
 0x84c   :  { %4051 = vmatprep.subr.mxu1 %v5760_v36  ;;  %3935 = vmatpush1.msra.mxu0 %v5733_v37  ;;  %v5776_v32 = vld [vmem:[%s9503_s7 + $0x308] sm:$0xff]  ;;  %v5775_v33 = vld [vmem:[%s9503_s7 + $0x300] sm:$0xff] }
 0x84d   :  { %4052 = vmatpush1.msra.mxu1 %v5759_v38  ;;  %3790 = vmatprep.mubr.f32.mxu0 %v6410_v50  ;;  %v5772_v36 = vld [vmem:[%s9503_s7 + $0x2e8] sm:$0xff]  ;;  %v5771_v37 = vld [vmem:[%s9503_s7 + $0x2e0] sm:$0xff]  ;;  %v5770_v38 = vld [vmem:[%s9503_s7 + $0x2d8] sm:$0xff] }
 0x84e   :  { %3879 = vmatprep.mubr.f32.mxu1 %v6410_v50  ;;  %3936 = vmatprep.subr.mxu0 %v5732_v39  ;;  %v5769_v39 = vld [vmem:[%s9503_s7 + $0x2d0] sm:$0xff] }
 0x84f   :  { %4053 = vmatprep.subr.mxu1 %v5758_v40  ;;  %5710 = vmatmul.mubr.msk.f32.gmra.mxu0 %vm1167_vm5, %v3685_v44  ;;  %v5768_v40 = vld [vmem:[%s9503_s7 + $0x2c8] sm:$0xff]  ;;  %v4272_v44 = vld [vmem:[%s9505_s9 + $0x78] sm:$0xff] }
 0x850   :  { %5714 = vmatmul.mubr.msk.f32.gmra.mxu1 %vm1167_vm5, %v3661_v45  ;;  %3937 = vmatpush1.msra.mxu0 %v5731_v41  ;;  %v5767_v41 = vld [vmem:[%s9503_s7 + $0x2c0] sm:$0xff]  ;;  %v4373_v45 = vld [vmem:[%s9506_s10 + $0x78] sm:$0xff] }
 0x851   :  { %4054 = vmatpush1.msra.mxu1 %v5757_v42  ;;  %3938 = vmatprep.subr.mxu0 %v5730_v43  ;;  %v4120_v42 = vld [vmem:[#allocation2 + $0x4] sm:$0xff]  ;;  %v4121_v43 = vld [vmem:[#allocation2 + $0xc] sm:$0x3] }
 0x852   :  { %4055 = vmatprep.subr.mxu1 %v5756_v46  ;;  %3939 = vmatpush1.msra.mxu0 %v5729_v47  ;;  %v4271_v46 = vld [vmem:[%s9505_s9 + $0x70] sm:$0xff] }
 0x853   :  { %4056 = vmatpush1.msra.mxu1 %v5755_v48  ;;  %3940 = vmatprep.subr.mxu0 %v5728_v49  ;;  %v4372_v47 = vld [vmem:[%s9506_s10 + $0x70] sm:$0xff]  ;;  %v4270_v48 = vld [vmem:[%s9505_s9 + $0x68] sm:$0xff] }
 0x854   :  { %4057 = vmatprep.subr.mxu1 %v5754_v51  ;;  %3941 = vmatpush1.msra.mxu0 %v5727_v52  ;;  %v4371_v49 = vld [vmem:[%s9506_s10 + $0x68] sm:$0xff]  ;;  %v4269_v51 = vld [vmem:[%s9505_s9 + $0x60] sm:$0xff] }
 0x855   :  { %4058 = vmatpush1.msra.mxu1 %v5753_v55  ;;  %3942 = vmatprep.subr.mxu0 %v5726_v57  ;;  %v4370_v52 = vld [vmem:[%s9506_s10 + $0x60] sm:$0xff]  ;;  %v4268_v55 = vld [vmem:[%s9505_s9 + $0x58] sm:$0xff] }
 0x856   :  { %4059 = vmatprep.subr.mxu1 %v5752_v53  ;;  %3943 = vmatpush1.msra.mxu0 %v5725_v58  ;;  %v4369_v57 = vld [vmem:[%s9506_s10 + $0x58] sm:$0xff]  ;;  %v4267_v53 = vld [vmem:[%s9505_s9 + $0x50] sm:$0xff] }
 0x857   :  { %4060 = vmatpush1.msra.mxu1 %v5751_v59  ;;  %3944 = vmatprep.subr.mxu0 %v5724_v60  ;;  %v4368_v58 = vld [vmem:[%s9506_s10 + $0x50] sm:$0xff]  ;;  %v4266_v59 = vld [vmem:[%s9505_s9 + $0x48] sm:$0xff] }
 0x858   :  { %4061 = vmatprep.subr.mxu1 %v5750_v54  ;;  %3945 = vmatpush1.msra.mxu0 %v5723_v61  ;;  %v4367_v60 = vld [vmem:[%s9506_s10 + $0x48] sm:$0xff]  ;;  %v4265_v54 = vld [vmem:[%s9505_s9 + $0x40] sm:$0xff] }
 0x859   :  { %4062 = vmatpush1.msra.mxu1 %v5749_v62  ;;  %3946 = vmatprep.subr.mxu0 %v5722_v63  ;;  %v4366_v61 = vld [vmem:[%s9506_s10 + $0x40] sm:$0xff]  ;;  %v4264_v62 = vld [vmem:[%s9505_s9 + $0x38] sm:$0xff] }
 0x85a   :  { %4063 = vmatprep.subr.mxu1 %v5748_v0  ;;  %3947 = vmatpush1.msra.mxu0 %v5721_v56  ;;  %v4365_v63 = vld [vmem:[%s9506_s10 + $0x38] sm:$0xff]  ;;  %v4263_v0 = vld [vmem:[%s9505_s9 + $0x30] sm:$0xff] }
 0x85b   :  { %4064 = vmatpush1.msra.mxu1 %v5747_v1  ;;  %3948 = vmatprep.subr.mxu0 %v5720_v2  ;;  %v4364_v56 = vld [vmem:[%s9506_s10 + $0x30] sm:$0xff]  ;;  %v4262_v1 = vld [vmem:[%s9505_s9 + $0x28] sm:$0xff] }
 0x85c   :  { %4065 = vmatprep.subr.mxu1 %v5746_v3  ;;  %3949 = vmatpush1.msra.mxu0 %v5719_v6  ;;  %v4363_v2 = vld [vmem:[%s9506_s10 + $0x28] sm:$0xff]  ;;  %v4261_v3 = vld [vmem:[%s9505_s9 + $0x20] sm:$0xff] }
 0x85d   :  { %4066 = vmatpush1.msra.mxu1 %v5745_v7  ;;  %3950 = vmatprep.subr.mxu0 %v5718_v4  ;;  %v4362_v6 = vld [vmem:[%s9506_s10 + $0x20] sm:$0xff]  ;;  %v4260_v7 = vld [vmem:[%s9505_s9 + $0x18] sm:$0xff] }
 0x85e   :  { %4067 = vmatprep.subr.mxu1 %v5744_v5  ;;  %3951 = vmatpush1.msra.mxu0 %v5717_v8  ;;  %v4361_v4 = vld [vmem:[%s9506_s10 + $0x18] sm:$0xff]  ;;  %v4259_v5 = vld [vmem:[%s9505_s9 + $0x10] sm:$0xff] }
 0x85f   :  { %4068 = vmatpush1.msra.mxu1 %v5743_v9  ;;  %3952 = vmatprep.subr.mxu0 %v5716_v10  ;;  %v4360_v8 = vld [vmem:[%s9506_s10 + $0x10] sm:$0xff]  ;;  %v4258_v9 = vld [vmem:[%s9505_s9 + $0x8] sm:$0xff] }
 0x860   :  { %4069 = vmatprep.subr.mxu1 %v5742_v11  ;;  %3953 = vmatpush1.msra.mxu0 %v5715_v12  ;;  %v4359_v10 = vld [vmem:[%s9506_s10 + $0x8] sm:$0xff]  ;;  %v4257_v11 = vld [vmem:[%s9505_s9] sm:$0xff] }
 0x861   :  { %3986 = vmatprep.mubr.f32.mxu0 %v6410_v50  ;;  %4070 = vmatpush1.msra.mxu1 %v5741_v13  ;;  %v4358_v12 = vld [vmem:[%s9506_s10] sm:$0xff]  ;;  %v4276_v13 = vld [vmem:[%s9505_s9 + $0x98] sm:$0xff] }
 0x862   :  { %4103 = vmatprep.mubr.f32.mxu1 %v6410_v50  ;;  %5739 = vmatmul.mubr.msk.f32.vlgmr.msra.gmra.mxu0 %vm1167_vm5, %v3886_v15  ;;  %v4275_v15 = vld [vmem:[%s9505_s9 + $0x90] sm:$0xff] }
 0x863   :  { %5765 = vmatmul.mubr.msk.f32.vlgmr.msra.gmra.mxu1 %vm1167_vm5, %v4003_v16  ;;  %5789 = vmatprep.subr.msk.mxu0 %vm1003_vm3, %v5788_v14  ;;  %v4377_v14 = vld [vmem:[%s9506_s10 + $0x98] sm:$0xff]  ;;  %v4376_v16 = vld [vmem:[%s9506_s10 + $0x90] sm:$0xff] }
 0x864   :  { %3992 = vmatprep.mubr.f32.mxu0 %v6410_v50  ;;  %5790 = vmatpush1.msk.msra.mxu0 %vm1003_vm3, %v5787_v17  ;;  %v4274_v17 = vld [vmem:[%s9505_s9 + $0x88] sm:$0xff] }
 0x865   :  { %4109 = vmatprep.mubr.f32.mxu1 %v6410_v50  ;;  %4168 = vmatprep.subr.mxu0 %v5786_v18  ;;  %v4375_v18 = vld [vmem:[%s9506_s10 + $0x88] sm:$0xff] }
 0x866   :  { %4283 = vmatprep.subr.mxu1 %v6410_v50  ;;  %4169 = vmatpush1.msra.mxu0 %v5785_v19  ;;  %v4273_v19 = vld [vmem:[%s9505_s9 + $0x80] sm:$0xff] }
 0x867   :  { %5766 = vmatmul.mubr.msk.f32.gmra.mxu1 %vm1167_vm5, %v4004_v21  ;;  %5740 = vmatmul.mubr.msk.f32.gmra.mxu0 %vm1167_vm5, %v3887_v23 }
 0x868   :  { %4170 = vmatprep.subr.mxu0 %v5784_v20  ;;  %4220 = vmatprep.mubr.f32.mxu0 %v6410_v50  ;;  %v4374_v20 = vld [vmem:[%s9506_s10 + $0x80] sm:$0xff] }
 0x869   :  { %4171 = vmatpush1.msra.mxu0 %v5783_v22  ;;  %4284 = vmatpush1.msra.mxu1 %v4272_v44 }
 0x86a   :  { %4172 = vmatprep.subr.mxu0 %v5782_v24  ;;  %4285 = vmatprep.subr.mxu1 %v6410_v50 }
 0x86b   :  { %4173 = vmatpush1.msra.mxu0 %v5781_v27  ;;  %4286 = vmatpush1.msra.mxu1 %v4271_v46 }
 0x86c   :  { %4174 = vmatprep.subr.mxu0 %v5780_v28  ;;  %4287 = vmatprep.subr.mxu1 %v6410_v50 }
 0x86d   :  { %4175 = vmatpush1.msra.mxu0 %v5779_v29  ;;  %4288 = vmatpush1.msra.mxu1 %v4270_v48 }
 0x86e   :  { %4176 = vmatprep.subr.mxu0 %v5778_v30  ;;  %4289 = vmatprep.subr.mxu1 %v6410_v50 }
 0x86f   :  { %4177 = vmatpush1.msra.mxu0 %v5777_v31  ;;  %4290 = vmatpush1.msra.mxu1 %v4269_v51 }
 0x870   :  { %4178 = vmatprep.subr.mxu0 %v5776_v32  ;;  %4291 = vmatprep.subr.mxu1 %v6410_v50 }
 0x871   :  { %4179 = vmatpush1.msra.mxu0 %v5775_v33  ;;  %4292 = vmatpush1.msra.mxu1 %v4268_v55 }
 0x872   :  { %4180 = vmatprep.subr.mxu0 %v5774_v34  ;;  %4293 = vmatprep.subr.mxu1 %v6410_v50 }
 0x873   :  { %4181 = vmatpush1.msra.mxu0 %v5773_v35  ;;  %4294 = vmatpush1.msra.mxu1 %v4267_v53 }
 0x874   :  { %4182 = vmatprep.subr.mxu0 %v5772_v36  ;;  %4295 = vmatprep.subr.mxu1 %v6410_v50 }
 0x875   :  { %4183 = vmatpush1.msra.mxu0 %v5771_v37  ;;  %4296 = vmatpush1.msra.mxu1 %v4266_v59 }
 0x876   :  { %4184 = vmatprep.subr.mxu0 %v5770_v38  ;;  %4297 = vmatprep.subr.mxu1 %v6410_v50 }
 0x877   :  { %4185 = vmatpush1.msra.mxu0 %v5769_v39  ;;  %4298 = vmatpush1.msra.mxu1 %v4265_v54 }
 0x878   :  { %4186 = vmatprep.subr.mxu0 %v5768_v40  ;;  %4299 = vmatprep.subr.mxu1 %v6410_v50 }
 0x879   :  { %4187 = vmatpush1.msra.mxu0 %v5767_v41  ;;  %4300 = vmatpush1.msra.mxu1 %v4264_v62  ;;  %v4237_v41 = vld [vmem:[%s9504_s8] sm:$0x3] }
 0x87a   :  { %5791 = vmatmul.mubr.msk.f32.vlgmr.msra.gmra.mxu0 %vm1167_vm5, %v4120_v42  ;;  %4378 = vmatprep.subr.mxu0 %v6410_v50  ;;  %v4242_v48 = vrot.slane %v4237_v41, %v7141_v25  ;;  %v4246_v55 = vrot.slane %v4237_v41, %v7143_v26 }
 0x87b   :  { %4226 = vmatprep.mubr.f32.mxu0 %v6410_v50  ;;  %4379 = vmatpush1.msra.mxu0 %v4373_v45 }
 0x87c   :  { %4380 = vmatprep.subr.mxu0 %v6410_v50  ;;  %4301 = vmatprep.subr.mxu1 %v6410_v50 }
 0x87d   :  { %4381 = vmatpush1.msra.mxu0 %v4372_v47  ;;  %4302 = vmatpush1.msra.mxu1 %v4263_v0 }
 0x87e   :  { %5792 = vmatmul.mubr.msk.f32.gmra.mxu0 %vm1167_vm5, %v4121_v43  ;;  %4382 = vmatprep.subr.mxu0 %v6410_v50 }
 0x87f   :  { %4383 = vmatpush1.msra.mxu0 %v4371_v49  ;;  %4303 = vmatprep.subr.mxu1 %v6410_v50 }
 0x880   :  { %4384 = vmatprep.subr.mxu0 %v6410_v50  ;;  %4304 = vmatpush1.msra.mxu1 %v4262_v1 }
 0x881   :  { %4385 = vmatpush1.msra.mxu0 %v4370_v52  ;;  %4305 = vmatprep.subr.mxu1 %v6410_v50 }
 0x882   :  { %4386 = vmatprep.subr.mxu0 %v6410_v50  ;;  %4306 = vmatpush1.msra.mxu1 %v4261_v3 }
 0x883   :  { %4387 = vmatpush1.msra.mxu0 %v4369_v57  ;;  %4307 = vmatprep.subr.mxu1 %v6410_v50 }
 0x884   :  { %4388 = vmatprep.subr.mxu0 %v6410_v50  ;;  %4308 = vmatpush1.msra.mxu1 %v4260_v7  ;;  %v4619_v7 = vld [vmem:[%s9509_s13 + $0x48] sm:$0xff] }
 0x885   :  { %4389 = vmatpush1.msra.mxu0 %v4368_v58  ;;  %4309 = vmatprep.subr.mxu1 %v6410_v50 }
 0x886   :  { %4390 = vmatprep.subr.mxu0 %v6410_v50  ;;  %4310 = vmatpush1.msra.mxu1 %v4259_v5  ;;  %v4617_v5 = vld [vmem:[%s9509_s13 + $0x38] sm:$0xff] }
 0x887   :  { %4391 = vmatpush1.msra.mxu0 %v4367_v60  ;;  %4311 = vmatprep.subr.mxu1 %v6410_v50 }
 0x888   :  { %4392 = vmatprep.subr.mxu0 %v6410_v50  ;;  %4312 = vmatpush1.msra.mxu1 %v4258_v9 }
 0x889   :  { %4393 = vmatpush1.msra.mxu0 %v4366_v61  ;;  %4313 = vmatprep.subr.mxu1 %v6410_v50 }
 0x88a   :  { %4394 = vmatprep.subr.mxu0 %v6410_v50  ;;  %4314 = vmatpush1.msra.mxu1 %v4257_v11 }
 0x88b   :  { %4395 = vmatpush1.msra.mxu0 %v4365_v63  ;;  %4339 = vmatprep.subr.mxu1 %v6410_v50 }
 0x88c   :  { %4396 = vmatprep.subr.mxu0 %v6410_v50  ;;  %4340 = vmatpush2.msra.mxu1 %v4276_v13 }
 0x88d   :  { %4397 = vmatpush1.msra.mxu0 %v4364_v56  ;;  %4341 = vmatprep.subr.mxu1 %v6410_v50 }
 0x88e   :  { %4398 = vmatprep.subr.mxu0 %v6410_v50  ;;  %4342 = vmatpush2.msra.mxu1 %v4275_v15 }
 0x88f   :  { %4399 = vmatpush1.msra.mxu0 %v4363_v2  ;;  %4343 = vmatprep.subr.mxu1 %v6410_v50 }
 0x890   :  { %4400 = vmatprep.subr.mxu0 %v6410_v50  ;;  %4344 = vmatpush2.msra.mxu1 %v4274_v17 }
 0x891   :  { %4401 = vmatpush1.msra.mxu0 %v4362_v6  ;;  %4345 = vmatprep.subr.mxu1 %v6410_v50 }
 0x892   :  { %4402 = vmatprep.subr.mxu0 %v6410_v50  ;;  %4346 = vmatpush2.msra.mxu1 %v4273_v19  ;;  %v4532_v19 = vld [vmem:[%s9508_s12] sm:$0x1f]  ;;  %s5236_s12 = sshll.u32 %s6412_s20, 4  ;;  %s5237_s12 = int_to_ptr.vmem [resolvable:$true] %s5236_s12 }
 0x893   :  { %4403 = vmatpush1.msra.mxu0 %v4361_v4  ;;  %6198 = vmatprep.subr.mxu1 %v6410_v50  ;;  %v4618_v4 = vld [vmem:[%s9509_s13 + $0x40] sm:$0xff]  ;;  %p6393_p1 = scmp.lt.s32.totalorder %s5237_s12, %s5237_s12 }
 0x894   :  { %4404 = vmatprep.subr.mxu0 %v6410_v50 }
 0x895   :  { %4405 = vmatpush1.msra.mxu0 %v4360_v8 }
 0x896   :  { %4406 = vmatprep.subr.mxu0 %v6410_v50 }
 0x897   :  { %4407 = vmatpush1.msra.mxu0 %v4359_v10 }
 0x898   :  { %4408 = vmatprep.subr.mxu0 %v6410_v50 }
 0x899   :  { %4409 = vmatpush1.msra.mxu0 %v4358_v12 }
 0x89a   :  { %4434 = vmatprep.subr.mxu0 %v6410_v50 }
 0x89b   :  { %4435 = vmatpush2.msra.mxu0 %v4377_v14 }
 0x89c   :  { %4436 = vmatprep.subr.mxu0 %v6410_v50 }
 0x89d   :  { %4437 = vmatpush2.msra.mxu0 %v4376_v16 }
 0x89e   :  { %4438 = vmatprep.subr.mxu0 %v6410_v50 }
 0x89f   :  { %4439 = vmatpush2.msra.mxu0 %v4375_v18  ;;  %v4455_v18 = vld [vmem:[%s9507_s11] sm:$0x1f] }
 0x8a0   :  { %4440 = vmatprep.subr.mxu0 %v6410_v50 }
 0x8a1   :  { %4441 = vmatpush2.msra.mxu0 %v4374_v20  ;;  %v5811_v20 = vld [vmem:[%s9509_s13 + $0x98] sm:$0xff] }
 0x8a2   :  { %6212 = vmatprep.subr.mxu0 %v6410_v50 }
 0x909   :  { %v3786_v21 = vpop.f32.mrf.mxu0 }
 0x90a   :  { %v3875_v23 = vpop.f32.mrf.mxu1 }
 0x90b   :  { %v3788_v22 = vpop.f32.mrf.mxu0  ;;  %v3876_v34 = vadd.f32 %v3875_v23, %v3786_v21  ;;  %v5810_v21 = vld [vmem:[%s9509_s13 + $0x90] sm:$0xff] }
 0x90c   :  { %v3877_v27 = vpop.f32.mrf.mxu1  ;;  %v4616_v23 = vld [vmem:[%s9509_s13 + $0x30] sm:$0xff] }
 0x90d   :  { %v3878_v36 = vadd.f32 %v3877_v27, %v3788_v22  ;;  %v5809_v22 = vld [vmem:[%s9509_s13 + $0x88] sm:$0xff] }
 0x90e   :  { %v4615_v27 = vld [vmem:[%s9509_s13 + $0x28] sm:$0xff] }
 0x90f   :  { %v3792_v24 = vpop.f32.mrf.mxu0 }
 0x910   :  { %v3881_v29 = vpop.f32.mrf.mxu1 }
 0x911   :  { %v3794_v28 = vpop.f32.mrf.mxu0  ;;  %v3882_v39 = vadd.f32 %v3881_v29, %v3792_v24  ;;  %v5808_v24 = vld [vmem:[%s9509_s13 + $0x80] sm:$0xff] }
 0x912   :  { %v3883_v31 = vpop.f32.mrf.mxu1  ;;  %v4614_v29 = vld [vmem:[%s9509_s13 + $0x20] sm:$0xff] }
 0x913   :  { %v3884_v43 = vadd.f32 %v3883_v31, %v3794_v28  ;;  %v5807_v28 = vld [vmem:[%s9509_s13 + $0x78] sm:$0xff] }
 0x914   :  { %v4613_v31 = vld [vmem:[%s9509_s13 + $0x18] sm:$0xff] }
 0x922   :  { %v3988_v30 = vpop.f32.mrf.mxu0 }
 0x923   :  { %v4105_v33 = vpop.f32.mrf.mxu1  ;;  %v3999_v37 = vadd.f32 %v3988_v30, %v3876_v34  ;;  %v5806_v30 = vld [vmem:[%s9509_s13 + $0x70] sm:$0xff]  ;;  %v5804_v34 = vld [vmem:[%s9509_s13 + $0x60] sm:$0xff] }
 0x924   :  { %v3990_v32 = vpop.f32.mrf.mxu0 }
 0x925   :  { %v4107_v38 = vpop.f32.mrf.mxu1  ;;  %v4000_v40 = vadd.f32 %v3990_v32, %v3878_v36  ;;  %v4116_v44 = vadd.f32 %v4105_v33, %v3999_v37  ;;  %v5805_v32 = vld [vmem:[%s9509_s13 + $0x68] sm:$0xff]  ;;  %v4612_v33 = vld [vmem:[%s9509_s13 + $0x10] sm:$0xff]  ;;  %v5803_v36 = vld [vmem:[%s9509_s13 + $0x58] sm:$0xff] }
 0x926   :  { %v4610_v37 = vld [vmem:[%s9509_s13] sm:$0xff] }
 0x927   :  { %v3994_v35 = vpop.f32.mrf.mxu0  ;;  %v4111_v46 = vpop.f32.mrf.mxu1  ;;  %v4117_v49 = vadd.f32 %v4107_v38, %v4000_v40  ;;  %v5802_v38 = vld [vmem:[%s9509_s13 + $0x50] sm:$0xff] }
 0x928   :  { %v4001_v45 = vadd.f32 %v3994_v35, %v3882_v39  ;;  %v4611_v35 = vld [vmem:[%s9509_s13 + $0x8] sm:$0xff] }
 0x929   :  { %v3996_v42 = vpop.f32.mrf.mxu0  ;;  %v4113_v59 = vpop.f32.mrf.mxu1 }
 0x92a   :  { %v4002_v51 = vadd.f32 %v3996_v42, %v3884_v43  ;;  %v4118_v53 = vadd.f32 %v4111_v46, %v4001_v45  ;;  %v5833_v45 = vld [vmem:[%s9509_s13 + $0x138] sm:$0xff] }
 0x92c   :  { %v4119_v61 = vadd.f32 %v4113_v59, %v4002_v51  ;;  %v5820_v51 = vld [vmem:[%s9509_s13 + $0xd8] sm:$0xff]  ;;  %v5817_v59 = vld [vmem:[%s9509_s13 + $0xc0] sm:$0xff] }
 0x93a   :  { %v4222_v47 = vpop.f32.mrf.mxu0 }
 0x93b   :  { %v4233_v52 = vadd.f32 %v4222_v47, %v4116_v44  ;;  %v5822_v44 = vld [vmem:[%s9509_s13 + $0xe8] sm:$0xff] }
 0x93c   :  { %v4224_v57 = vpop.f32.mrf.mxu0 }
 0x93d   :  { %v4234_v58 = vadd.f32 %v4224_v57, %v4117_v49  ;;  %v4249_v60 = vadd.f32 %v4242_v48, %v4233_v52  ;;  %v5832_v49 = vld [vmem:[%s9509_s13 + $0x130] sm:$0xff]  ;;  %v5831_v52 = vld [vmem:[%s9509_s13 + $0x128] sm:$0xff]  ;;  %v5830_v57 = vld [vmem:[%s9509_s13 + $0x120] sm:$0xff] }
 0x93e   :  { %v4228_v54 = vpop.f32.mrf.mxu0 }
 0x93f   :  { %v4250_v62 = vadd.f32 %v4246_v55, %v4234_v58  ;;  %v4235_v63 = vadd.f32 %v4228_v54, %v4118_v53  ;;  %v4253_v2 = vmax.f32 %v4249_v60, 0.0  ;;  %v5818_v53 = vld [vmem:[%s9509_s13 + $0xc8] sm:$0xff]  ;;  %v5829_v58 = vld [vmem:[%s9509_s13 + $0x118] sm:$0xff]  ;;  %v5828_v60 = vld [vmem:[%s9509_s13 + $0x110] sm:$0xff] }
 0x940   :  { %v4230_v0 = vpop.f32.mrf.mxu0  ;;  %v5816_v54 = vld [vmem:[%s9509_s13 + $0xb8] sm:$0xff] }
 0x941   :  { %v4254_v56 = vmax.f32 %v4250_v62, 0.0  ;;  %v4236_v1 = vadd.f32 %v4230_v0, %v4119_v61  ;;  %v4251_v3 = vadd.f32 %v4242_v48, %v4235_v63  ;;  %v5821_v48 = vld [vmem:[%s9509_s13 + $0xe0] sm:$0xff]  ;;  %v5827_v61 = vld [vmem:[%s9509_s13 + $0x108] sm:$0xff]  ;;  %v5815_v62 = vld [vmem:[%s9509_s13 + $0xb0] sm:$0xff] }
 0x942   :  { %v5826_v63 = vld [vmem:[%s9509_s13 + $0x100] sm:$0xff]  ;;  %v5814_v0 = vld [vmem:[%s9509_s13 + $0xa8] sm:$0xff] }
 0x943   :  { %v4252_v25 = vadd.f32 %v4246_v55, %v4236_v1  ;;  %5793 = vmatprep.mubr.msk.f32.mxu1 %vm1792_vm6, %v4254_v56  ;;  %5795 = vmatprep.mubr.msk.f32.mxu0 %vm1792_vm6, %v4254_v56  ;;  %v4255_v6 = vmax.f32 %v4251_v3, 0.0  ;;  %v5819_v55 = vld [vmem:[%s9509_s13 + $0xd0] sm:$0xff]  ;;  %v5825_v56 = vld [vmem:[%s9509_s13 + $0xf8] sm:$0xff]  ;;  %v5813_v1 = vld [vmem:[%s9509_s13 + $0xa0] sm:$0xff] }
 0x944   :  { %4348 = vmatmul.mubr.f32.vlgmr.msra.gmra.mxu1 %v4253_v2  ;;  %4443 = vmatmul.mubr.f32.vlgmr.msra.gmra.mxu0 %v4253_v2  ;;  %v5824_v2 = vld [vmem:[%s9509_s13 + $0xf0] sm:$0xff] }
 0x945   :  { %v4256_v26 = vmax.f32 %v4252_v25, 0.0  ;;  %6213 = vmatpush3.msra.mxu0 %v4619_v7  ;;  %v5842_v7 = vld [vmem:[%s9509_s13 + $0x178] sm:$0xff] }
 0x946   :  { %6214 = vmatprep.subr.mxu0 %v6410_v50 }
 0x947   :  { %5794 = vmatprep.mubr.msk.f32.mxu1 %vm1792_vm6, %v4256_v26  ;;  %5796 = vmatprep.mubr.msk.f32.mxu0 %vm1792_vm6, %v4256_v26  ;;  %v5844_v26 = vld [vmem:[%s9509_s13 + $0x188] sm:$0xff] }
 0x948   :  { %4353 = vmatmul.mubr.f32.gmra.mxu1 %v4255_v6  ;;  %4448 = vmatmul.mubr.f32.gmra.mxu0 %v4255_v6  ;;  %v5843_v6 = vld [vmem:[%s9509_s13 + $0x180] sm:$0xff] }
 0x949   :  { %6202 = vmatprep.mubr.msk.f32.mxu1 %vm6411_vm7, %v6410_v50  ;;  %6232 = vmatprep.mubr.msk.f32.mxu0 %vm6411_vm7, %v6410_v50 }
 0x94a   :  { %6215 = vmatpush3.msra.mxu0 %v4618_v4  ;;  %v5841_v4 = vld [vmem:[%s9509_s13 + $0x170] sm:$0xff] }
 0x94b   :  { %6216 = vmatprep.subr.mxu0 %v6410_v50 }
 0x94c   :  { %6217 = vmatpush3.msra.mxu0 %v4617_v5  ;;  %v5840_v5 = vld [vmem:[%s9509_s13 + $0x168] sm:$0xff] }
 0x94d   :  { %6218 = vmatprep.subr.mxu0 %v6410_v50 }
 0x94e   :  { %6219 = vmatpush3.msra.mxu0 %v4616_v23  ;;  %v5042_v23 = vld [vmem:[%s9511_s15 + $0x28] sm:$0xff] }
 0x94f   :  { %6220 = vmatprep.subr.mxu0 %v6410_v50 }
 0x950   :  { %6221 = vmatpush3.msra.mxu0 %v4615_v27  ;;  %v5040_v27 = vld [vmem:[%s9511_s15 + $0x18] sm:$0xff] }
 0x951   :  { %6222 = vmatprep.subr.mxu0 %v6410_v50 }
 0x952   :  { %6223 = vmatpush3.msra.mxu0 %v4614_v29  ;;  %v5038_v29 = vld [vmem:[%s9511_s15 + $0x8] sm:$0xff] }
 0x953   :  { %6224 = vmatprep.subr.mxu0 %v6410_v50 }
 0x954   :  { %6225 = vmatpush3.msra.mxu0 %v4613_v31  ;;  %v5144_v31 = vld [vmem:[%s9513_s17 + $0x50] sm:$0xf] }
 0x955   :  { %6226 = vmatprep.subr.mxu0 %v6410_v50 }
 0x956   :  { %6227 = vmatpush3.msra.mxu0 %v4612_v33  ;;  %v5142_v33 = vld [vmem:[%s9513_s17 + $0x40] sm:$0xff] }
 0x957   :  { %6228 = vmatprep.subr.mxu0 %v6410_v50 }
 0x958   :  { %6229 = vmatpush3.msra.mxu0 %v4611_v35  ;;  %v5140_v35 = vld [vmem:[%s9513_s17 + $0x30] sm:$0xff] }
 0x959   :  { %6230 = vmatprep.subr.mxu0 %v6410_v50 }
 0x95a   :  { %6231 = vmatpush3.msra.mxu0 %v4610_v37  ;;  %v5138_v37 = vld [vmem:[%s9513_s17 + $0x20] sm:$0xff] }
 0x95b   :  { %6258 = vmatprep.subr.mxu0 %v6410_v50 }
 0xa04   :  { %v4349_v8 = vpop.f32.mrf.mxu1  ;;  %v4444_v9 = vpop.f32.mrf.mxu0 }
 0xa05   :  { %v4453_v17 = vmax.f32 %v4349_v8, %v4444_v9  ;;  %v5839_v8 = vld [vmem:[%s9509_s13 + $0x160] sm:$0xff]  ;;  %v5838_v9 = vld [vmem:[%s9509_s13 + $0x158] sm:$0xff] }
 0xa06   :  { %v4351_v10 = vpop.f32.mrf.mxu1  ;;  %v4446_v11 = vpop.f32.mrf.mxu0 }
 0xa07   :  { %v5837_v10 = vld [vmem:[%s9509_s13 + $0x150] sm:$0xff]  ;;  %v5836_v11 = vld [vmem:[%s9509_s13 + $0x148] sm:$0xff] }
 0xa08   :  { %v4354_v12 = vpop.f32.mrf.mxu1  ;;  %v4449_v13 = vpop.f32.mrf.mxu0 }
 0xa09   :  { %v4454_v14 = vmax.f32 %v4354_v12, %v4449_v13  ;;  %v5835_v12 = vld [vmem:[%s9509_s13 + $0x140] sm:$0xff] }
 0xa0a   :  { %v4356_v15 = vpop.f32.mrf.mxu1  ;;  %v4451_v16 = vpop.f32.mrf.mxu0 }
 0xa0b   :  { %6199 = vmatpush3.msk.msra.mxu1 %vm1976_vm8, %v4454_v14  ;;  %v5050_v15 = vld [vmem:[%s9511_s15 + $0x68] sm:$0xff]  ;;  %v5049_v16 = vld [vmem:[%s9511_s15 + $0x60] sm:$0xff] }
 0xa0c   :  { %6200 = vmatprep.subr.mxu1 %v6410_v50 }
 0xa0d   :  { %6201 = vmatpush3.msra.mxu1 %v4453_v17 }
 0xa0e   :  { %6203 = vmatmul.mubr.msk.f32.vlgmr.msra.gmra.mxu1 %vm1972_vm9, %v4455_v18  ;;  %6205 = vmatprep.subr.mxu1 %v6410_v50  ;;  %v5047_v18 = vld [vmem:[%s9511_s15 + $0x50] sm:$0xff] }
 0xa0f   :  { %6206 = vmatpush3.msk.msra.mxu1 %vm1976_vm8, %v4454_v14  ;;  %6209 = vmatprep.mubr.msk.f32.mxu1 %vm6411_vm7, %v6410_v50  ;;  %v5051_v14 = vld [vmem:[%s9511_s15 + $0x70] sm:$0xff] }
 0xa10   :  { %6207 = vmatprep.subr.mxu1 %v6410_v50 }
 0xa11   :  { %6208 = vmatpush3.msra.mxu1 %v4453_v17  ;;  %v5048_v17 = vld [vmem:[%s9511_s15 + $0x58] sm:$0xff] }
 0xa12   :  { %6210 = vmatmul.mubr.msk.f32.vlgmr.msra.gmra.mxu1 %vm1972_vm9, %v4532_v19  ;;  %6235 = vmatprep.subr.mxu1 %v6410_v50  ;;  %v5046_v19 = vld [vmem:[%s9511_s15 + $0x48] sm:$0xff] }
 0xa13   :  { %6236 = vmatpush3.msra.mxu1 %v5811_v20  ;;  %6255 = vmatprep.mubr.msk.f32.mxu1 %vm6411_vm7, %v6410_v50  ;;  %v5045_v20 = vld [vmem:[%s9511_s15 + $0x40] sm:$0xff] }
 0xa14   :  { %6237 = vmatprep.subr.mxu1 %v6410_v50 }
 0xa15   :  { %6238 = vmatpush3.msra.mxu1 %v5810_v21  ;;  %v5044_v21 = vld [vmem:[%s9511_s15 + $0x38] sm:$0xff] }
 0xa16   :  { %6239 = vmatprep.subr.mxu1 %v6410_v50 }
 0xa17   :  { %6240 = vmatpush3.msra.mxu1 %v5809_v22  ;;  %v5043_v22 = vld [vmem:[%s9511_s15 + $0x30] sm:$0xff] }
 0xa18   :  { %6241 = vmatprep.subr.mxu1 %v6410_v50 }
 0xa19   :  { %6242 = vmatpush3.msra.mxu1 %v5808_v24  ;;  %v5041_v24 = vld [vmem:[%s9511_s15 + $0x20] sm:$0xff] }
 0xa1a   :  { %6243 = vmatprep.subr.mxu1 %v6410_v50 }
 0xa1b   :  { %6244 = vmatpush3.msra.mxu1 %v5807_v28  ;;  %v5039_v28 = vld [vmem:[%s9511_s15 + $0x10] sm:$0xff] }
 0xa1c   :  { %6245 = vmatprep.subr.mxu1 %v6410_v50 }
 0xa1d   :  { %6246 = vmatpush3.msra.mxu1 %v5806_v30  ;;  %v5037_v30 = vld [vmem:[%s9511_s15] sm:$0xff] }
 0xa1e   :  { %6247 = vmatprep.subr.mxu1 %v6410_v50 }
 0xa1f   :  { %6248 = vmatpush3.msra.mxu1 %v5805_v32  ;;  %v5143_v32 = vld [vmem:[%s9513_s17 + $0x48] sm:$0xff] }
 0xa20   :  { %6249 = vmatprep.subr.mxu1 %v6410_v50 }
 0xa21   :  { %6250 = vmatpush3.msra.mxu1 %v5804_v34  ;;  %v5141_v34 = vld [vmem:[%s9513_s17 + $0x38] sm:$0xff] }
 0xa22   :  { %6251 = vmatprep.subr.mxu1 %v6410_v50 }
 0xa23   :  { %6252 = vmatpush3.msra.mxu1 %v5803_v36  ;;  %v5139_v36 = vld [vmem:[%s9513_s17 + $0x28] sm:$0xff] }
 0xa24   :  { %6253 = vmatprep.subr.mxu1 %v6410_v50 }
 0xa25   :  { %6254 = vmatpush3.msra.mxu1 %v5802_v38  ;;  %v5137_v38 = vld [vmem:[%s9513_s17 + $0x18] sm:$0xff] }
 0xa26   :  { %6281 = vmatprep.subr.mxu1 %v6410_v50 }
 0xace   :  { %v4528_v39 = vpop.f32.mrf.mxu1 }
 0xad0   :  { %v6204_v40 = vpop.f32.mrf.mxu1 }
 0xad2   :  { %v4602_v41 = vpop.f32.mrf.mxu1 }
 0xad3   :  { %v4606_v42 = vmax.f32 %v4528_v39, %v4602_v41 }
 0xad4   :  { %v6211_v43 = vpop.f32.mrf.mxu1 }
 0xad5   :  { %4607 = vst.msk [vmem:[#allocation3] sm:$0x1f] %vm2125_vm10, %v4606_v42 }
 0xadc   :  { %v4609_v46 = vld [vmem:[#allocation3] sm:$0x1]  ;;  %v4694_v47 = vld [vmem:[#allocation3 + $0x1] sm:$0x1]  ;;  %v4779_v3 = vld [vmem:[#allocation3 + $0x2] sm:$0x1] }
 0xadd   :  { %6233 = vmatmul.mubr.msk.f32.vlgmr.msra.gmra.mxu0 %vm2139_vm11, %v4609_v46  ;;  %6256 = vmatmul.mubr.msk.f32.vlgmr.msra.gmra.mxu1 %vm2139_vm11, %v4694_v47  ;;  %v4864_v25 = vld [vmem:[#allocation3 + $0x3] sm:$0x1]  ;;  %v4949_v13 = vld [vmem:[#allocation3 + $0x4] sm:$0x1]  ;;  %v4608_v47 = vld [vmem:[%s9510_s14] sm:$0x1] }
 0xade   :  { %6259 = vmatpush3.msra.mxu0 %v5822_v44  ;;  %6282 = vmatpush3.msra.mxu1 %v5833_v45 }
 0xadf   :  { %6260 = vmatprep.subr.mxu0 %v6410_v50  ;;  %6283 = vmatprep.subr.mxu1 %v6410_v50 }
 0xae0   :  { %6261 = vmatpush3.msra.mxu0 %v5821_v48  ;;  %6284 = vmatpush3.msra.mxu1 %v5832_v49 }
 0xae1   :  { %6262 = vmatprep.subr.mxu0 %v6410_v50  ;;  %6285 = vmatprep.subr.mxu1 %v6410_v50 }
 0xae2   :  { %6263 = vmatpush3.msra.mxu0 %v5820_v51  ;;  %6286 = vmatpush3.msra.mxu1 %v5831_v52 }
 0xae3   :  { %6264 = vmatprep.subr.mxu0 %v6410_v50  ;;  %6287 = vmatprep.subr.mxu1 %v6410_v50 }
 0xae4   :  { %6265 = vmatpush3.msra.mxu0 %v5819_v55  ;;  %6288 = vmatpush3.msra.mxu1 %v5830_v57 }
 0xae5   :  { %6266 = vmatprep.subr.mxu0 %v6410_v50  ;;  %6289 = vmatprep.subr.mxu1 %v6410_v50 }
 0xae6   :  { %6267 = vmatpush3.msra.mxu0 %v5818_v53  ;;  %6290 = vmatpush3.msra.mxu1 %v5829_v58 }
 0xae7   :  { %6268 = vmatprep.subr.mxu0 %v6410_v50  ;;  %6291 = vmatprep.subr.mxu1 %v6410_v50 }
 0xae8   :  { %6269 = vmatpush3.msra.mxu0 %v5817_v59  ;;  %6292 = vmatpush3.msra.mxu1 %v5828_v60  ;;  %v5136_v60 = vld [vmem:[%s9513_s17 + $0x10] sm:$0xff] }
 0xae9   :  { %6270 = vmatprep.subr.mxu0 %v6410_v50  ;;  %6293 = vmatprep.subr.mxu1 %v6410_v50 }
 0xaea   :  { %6271 = vmatpush3.msra.mxu0 %v5816_v54  ;;  %6294 = vmatpush3.msra.mxu1 %v5827_v61  ;;  %v5135_v54 = vld [vmem:[%s9513_s17 + $0x8] sm:$0xff]  ;;  %v5134_v61 = vld [vmem:[%s9513_s17] sm:$0xff]  ;;  %s6388_s17 = scalar_lea.vmem %s5237_s12, 32 }
 0xaeb   :  { %6272 = vmatprep.subr.mxu0 %v6410_v50  ;;  %6295 = vmatprep.subr.mxu1 %v6410_v50  ;;  %p6389_p0 = scmp.ne.s32.totalorder %s5237_s12, %s6388_s17  ;;  %p6394_p2 = scmp.lt.s32.totalorder %s6388_s17, %s6388_s17 }
 0xaec   :  { %6273 = vmatpush3.msra.mxu0 %v5815_v62  ;;  %6296 = vmatpush3.msra.mxu1 %v5826_v63  ;;  %v5846_v62 = vld [vmem:[%s9512_s16] ss:$0 sm:$0xff] }
 0xaed   :  { %6274 = vmatprep.subr.mxu0 %v6410_v50  ;;  %6297 = vmatprep.subr.mxu1 %v6410_v50  ;;  %p6395_p3 = por %p6394_p2, %p6393_p1 }
 0xaee   :  { %6275 = vmatpush3.msra.mxu0 %v5814_v0  ;;  %6298 = vmatpush3.msra.mxu1 %v5825_v56 }
 0xaef   :  { %6276 = vmatprep.subr.mxu0 %v6410_v50  ;;  %6299 = vmatprep.subr.mxu1 %v6410_v50  ;;  %p6396_p4 = pnand %p6395_p3, %p6389_p0 }
 0xaf0   :  { %6277 = vmatpush3.msra.mxu0 %v5813_v1  ;;  %6278 = vmatprep.mubr.msk.f32.mxu0 %vm6411_vm7, %v6410_v50 }
 0xaf1   :  { %6300 = vmatpush3.msra.mxu1 %v5824_v2  ;;  %6301 = vmatprep.mubr.msk.f32.mxu1 %vm6411_vm7, %v6410_v50  ;;  %v5848_v2 = vld [vmem:[%s9514_s18] ss:$0 sm:$0xff] }
 0xaf2   :  { %6279 = vmatmul.mubr.msk.f32.vlgmr.msra.gmra.mxu0 %vm2139_vm11, %v4779_v3  ;;  %6302 = vmatmul.mubr.msk.f32.vlgmr.msra.gmra.mxu1 %vm2139_vm11, %v4864_v25 }
 0xaf3   :  { %6304 = vmatprep.subr.mxu0 %v6410_v50  ;;  %6324 = vmatprep.mubr.msk.f32.mxu0 %vm6411_vm7, %v6410_v50 }
 0xaf4   :  { %6305 = vmatpush3.msra.mxu0 %v5844_v26  ;;  %6327 = vmatprep.subr.mxu1 %v6410_v50 }
 0xaf5   :  { %6306 = vmatprep.subr.mxu0 %v6410_v50  ;;  %6357 = vmatprep.mubr.msk.f32.mxu1 %vm6411_vm7, %v6410_v50 }
 0xaf6   :  { %6307 = vmatpush3.msra.mxu0 %v5843_v6  ;;  %6328 = vmatpush3.msra.mxu1 %v5051_v14 }
 0xaf7   :  { %6308 = vmatprep.subr.mxu0 %v6410_v50  ;;  %6329 = vmatprep.subr.mxu1 %v6410_v50 }
 0xaf8   :  { %6309 = vmatpush3.msra.mxu0 %v5842_v7  ;;  %6330 = vmatpush3.msra.mxu1 %v5050_v15 }
 0xaf9   :  { %6310 = vmatprep.subr.mxu0 %v6410_v50  ;;  %6331 = vmatprep.subr.mxu1 %v6410_v50 }
 0xafa   :  { %6311 = vmatpush3.msra.mxu0 %v5841_v4  ;;  %6332 = vmatpush3.msra.mxu1 %v5049_v16 }
 0xafb   :  { %6312 = vmatprep.subr.mxu0 %v6410_v50  ;;  %6333 = vmatprep.subr.mxu1 %v6410_v50 }
 0xafc   :  { %6313 = vmatpush3.msra.mxu0 %v5840_v5  ;;  %6334 = vmatpush3.msra.mxu1 %v5048_v17 }
 0xafd   :  { %6314 = vmatprep.subr.mxu0 %v6410_v50  ;;  %6335 = vmatprep.subr.mxu1 %v6410_v50 }
 0xafe   :  { %6315 = vmatpush3.msra.mxu0 %v5839_v8  ;;  %6336 = vmatpush3.msra.mxu1 %v5047_v18 }
 0xaff   :  { %6316 = vmatprep.subr.mxu0 %v6410_v50  ;;  %6337 = vmatprep.subr.mxu1 %v6410_v50 }
 0xb00   :  { %6317 = vmatpush3.msra.mxu0 %v5838_v9  ;;  %6338 = vmatpush3.msra.mxu1 %v5046_v19 }
 0xb01   :  { %6318 = vmatprep.subr.mxu0 %v6410_v50  ;;  %6339 = vmatprep.subr.mxu1 %v6410_v50 }
 0xb02   :  { %6319 = vmatpush3.msra.mxu0 %v5837_v10  ;;  %6340 = vmatpush3.msra.mxu1 %v5045_v20 }
 0xb03   :  { %6320 = vmatprep.subr.mxu0 %v6410_v50  ;;  %6341 = vmatprep.subr.mxu1 %v6410_v50 }
 0xb04   :  { %6321 = vmatpush3.msra.mxu0 %v5836_v11  ;;  %6342 = vmatpush3.msra.mxu1 %v5044_v21 }
 0xb05   :  { %6322 = vmatprep.subr.mxu0 %v6410_v50  ;;  %6343 = vmatprep.subr.mxu1 %v6410_v50 }
 0xb06   :  { %6323 = vmatpush3.msra.mxu0 %v5835_v12  ;;  %6344 = vmatpush3.msra.mxu1 %v5043_v22 }
 0xb07   :  { %6325 = vmatmul.mubr.msk.f32.vlgmr.msra.gmra.mxu0 %vm2139_vm11, %v4949_v13  ;;  %6360 = vmatprep.subr.mxu0 %v6410_v50 }
 0xb08   :  { %6382 = vmatprep.mubr.msk.f32.mxu0 %vm6411_vm7, %v6410_v50  ;;  %6345 = vmatprep.subr.mxu1 %v6410_v50 }
 0xb09   :  { %6346 = vmatpush3.msra.mxu1 %v5042_v23  ;;  %6361 = vmatpush3.msk.msra.mxu0 %vm1003_vm3, %v5144_v31 }
 0xb0a   :  { %6347 = vmatprep.subr.mxu1 %v6410_v50  ;;  %6362 = vmatprep.subr.mxu0 %v6410_v50 }
 0xb0b   :  { %6348 = vmatpush3.msra.mxu1 %v5041_v24  ;;  %6363 = vmatpush3.msra.mxu0 %v5143_v32 }
 0xb0c   :  { %6349 = vmatprep.subr.mxu1 %v6410_v50  ;;  %6364 = vmatprep.subr.mxu0 %v6410_v50 }
 0xb0d   :  { %6350 = vmatpush3.msra.mxu1 %v5040_v27  ;;  %6365 = vmatpush3.msra.mxu0 %v5142_v33 }
 0xb0e   :  { %6351 = vmatprep.subr.mxu1 %v6410_v50  ;;  %6366 = vmatprep.subr.mxu0 %v6410_v50 }
 0xb0f   :  { %6352 = vmatpush3.msra.mxu1 %v5039_v28  ;;  %6367 = vmatpush3.msra.mxu0 %v5141_v34 }
 0xb10   :  { %6353 = vmatprep.subr.mxu1 %v6410_v50  ;;  %6368 = vmatprep.subr.mxu0 %v6410_v50 }
 0xb11   :  { %6354 = vmatpush3.msra.mxu1 %v5038_v29  ;;  %6369 = vmatpush3.msra.mxu0 %v5140_v35 }
 0xb12   :  { %6355 = vmatprep.subr.mxu1 %v6410_v50  ;;  %6370 = vmatprep.subr.mxu0 %v6410_v50 }
 0xb13   :  { %6356 = vmatpush3.msra.mxu1 %v5037_v30  ;;  %6371 = vmatpush3.msra.mxu0 %v5139_v36 }
 0xb14   :  { %6372 = vmatprep.subr.mxu0 %v6410_v50 }
 0xb15   :  { %6373 = vmatpush3.msra.mxu0 %v5138_v37 }
 0xb16   :  { %6374 = vmatprep.subr.mxu0 %v6410_v50 }
 0xb17   :  { %6375 = vmatpush3.msra.mxu0 %v5137_v38 }
 0xb18   :  { %6376 = vmatprep.subr.mxu0 %v6410_v50 }
 0xb19   :  { %6377 = vmatpush3.msra.mxu0 %v5136_v60 }
 0xb1a   :  { %6378 = vmatprep.subr.mxu0 %v6410_v50 }
 0xb1b   :  { %6379 = vmatpush3.msra.mxu0 %v5135_v54 }
 0xb1c   :  { %6380 = vmatprep.subr.mxu0 %v6410_v50 }
 0xb1d   :  { %6381 = vmatpush3.msra.mxu0 %v5134_v61 }
 0xb9d   :  { %v4689_v39 = vpop.f32.mrf.mxu0  ;;  %v4774_v40 = vpop.f32.mrf.mxu1 }
 0xb9e   :  { %v4693_v48 = vadd.f32 %v4689_v39, %v4608_v47 }
 0xb9f   :  { %v6234_v41 = vpop.f32.mrf.mxu0  ;;  %v6257_v42 = vpop.f32.mrf.mxu1 }
 0xba0   :  { %v4778_v49 = vadd.f32 %v4774_v40, %v4693_v48 }
 0xbb2   :  { %v4859_v43 = vpop.f32.mrf.mxu0  ;;  %v4944_v44 = vpop.f32.mrf.mxu1 }
 0xbb3   :  { %v4863_v51 = vadd.f32 %v4859_v43, %v4778_v49 }
 0xbb4   :  { %v6280_v45 = vpop.f32.mrf.mxu0  ;;  %v6303_v46 = vpop.f32.mrf.mxu1 }
 0xbb5   :  { %v4948_v52 = vadd.f32 %v4944_v44, %v4863_v51 }
 0xbc7   :  { %v5029_v55 = vpop.f32.mrf.mxu0 }
 0xbc8   :  { %v5033_v57 = vadd.f32 %v5029_v55, %v4948_v52 }
 0xbc9   :  { %v6326_v53 = vpop.f32.mrf.mxu0 }
 0xbca   :  { %v5034_v58 = vmax.f32 %v5033_v57, 0.0 }
 0xbcc   :  { %5035 = vst.msk [vmem:[#allocation4 + $0x1] sm:$0x1] %vm2559_vm12, %v5034_v58 }
 0xbd3   :  { %v5036_v59 = vld [vmem:[#allocation4] sm:$0x3] }
 0xbd4   :  { %6358 = vmatmul.mubr.msk.f32.vlgmr.msra.gmra.mxu1 %vm5059_vm13, %v5036_v59 }
 0xc94   :  { %v5129_v63 = vpop.f32.mrf.mxu1 }
 0xc95   :  { %v5130_v0 = vadd.f32 %v5846_v62, %v5129_v63 }
 0xc96   :  { %v6359_v56 = vpop.f32.mrf.mxu1 }
 0xc97   :  { %v5133_v1 = vmax.f32 %v5130_v0, 0.0 }
 0xc99   :  { %6383 = vmatmul.mubr.msk.f32.vlgmr.msra.gmra.mxu0 %vm1167_vm5, %v5133_v1 }
 0xd59   :  { %v5224_v50 = vpop.f32.mrf.mxu0 }
 0xd5a   :  { %v5225_v3 = vadd.f32 %v5848_v2, %v5224_v50 }
 0xd5b   :  { %v6384_v25 = vpop.f32.mrf.mxu0 }
 0xd5c   :  { %5229 = vst.msk [vmem:[#allocation5] sm:$0x3] %vm5228_vm14, %v5225_v3 }
 0xd5d   :  { %6399 = shalt.err (!%p6396_p4)
}
 0xd5e   :  { %5239 = dma.vmem_to_hbm [thread:$0]  %s5237_s12, 32, %s9515_s19, [#allocation6]  }
 0xd5f   :  { %6408 = dma.done.wait [#allocation6], 32  }
 0xd60   :  { %6409 = vsyncadd [#allocation6], 4294967264 }
 0xd61   :  { %5243 = vsyncpa [#allocation6], 1 }

</bundles_post_ra>
